<compile_context>
chip_gen: v5e
topology: v5e:2x2
jax: 0.10.0
libtpu: 0.0.40
codegen_flags: <defaults>
</compile_context>

<pallas_src>
import functools
import math

import jax
import jax.numpy as jnp
from jax.experimental import pallas as pl
from jax.experimental.pallas import tpu as pltpu

EPS = 1e-4                  # ChannelNorm eps (torch.var is unbiased, eps inside sqrt)
MAX_TIMESTEPS = 10000       # TimeEncoding1d
INV_SQRT2 = 0.7071067811865476
COND_CHANNELS = 256


# ---------------------------------------------------------------------------
# Fused GeneratorResStack Pallas kernel (one batch element per grid step).
# ---------------------------------------------------------------------------
def _res_stack_kernel(x_ref, emb_ref, m12_ref, wc_ref, bc_ref, o_ref):
    """All res-blocks of one GeneratorResStack, NCL layout (L on lanes).

    x_ref  : (1, C, L)       residual stream (f32)
    emb_ref: (1, C, 1)       time encoding (f32), identical for every layer
    m12_ref: (NL, 1, 2C, L)  per-layer interp(spec_conv1(spec)) ++ interp(spec_conv2(spec))
    wc_ref : (NL, 7, C, C)   k=7 conv weights, layout [layer, tap, c_out, c_in] (bf16)
    bc_ref : (NL, C, 1)      k=7 conv bias (f32)
    o_ref  : (1, C, L)
    """
    C = x_ref.shape[1]
    L = x_ref.shape[2]
    num_layers = m12_ref.shape[0]

    h = x_ref[0]                                     # [C, L] f32, VMEM-resident
    emb = emb_ref[0]                                 # [C, 1]

    for layer in range(num_layers):                  # static unroll over layers
        res = h
        # --- ChannelNorm: mean / unbiased var over channels (sublane axis) ---
        mean = jnp.mean(h, axis=0, keepdims=True)
        xc = h - mean
        var = jnp.sum(xc * xc, axis=0, keepdims=True) * (1.0 / (C - 1))
        xn = xc * jax.lax.rsqrt(var + EPS)
        # --- TimeEncoding1d: add per-(batch, channel) encoding ---
        xn = xn + emb
        # --- spec modulation: x * interp(conv1(spec)) + interp(conv2(spec)) ---
        mod = m12_ref[layer, 0]                      # [2C, L]; sublane-aligned split
        xm = xn * mod[:C] + mod[C:]
        # --- Conv1d(C, C, 7, padding='same', padding_mode='reflect') ---
        # reflect-pad 3 along L (lanes); requires L >= 4.
        xp = jnp.concatenate(
            [xm[:, 3:4], xm[:, 2:3], xm[:, 1:2], xm,
             xm[:, L - 2:L - 1], xm[:, L - 3:L - 2], xm[:, L - 4:L - 3]],
            axis=1).astype(jnp.bfloat16)             # [C, L+6], bf16 MXU operand
        acc = jnp.dot(wc_ref[layer, 0], xp[:, 0:L],
                      preferred_element_type=jnp.float32)
        for k in range(1, 7):                        # static unroll over taps
            acc = acc + jnp.dot(wc_ref[layer, k], xp[:, k:k + L],
                                preferred_element_type=jnp.float32)
        acc = acc + bc_ref[layer]                    # [C, 1] broadcast over L
        # --- exact GELU (erf form, matching nn.GELU default) ---
        y = 0.5 * acc * (1.0 + jax.lax.erf(acc * INV_SQRT2))
        # --- residual ---
        h = y + res

    o_ref[0] = h


def generator_res_stack(x, t, spec, p):
    """Fused GeneratorResStack.  x: [B, C, L] (NCL); t: [B]; spec: [B, 256, L_spec]."""
    B, C, L = x.shape
    num_layers = p["w1"].shape[0]

    # Time-encoding table (layer-invariant): [B, C, 1]
    half = C // 2
    factors = 1.0 / (MAX_TIMESTEPS ** (jnp.arange(half, dtype=jnp.float32) / half))
    ang = t.astype(jnp.float32)[:, None] * jnp.pi * factors[None, :]
    emb = jnp.concatenate([jnp.sin(ang), jnp.cos(ang)], axis=1)[:, :, None]

    # 1x1 spec convs at spec resolution (conv1 & conv2 fused into one matmul),
    # then nearest gather to L.  Exact: a 1x1 conv commutes with the gather.
    S = spec.shape[-1]
    idx = jnp.clip((jnp.arange(L) * S) // L, 0, S - 1)   # floor(l * S / L), nearest
    w12 = jnp.concatenate([p["w1"], p["w2"]], axis=1)    # [NL, 2C, 256]
    b12 = jnp.concatenate([p["b1"], p["b2"]], axis=1)    # [NL, 2C]
    m12 = jnp.einsum("lck,bks->lbcs", w12, spec) + b12[:, None, :, None]
    m12 = jnp.take(m12, idx, axis=-1)                    # [NL, B, 2C, L]

    # TODO(synk): for production-length L on v7x, add an L-tile grid axis with a
    # 3*num_layers halo so blocks fit the 64 MiB VMEM; whole-L blocks are fine at
    # these sizes.
    return pl.pallas_call(
        _res_stack_kernel,
        out_shape=jax.ShapeDtypeStruct((B, C, L), jnp.float32),
        grid=(B,),
        in_specs=[
            pl.BlockSpec((1, C, L), lambda b: (b, 0, 0)),
            pl.BlockSpec((1, C, 1), lambda b: (b, 0, 0)),
            pl.BlockSpec((num_layers, 1, 2 * C, L), lambda b: (0, b, 0, 0)),
            pl.BlockSpec((num_layers, 7, C, C), lambda b: (0, 0, 0, 0)),
            pl.BlockSpec((num_layers, C, 1), lambda b: (0, 0, 0)),
        ],
        out_specs=pl.BlockSpec((1, C, L), lambda b: (b, 0, 0)),
        compiler_params=pltpu.CompilerParams(
            dimension_semantics=("parallel",),
            vmem_limit_bytes=32 * 1024 * 1024),
    )(x, emb, m12, p["wc"], p["bc"])


# ---------------------------------------------------------------------------
# Plain-JAX glue: PyTorch-style Conv1d / ConvTranspose1d (XLA handles these).
# ---------------------------------------------------------------------------
def _conv1d(x, w, b, *, stride=1, padding=0, reflect=False):
    """x: [B, Cin, L]; w: [Cout, Cin, K] (PyTorch layout); b: [Cout]."""
    if reflect and padding > 0:
        x = jnp.pad(x, ((0, 0), (0, 0), (padding, padding)), mode="reflect")
        pads = [(0, 0)]
    else:
        pads = [(padding, padding)]
    y = jax.lax.conv_general_dilated(
        x, w, window_strides=(stride,), padding=pads,
        dimension_numbers=("NCH", "OIH", "NCH"))
    return y + b[None, :, None]


def _conv_transpose1d(x, w, b, *, stride, padding):
    """PyTorch ConvTranspose1d.  w: [Cin, Cout, K] (PyTorch layout); b: [Cout]."""
    K = w.shape[-1]
    w_oih = jnp.transpose(w[:, :, ::-1], (1, 0, 2))       # flip taps -> [Cout, Cin, K]
    y = jax.lax.conv_general_dilated(
        x, w_oih, window_strides=(1,),
        padding=[(K - 1 - padding, K - 1 - padding)],
        lhs_dilation=(stride,),
        dimension_numbers=("NCH", "OIH", "NCH"))
    return y + b[None, :, None]


# ---------------------------------------------------------------------------
# Full Vocoder forward (matches the PyTorch module structure).
# ---------------------------------------------------------------------------
@functools.partial(jax.jit, static_argnames=("rates",))
def vocoder_forward(params, x, time, condition, rates=(2, 2, 8, 8)):
    """x: [B, T]; time: [B]; condition: [B, 256, L_spec] -> [B, T_padded]."""
    B, T = x.shape
    if T % 256 != 0:
        pad_len = 256 - T % 256
        x = jnp.concatenate([x, jnp.zeros((B, pad_len), x.dtype)], axis=1)
    h = x[:, None, :]
    h = _conv1d(h, params["in_w"], params["in_b"], padding=3, reflect=True)

    skips = []
    for enc, ds, r in zip(params["enc"], params["down"], rates):
        skips.append(h)
        h = generator_res_stack(h, time, condition, enc)
        h = _conv1d(h, ds["w"], ds["b"], stride=r, padding=r // 2)

    h = generator_res_stack(h, time, condition, params["mid"])

    for dec, us, s, r in zip(params["dec"], params["up"],
                             reversed(skips), tuple(reversed(rates))):
        h = _conv_transpose1d(h, us["w"], us["b"], stride=r, padding=r // 2)
        h = generator_res_stack(h, time, condition, dec)
        h = h + s

    h = _conv1d(h, params["out_w"], params["out_b"], padding=3, reflect=True)
    return h[:, 0, :]


# ---------------------------------------------------------------------------
# Parameter construction (random, deterministic; PyTorch weight layouts noted).
# ---------------------------------------------------------------------------
def _uniform(key, shape, scale):
    return jax.random.uniform(key, shape, jnp.float32, -scale, scale)


def _init_stack(key, channels, num_layers, cond_channels=COND_CHANNELS):
    ks = jax.random.split(key, 6)
    s1 = 1.0 / math.sqrt(cond_channels)
    sc = 1.0 / math.sqrt(channels * 7)
    # PyTorch layouts: spec 1x1 conv weight [Cout, 256]; k=7 conv weight [Cout, Cin, 7].
    wc_pt = _uniform(ks[4], (num_layers, channels, channels, 7), sc)
    return dict(
        w1=_uniform(ks[0], (num_layers, channels, cond_channels), s1),
        b1=_uniform(ks[1], (num_layers, channels), s1),
        w2=_uniform(ks[2], (num_layers, channels, cond_channels), s1),
        b2=_uniform(ks[3], (num_layers, channels), s1),
        # kernel layout [layer, tap, c_out, c_in]; bf16 MXU operand.
        wc=jnp.transpose(wc_pt, (0, 3, 1, 2)).astype(jnp.bfloat16),
        bc=_uniform(ks[5], (num_layers, channels), sc)[:, :, None],
    )


def make_vocoder_params(key, layers=(4, 4, 4, 4), channels=(32, 64, 128, 256),
                        rates=(2, 2, 8, 8), cond_channels=COND_CHANNELS):
    keys = iter(jax.random.split(key, 8 + 6 * len(layers)))
    c0 = channels[0]
    p = {
        "in_w": _uniform(next(keys), (c0, 1, 7), 1.0 / math.sqrt(7)),
        "in_b": _uniform(next(keys), (c0,), 1.0 / math.sqrt(7)),
        "out_w": _uniform(next(keys), (1, c0, 7), 1.0 / math.sqrt(7 * c0)),
        "out_b": _uniform(next(keys), (1,), 1.0 / math.sqrt(7 * c0)),
        "down": [], "up": [], "enc": [], "dec": [],
    }
    ch_next = list(channels[1:]) + [channels[-1]]
    for num_l, c, cn, r in zip(layers, channels, ch_next, rates):
        k = 2 * r
        p["down"].append(dict(                     # Conv1d(c, cn, 2r, r, r//2)
            w=_uniform(next(keys), (cn, c, k), 1.0 / math.sqrt(c * k)),
            b=_uniform(next(keys), (cn,), 1.0 / math.sqrt(c * k))))
        p["up"].insert(0, dict(                    # ConvTranspose1d(cn, c, 2r, r, r//2)
            w=_uniform(next(keys), (cn, c, k), 1.0 / math.sqrt(cn * k)),
            b=_uniform(next(keys), (c,), 1.0 / math.sqrt(cn * k))))
        p["enc"].append(_init_stack(next(keys), c, num_l, cond_channels))
        p["dec"].insert(0, _init_stack(next(keys), c, num_l, cond_channels))
    p["mid"] = _init_stack(next(keys), channels[-1], 4, cond_channels)
    return p


# ---------------------------------------------------------------------------
# Pure-JAX reference for one GeneratorResStack (for a self-consistency check).
# ---------------------------------------------------------------------------
def _res_stack_reference(x, t, spec, p):
    B, C, L = x.shape
    num_layers = p["w1"].shape[0]
    half = C // 2
    factors = 1.0 / (MAX_TIMESTEPS ** (jnp.arange(half, dtype=jnp.float32) / half))
    ang = t.astype(jnp.float32)[:, None] * jnp.pi * factors[None, :]
    emb = jnp.concatenate([jnp.sin(ang), jnp.cos(ang)], axis=1)[:, :, None]
    S = spec.shape[-1]
    idx = jnp.clip((jnp.arange(L) * S) // L, 0, S - 1)
    wc = jnp.transpose(p["wc"].astype(jnp.float32), (0, 2, 3, 1))   # [NL, Cout, Cin, 7]
    h = x
    for layer in range(num_layers):
        res = h
        mean = jnp.mean(h, axis=1, keepdims=True)
        var = jnp.sum((h - mean) ** 2, axis=1, keepdims=True) / (C - 1)
        hn = (h - mean) / jnp.sqrt(var + EPS) + emb
        m1 = jnp.einsum("ck,bks->bcs", p["w1"][layer], spec) + p["b1"][layer][None, :, None]
        m2 = jnp.einsum("ck,bks->bcs", p["w2"][layer], spec) + p["b2"][layer][None, :, None]
        hm = hn * m1[..., idx] + m2[..., idx]
        hp = jnp.pad(hm, ((0, 0), (0, 0), (3, 3)), mode="reflect")
        y = jax.lax.conv_general_dilated(
            hp, wc[layer], (1,), [(0, 0)], dimension_numbers=("NCH", "OIH", "NCH"))
        y = y + p["bc"][layer][None]
        y = 0.5 * y * (1.0 + jax.lax.erf(y * INV_SQRT2))
        h = y + res
    return h


if __name__ == "__main__":
    key = jax.random.PRNGKey(0)
    kp, kx, kt, kc, ks = jax.random.split(key, 5)

    # Small end-to-end Vocoder run: B=2, T=1024 samples (multiple of the 256x
    # total downsample factor, so the deepest stack still has L >= 4), 8 cond frames.
    B, T, S = 2, 1024, 8
    params = make_vocoder_params(kp)
    x = jax.random.normal(kx, (B, T), jnp.float32)
    t = jax.random.uniform(kt, (B,), jnp.float32, 0.0, 1000.0)
    cond = jax.random.normal(kc, (B, COND_CHANNELS, S), jnp.float32)

    # Self-consistency check of the fused Pallas res-stack vs a pure-JAX reference
    # (bf16 MXU operands in the kernel -> loose tolerance).
    xs = jax.random.normal(ks, (B, 32, 64), jnp.float32)
    got = jax.block_until_ready(generator_res_stack(xs, t, cond, params["enc"][0]))
    want = _res_stack_reference(xs, t, cond, params["enc"][0])
    err = float(jnp.max(jnp.abs(got - want)))
    assert err < 1e-1, f"res-stack mismatch: max abs err {err}"

    out = jax.block_until_ready(vocoder_forward(params, x, t, cond))
    assert out.shape == (B, T) and out.dtype == jnp.float32
    assert bool(jnp.all(jnp.isfinite(out)))
    print("KERNEL_OK")
</pallas_src>

<mosaic_0001>
module attributes {stable_mosaic.version = 11 : i64} {
  func.func @_res_stack_kernel(%arg0: i32, %arg1: memref<1x32x64xf32, #tpu.memory_space<vmem>>, %arg2: memref<1x32x1xf32, #tpu.memory_space<vmem>>, %arg3: memref<4x1x64x64xf32, #tpu.memory_space<vmem>>, %arg4: memref<4x7x32x32xbf16, #tpu.memory_space<vmem>>, %arg5: memref<4x32x1xf32, #tpu.memory_space<vmem>>, %arg6: memref<1x32x64xf32, #tpu.memory_space<vmem>>) attributes {dimension_semantics = [#tpu.dimension_semantics<parallel>], iteration_bounds = array<i64: 2>, scalar_prefetch = 0 : i64, scratch_operands = 0 : i64, tpu.core_type = #tpu.core_type<tc>, window_params = [{transform_indices = @transform_0, window_bounds = array<i64: 1, 32, 64>}, {transform_indices = @transform_1, window_bounds = array<i64: 1, 32, 1>}, {transform_indices = @transform_2, window_bounds = array<i64: 4, 1, 64, 64>}, {pipeline_mode = #tpu.pipeline_mode<synchronous>, transform_indices = @transform_3, window_bounds = array<i64: 4, 7, 32, 32>}, {pipeline_mode = #tpu.pipeline_mode<synchronous>, transform_indices = @transform_4, window_bounds = array<i64: 4, 32, 1>}, {transform_indices = @transform_5, window_bounds = array<i64: 1, 32, 64>}]} {
    %c0 = arith.constant 0 : index
    %c0_0 = arith.constant 0 : index
    %c0_1 = arith.constant 0 : index
    %0 = vector.load %arg1[%c0, %c0_0, %c0_1] : memref<1x32x64xf32, #tpu.memory_space<vmem>>, vector<1x32x64xf32>
    %1 = vector.shape_cast %0 : vector<1x32x64xf32> to vector<32x64xf32>
    %c0_2 = arith.constant 0 : index
    %c0_3 = arith.constant 0 : index
    %c0_4 = arith.constant 0 : index
    %2 = vector.load %arg2[%c0_2, %c0_3, %c0_4] : memref<1x32x1xf32, #tpu.memory_space<vmem>>, vector<1x32x1xf32>
    %3 = vector.shape_cast %2 : vector<1x32x1xf32> to vector<32x1xf32>
    %cst = arith.constant dense<0.000000e+00> : vector<64xf32>
    %4 = vector.multi_reduction <add>, %1, %cst [0] : vector<32x64xf32> to vector<64xf32>
    %5 = vector.shape_cast %4 : vector<64xf32> to vector<1x64xf32>
    %cst_5 = arith.constant 3.200000e+01 : f32
    %6 = vector.broadcast %cst_5 : f32 to vector<1x64xf32>
    %7 = arith.divf %5, %6 : vector<1x64xf32>
    %8 = vector.broadcast %7 : vector<1x64xf32> to vector<32x64xf32>
    %9 = arith.subf %1, %8 : vector<32x64xf32>
    %10 = arith.mulf %9, %9 : vector<32x64xf32>
    %cst_6 = arith.constant dense<0.000000e+00> : vector<64xf32>
    %11 = vector.multi_reduction <add>, %10, %cst_6 [0] : vector<32x64xf32> to vector<64xf32>
    %12 = vector.shape_cast %11 : vector<64xf32> to vector<1x64xf32>
    %cst_7 = arith.constant 0.0322580636 : f32
    %13 = vector.broadcast %cst_7 : f32 to vector<1x64xf32>
    %14 = arith.mulf %12, %13 : vector<1x64xf32>
    %cst_8 = arith.constant 9.99999974E-5 : f32
    %15 = vector.broadcast %cst_8 : f32 to vector<1x64xf32>
    %16 = arith.addf %14, %15 : vector<1x64xf32>
    %17 = math.rsqrt %16 : vector<1x64xf32>
    %18 = vector.broadcast %17 : vector<1x64xf32> to vector<32x64xf32>
    %19 = arith.mulf %9, %18 : vector<32x64xf32>
    %20 = vector.broadcast %3 : vector<32x1xf32> to vector<32x64xf32>
    %21 = arith.addf %19, %20 : vector<32x64xf32>
    %c0_9 = arith.constant 0 : index
    %c0_10 = arith.constant 0 : index
    %c0_11 = arith.constant 0 : index
    %c0_12 = arith.constant 0 : index
    %22 = vector.load %arg3[%c0_9, %c0_10, %c0_11, %c0_12] : memref<4x1x64x64xf32, #tpu.memory_space<vmem>>, vector<1x1x64x64xf32>
    %23 = vector.shape_cast %22 : vector<1x1x64x64xf32> to vector<64x64xf32>
    %24 = vector.extract_strided_slice %23 {offsets = [0, 0], sizes = [32, 64], strides = [1, 1]} : vector<64x64xf32> to vector<32x64xf32>
    %25 = arith.mulf %21, %24 : vector<32x64xf32>
    %26 = vector.extract_strided_slice %23 {offsets = [32, 0], sizes = [32, 64], strides = [1, 1]} : vector<64x64xf32> to vector<32x64xf32>
    %27 = arith.addf %25, %26 : vector<32x64xf32>
    %28 = vector.extract_strided_slice %27 {offsets = [0, 3], sizes = [32, 1], strides = [1, 1]} : vector<32x64xf32> to vector<32x1xf32>
    %29 = vector.extract_strided_slice %27 {offsets = [0, 2], sizes = [32, 1], strides = [1, 1]} : vector<32x64xf32> to vector<32x1xf32>
    %30 = vector.extract_strided_slice %27 {offsets = [0, 1], sizes = [32, 1], strides = [1, 1]} : vector<32x64xf32> to vector<32x1xf32>
    %31 = vector.extract_strided_slice %27 {offsets = [0, 62], sizes = [32, 1], strides = [1, 1]} : vector<32x64xf32> to vector<32x1xf32>
    %32 = vector.extract_strided_slice %27 {offsets = [0, 61], sizes = [32, 1], strides = [1, 1]} : vector<32x64xf32> to vector<32x1xf32>
    %33 = vector.extract_strided_slice %27 {offsets = [0, 60], sizes = [32, 1], strides = [1, 1]} : vector<32x64xf32> to vector<32x1xf32>
    %34 = tpu.concatenate %28, %29, %30, %27, %31, %32, %33 in 1 : vector<32x1xf32>, vector<32x1xf32>, vector<32x1xf32>, vector<32x64xf32>, vector<32x1xf32>, vector<32x1xf32>, vector<32x1xf32> -> vector<32x70xf32>
    %35 = arith.truncf %34 : vector<32x70xf32> to vector<32x70xbf16>
    %c0_13 = arith.constant 0 : index
    %c0_14 = arith.constant 0 : index
    %c0_15 = arith.constant 0 : index
    %c0_16 = arith.constant 0 : index
    %36 = vector.load %arg4[%c0_13, %c0_14, %c0_15, %c0_16] : memref<4x7x32x32xbf16, #tpu.memory_space<vmem>>, vector<1x1x32x32xbf16>
    %37 = vector.shape_cast %36 : vector<1x1x32x32xbf16> to vector<32x32xbf16>
    %38 = vector.extract_strided_slice %35 {offsets = [0, 0], sizes = [32, 64], strides = [1, 1]} : vector<32x70xbf16> to vector<32x64xbf16>
    %cst_17 = arith.constant dense<0.000000e+00> : vector<32x64xf32>
    %39 = tpu.matmul %37, %38, %cst_17 {dimension_numbers = #tpu.dot_dimension_numbers<[1], [0], [0], [1], [0, 0, 1, 1], [], []>} : vector<32x32xbf16>, vector<32x64xbf16>, vector<32x64xf32> -> vector<32x64xf32>
    %c0_18 = arith.constant 0 : index
    %c1 = arith.constant 1 : index
    %c0_19 = arith.constant 0 : index
    %c0_20 = arith.constant 0 : index
    %40 = vector.load %arg4[%c0_18, %c1, %c0_19, %c0_20] : memref<4x7x32x32xbf16, #tpu.memory_space<vmem>>, vector<1x1x32x32xbf16>
    %41 = vector.shape_cast %40 : vector<1x1x32x32xbf16> to vector<32x32xbf16>
    %42 = vector.extract_strided_slice %35 {offsets = [0, 1], sizes = [32, 64], strides = [1, 1]} : vector<32x70xbf16> to vector<32x64xbf16>
    %cst_21 = arith.constant dense<0.000000e+00> : vector<32x64xf32>
    %43 = tpu.matmul %41, %42, %cst_21 {dimension_numbers = #tpu.dot_dimension_numbers<[1], [0], [0], [1], [0, 0, 1, 1], [], []>} : vector<32x32xbf16>, vector<32x64xbf16>, vector<32x64xf32> -> vector<32x64xf32>
    %44 = arith.addf %39, %43 : vector<32x64xf32>
    %c0_22 = arith.constant 0 : index
    %c2 = arith.constant 2 : index
    %c0_23 = arith.constant 0 : index
    %c0_24 = arith.constant 0 : index
    %45 = vector.load %arg4[%c0_22, %c2, %c0_23, %c0_24] : memref<4x7x32x32xbf16, #tpu.memory_space<vmem>>, vector<1x1x32x32xbf16>
    %46 = vector.shape_cast %45 : vector<1x1x32x32xbf16> to vector<32x32xbf16>
    %47 = vector.extract_strided_slice %35 {offsets = [0, 2], sizes = [32, 64], strides = [1, 1]} : vector<32x70xbf16> to vector<32x64xbf16>
    %cst_25 = arith.constant dense<0.000000e+00> : vector<32x64xf32>
    %48 = tpu.matmul %46, %47, %cst_25 {dimension_numbers = #tpu.dot_dimension_numbers<[1], [0], [0], [1], [0, 0, 1, 1], [], []>} : vector<32x32xbf16>, vector<32x64xbf16>, vector<32x64xf32> -> vector<32x64xf32>
    %49 = arith.addf %44, %48 : vector<32x64xf32>
    %c0_26 = arith.constant 0 : index
    %c3 = arith.constant 3 : index
    %c0_27 = arith.constant 0 : index
    %c0_28 = arith.constant 0 : index
    %50 = vector.load %arg4[%c0_26, %c3, %c0_27, %c0_28] : memref<4x7x32x32xbf16, #tpu.memory_space<vmem>>, vector<1x1x32x32xbf16>
    %51 = vector.shape_cast %50 : vector<1x1x32x32xbf16> to vector<32x32xbf16>
    %52 = vector.extract_strided_slice %35 {offsets = [0, 3], sizes = [32, 64], strides = [1, 1]} : vector<32x70xbf16> to vector<32x64xbf16>
    %cst_29 = arith.constant dense<0.000000e+00> : vector<32x64xf32>
    %53 = tpu.matmul %51, %52, %cst_29 {dimension_numbers = #tpu.dot_dimension_numbers<[1], [0], [0], [1], [0, 0, 1, 1], [], []>} : vector<32x32xbf16>, vector<32x64xbf16>, vector<32x64xf32> -> vector<32x64xf32>
    %54 = arith.addf %49, %53 : vector<32x64xf32>
    %c0_30 = arith.constant 0 : index
    %c4 = arith.constant 4 : index
    %c0_31 = arith.constant 0 : index
    %c0_32 = arith.constant 0 : index
    %55 = vector.load %arg4[%c0_30, %c4, %c0_31, %c0_32] : memref<4x7x32x32xbf16, #tpu.memory_space<vmem>>, vector<1x1x32x32xbf16>
    %56 = vector.shape_cast %55 : vector<1x1x32x32xbf16> to vector<32x32xbf16>
    %57 = vector.extract_strided_slice %35 {offsets = [0, 4], sizes = [32, 64], strides = [1, 1]} : vector<32x70xbf16> to vector<32x64xbf16>
    %cst_33 = arith.constant dense<0.000000e+00> : vector<32x64xf32>
    %58 = tpu.matmul %56, %57, %cst_33 {dimension_numbers = #tpu.dot_dimension_numbers<[1], [0], [0], [1], [0, 0, 1, 1], [], []>} : vector<32x32xbf16>, vector<32x64xbf16>, vector<32x64xf32> -> vector<32x64xf32>
    %59 = arith.addf %54, %58 : vector<32x64xf32>
    %c0_34 = arith.constant 0 : index
    %c5 = arith.constant 5 : index
    %c0_35 = arith.constant 0 : index
    %c0_36 = arith.constant 0 : index
    %60 = vector.load %arg4[%c0_34, %c5, %c0_35, %c0_36] : memref<4x7x32x32xbf16, #tpu.memory_space<vmem>>, vector<1x1x32x32xbf16>
    %61 = vector.shape_cast %60 : vector<1x1x32x32xbf16> to vector<32x32xbf16>
    %62 = vector.extract_strided_slice %35 {offsets = [0, 5], sizes = [32, 64], strides = [1, 1]} : vector<32x70xbf16> to vector<32x64xbf16>
    %cst_37 = arith.constant dense<0.000000e+00> : vector<32x64xf32>
    %63 = tpu.matmul %61, %62, %cst_37 {dimension_numbers = #tpu.dot_dimension_numbers<[1], [0], [0], [1], [0, 0, 1, 1], [], []>} : vector<32x32xbf16>, vector<32x64xbf16>, vector<32x64xf32> -> vector<32x64xf32>
    %64 = arith.addf %59, %63 : vector<32x64xf32>
    %c0_38 = arith.constant 0 : index
    %c6 = arith.constant 6 : index
    %c0_39 = arith.constant 0 : index
    %c0_40 = arith.constant 0 : index
    %65 = vector.load %arg4[%c0_38, %c6, %c0_39, %c0_40] : memref<4x7x32x32xbf16, #tpu.memory_space<vmem>>, vector<1x1x32x32xbf16>
    %66 = vector.shape_cast %65 : vector<1x1x32x32xbf16> to vector<32x32xbf16>
    %67 = vector.extract_strided_slice %35 {offsets = [0, 6], sizes = [32, 64], strides = [1, 1]} : vector<32x70xbf16> to vector<32x64xbf16>
    %cst_41 = arith.constant dense<0.000000e+00> : vector<32x64xf32>
    %68 = tpu.matmul %66, %67, %cst_41 {dimension_numbers = #tpu.dot_dimension_numbers<[1], [0], [0], [1], [0, 0, 1, 1], [], []>} : vector<32x32xbf16>, vector<32x64xbf16>, vector<32x64xf32> -> vector<32x64xf32>
    %69 = arith.addf %64, %68 : vector<32x64xf32>
    %c0_42 = arith.constant 0 : index
    %c0_43 = arith.constant 0 : index
    %c0_44 = arith.constant 0 : index
    %70 = vector.load %arg5[%c0_42, %c0_43, %c0_44] : memref<4x32x1xf32, #tpu.memory_space<vmem>>, vector<1x32x1xf32>
    %71 = vector.shape_cast %70 : vector<1x32x1xf32> to vector<32x1xf32>
    %72 = vector.broadcast %71 : vector<32x1xf32> to vector<32x64xf32>
    %73 = arith.addf %69, %72 : vector<32x64xf32>
    %cst_45 = arith.constant 5.000000e-01 : f32
    %74 = vector.broadcast %cst_45 : f32 to vector<32x64xf32>
    %75 = arith.mulf %74, %73 : vector<32x64xf32>
    %cst_46 = arith.constant 0.707106769 : f32
    %76 = vector.broadcast %cst_46 : f32 to vector<32x64xf32>
    %77 = arith.mulf %73, %76 : vector<32x64xf32>
    %78 = math.erf %77 : vector<32x64xf32>
    %cst_47 = arith.constant 1.000000e+00 : f32
    %79 = vector.broadcast %cst_47 : f32 to vector<32x64xf32>
    %80 = arith.addf %79, %78 : vector<32x64xf32>
    %81 = arith.mulf %75, %80 : vector<32x64xf32>
    %82 = arith.addf %81, %1 : vector<32x64xf32>
    %cst_48 = arith.constant dense<0.000000e+00> : vector<64xf32>
    %83 = vector.multi_reduction <add>, %82, %cst_48 [0] : vector<32x64xf32> to vector<64xf32>
    %84 = vector.shape_cast %83 : vector<64xf32> to vector<1x64xf32>
    %cst_49 = arith.constant 3.200000e+01 : f32
    %85 = vector.broadcast %cst_49 : f32 to vector<1x64xf32>
    %86 = arith.divf %84, %85 : vector<1x64xf32>
    %87 = vector.broadcast %86 : vector<1x64xf32> to vector<32x64xf32>
    %88 = arith.subf %82, %87 : vector<32x64xf32>
    %89 = arith.mulf %88, %88 : vector<32x64xf32>
    %cst_50 = arith.constant dense<0.000000e+00> : vector<64xf32>
    %90 = vector.multi_reduction <add>, %89, %cst_50 [0] : vector<32x64xf32> to vector<64xf32>
    %91 = vector.shape_cast %90 : vector<64xf32> to vector<1x64xf32>
    %cst_51 = arith.constant 0.0322580636 : f32
    %92 = vector.broadcast %cst_51 : f32 to vector<1x64xf32>
    %93 = arith.mulf %91, %92 : vector<1x64xf32>
    %cst_52 = arith.constant 9.99999974E-5 : f32
    %94 = vector.broadcast %cst_52 : f32 to vector<1x64xf32>
    %95 = arith.addf %93, %94 : vector<1x64xf32>
    %96 = math.rsqrt %95 : vector<1x64xf32>
    %97 = vector.broadcast %96 : vector<1x64xf32> to vector<32x64xf32>
    %98 = arith.mulf %88, %97 : vector<32x64xf32>
    %99 = vector.broadcast %3 : vector<32x1xf32> to vector<32x64xf32>
    %100 = arith.addf %98, %99 : vector<32x64xf32>
    %c1_53 = arith.constant 1 : index
    %c0_54 = arith.constant 0 : index
    %c0_55 = arith.constant 0 : index
    %c0_56 = arith.constant 0 : index
    %101 = vector.load %arg3[%c1_53, %c0_54, %c0_55, %c0_56] : memref<4x1x64x64xf32, #tpu.memory_space<vmem>>, vector<1x1x64x64xf32>
    %102 = vector.shape_cast %101 : vector<1x1x64x64xf32> to vector<64x64xf32>
    %103 = vector.extract_strided_slice %102 {offsets = [0, 0], sizes = [32, 64], strides = [1, 1]} : vector<64x64xf32> to vector<32x64xf32>
    %104 = arith.mulf %100, %103 : vector<32x64xf32>
    %105 = vector.extract_strided_slice %102 {offsets = [32, 0], sizes = [32, 64], strides = [1, 1]} : vector<64x64xf32> to vector<32x64xf32>
    %106 = arith.addf %104, %105 : vector<32x64xf32>
    %107 = vector.extract_strided_slice %106 {offsets = [0, 3], sizes = [32, 1], strides = [1, 1]} : vector<32x64xf32> to vector<32x1xf32>
    %108 = vector.extract_strided_slice %106 {offsets = [0, 2], sizes = [32, 1], strides = [1, 1]} : vector<32x64xf32> to vector<32x1xf32>
    %109 = vector.extract_strided_slice %106 {offsets = [0, 1], sizes = [32, 1], strides = [1, 1]} : vector<32x64xf32> to vector<32x1xf32>
    %110 = vector.extract_strided_slice %106 {offsets = [0, 62], sizes = [32, 1], strides = [1, 1]} : vector<32x64xf32> to vector<32x1xf32>
    %111 = vector.extract_strided_slice %106 {offsets = [0, 61], sizes = [32, 1], strides = [1, 1]} : vector<32x64xf32> to vector<32x1xf32>
    %112 = vector.extract_strided_slice %106 {offsets = [0, 60], sizes = [32, 1], strides = [1, 1]} : vector<32x64xf32> to vector<32x1xf32>
    %113 = tpu.concatenate %107, %108, %109, %106, %110, %111, %112 in 1 : vector<32x1xf32>, vector<32x1xf32>, vector<32x1xf32>, vector<32x64xf32>, vector<32x1xf32>, vector<32x1xf32>, vector<32x1xf32> -> vector<32x70xf32>
    %114 = arith.truncf %113 : vector<32x70xf32> to vector<32x70xbf16>
    %c1_57 = arith.constant 1 : index
    %c0_58 = arith.constant 0 : index
    %c0_59 = arith.constant 0 : index
    %c0_60 = arith.constant 0 : index
    %115 = vector.load %arg4[%c1_57, %c0_58, %c0_59, %c0_60] : memref<4x7x32x32xbf16, #tpu.memory_space<vmem>>, vector<1x1x32x32xbf16>
    %116 = vector.shape_cast %115 : vector<1x1x32x32xbf16> to vector<32x32xbf16>
    %117 = vector.extract_strided_slice %114 {offsets = [0, 0], sizes = [32, 64], strides = [1, 1]} : vector<32x70xbf16> to vector<32x64xbf16>
    %cst_61 = arith.constant dense<0.000000e+00> : vector<32x64xf32>
    %118 = tpu.matmul %116, %117, %cst_61 {dimension_numbers = #tpu.dot_dimension_numbers<[1], [0], [0], [1], [0, 0, 1, 1], [], []>} : vector<32x32xbf16>, vector<32x64xbf16>, vector<32x64xf32> -> vector<32x64xf32>
    %c1_62 = arith.constant 1 : index
    %c1_63 = arith.constant 1 : index
    %c0_64 = arith.constant 0 : index
    %c0_65 = arith.constant 0 : index
    %119 = vector.load %arg4[%c1_62, %c1_63, %c0_64, %c0_65] : memref<4x7x32x32xbf16, #tpu.memory_space<vmem>>, vector<1x1x32x32xbf16>
    %120 = vector.shape_cast %119 : vector<1x1x32x32xbf16> to vector<32x32xbf16>
    %121 = vector.extract_strided_slice %114 {offsets = [0, 1], sizes = [32, 64], strides = [1, 1]} : vector<32x70xbf16> to vector<32x64xbf16>
    %cst_66 = arith.constant dense<0.000000e+00> : vector<32x64xf32>
    %122 = tpu.matmul %120, %121, %cst_66 {dimension_numbers = #tpu.dot_dimension_numbers<[1], [0], [0], [1], [0, 0, 1, 1], [], []>} : vector<32x32xbf16>, vector<32x64xbf16>, vector<32x64xf32> -> vector<32x64xf32>
    %123 = arith.addf %118, %122 : vector<32x64xf32>
    %c1_67 = arith.constant 1 : index
    %c2_68 = arith.constant 2 : index
    %c0_69 = arith.constant 0 : index
    %c0_70 = arith.constant 0 : index
    %124 = vector.load %arg4[%c1_67, %c2_68, %c0_69, %c0_70] : memref<4x7x32x32xbf16, #tpu.memory_space<vmem>>, vector<1x1x32x32xbf16>
    %125 = vector.shape_cast %124 : vector<1x1x32x32xbf16> to vector<32x32xbf16>
    %126 = vector.extract_strided_slice %114 {offsets = [0, 2], sizes = [32, 64], strides = [1, 1]} : vector<32x70xbf16> to vector<32x64xbf16>
    %cst_71 = arith.constant dense<0.000000e+00> : vector<32x64xf32>
    %127 = tpu.matmul %125, %126, %cst_71 {dimension_numbers = #tpu.dot_dimension_numbers<[1], [0], [0], [1], [0, 0, 1, 1], [], []>} : vector<32x32xbf16>, vector<32x64xbf16>, vector<32x64xf32> -> vector<32x64xf32>
    %128 = arith.addf %123, %127 : vector<32x64xf32>
    %c1_72 = arith.constant 1 : index
    %c3_73 = arith.constant 3 : index
    %c0_74 = arith.constant 0 : index
    %c0_75 = arith.constant 0 : index
    %129 = vector.load %arg4[%c1_72, %c3_73, %c0_74, %c0_75] : memref<4x7x32x32xbf16, #tpu.memory_space<vmem>>, vector<1x1x32x32xbf16>
    %130 = vector.shape_cast %129 : vector<1x1x32x32xbf16> to vector<32x32xbf16>
    %131 = vector.extract_strided_slice %114 {offsets = [0, 3], sizes = [32, 64], strides = [1, 1]} : vector<32x70xbf16> to vector<32x64xbf16>
    %cst_76 = arith.constant dense<0.000000e+00> : vector<32x64xf32>
    %132 = tpu.matmul %130, %131, %cst_76 {dimension_numbers = #tpu.dot_dimension_numbers<[1], [0], [0], [1], [0, 0, 1, 1], [], []>} : vector<32x32xbf16>, vector<32x64xbf16>, vector<32x64xf32> -> vector<32x64xf32>
    %133 = arith.addf %128, %132 : vector<32x64xf32>
    %c1_77 = arith.constant 1 : index
    %c4_78 = arith.constant 4 : index
    %c0_79 = arith.constant 0 : index
    %c0_80 = arith.constant 0 : index
    %134 = vector.load %arg4[%c1_77, %c4_78, %c0_79, %c0_80] : memref<4x7x32x32xbf16, #tpu.memory_space<vmem>>, vector<1x1x32x32xbf16>
    %135 = vector.shape_cast %134 : vector<1x1x32x32xbf16> to vector<32x32xbf16>
    %136 = vector.extract_strided_slice %114 {offsets = [0, 4], sizes = [32, 64], strides = [1, 1]} : vector<32x70xbf16> to vector<32x64xbf16>
    %cst_81 = arith.constant dense<0.000000e+00> : vector<32x64xf32>
    %137 = tpu.matmul %135, %136, %cst_81 {dimension_numbers = #tpu.dot_dimension_numbers<[1], [0], [0], [1], [0, 0, 1, 1], [], []>} : vector<32x32xbf16>, vector<32x64xbf16>, vector<32x64xf32> -> vector<32x64xf32>
    %138 = arith.addf %133, %137 : vector<32x64xf32>
    %c1_82 = arith.constant 1 : index
    %c5_83 = arith.constant 5 : index
    %c0_84 = arith.constant 0 : index
    %c0_85 = arith.constant 0 : index
    %139 = vector.load %arg4[%c1_82, %c5_83, %c0_84, %c0_85] : memref<4x7x32x32xbf16, #tpu.memory_space<vmem>>, vector<1x1x32x32xbf16>
    %140 = vector.shape_cast %139 : vector<1x1x32x32xbf16> to vector<32x32xbf16>
    %141 = vector.extract_strided_slice %114 {offsets = [0, 5], sizes = [32, 64], strides = [1, 1]} : vector<32x70xbf16> to vector<32x64xbf16>
    %cst_86 = arith.constant dense<0.000000e+00> : vector<32x64xf32>
    %142 = tpu.matmul %140, %141, %cst_86 {dimension_numbers = #tpu.dot_dimension_numbers<[1], [0], [0], [1], [0, 0, 1, 1], [], []>} : vector<32x32xbf16>, vector<32x64xbf16>, vector<32x64xf32> -> vector<32x64xf32>
    %143 = arith.addf %138, %142 : vector<32x64xf32>
    %c1_87 = arith.constant 1 : index
    %c6_88 = arith.constant 6 : index
    %c0_89 = arith.constant 0 : index
    %c0_90 = arith.constant 0 : index
    %144 = vector.load %arg4[%c1_87, %c6_88, %c0_89, %c0_90] : memref<4x7x32x32xbf16, #tpu.memory_space<vmem>>, vector<1x1x32x32xbf16>
    %145 = vector.shape_cast %144 : vector<1x1x32x32xbf16> to vector<32x32xbf16>
    %146 = vector.extract_strided_slice %114 {offsets = [0, 6], sizes = [32, 64], strides = [1, 1]} : vector<32x70xbf16> to vector<32x64xbf16>
    %cst_91 = arith.constant dense<0.000000e+00> : vector<32x64xf32>
    %147 = tpu.matmul %145, %146, %cst_91 {dimension_numbers = #tpu.dot_dimension_numbers<[1], [0], [0], [1], [0, 0, 1, 1], [], []>} : vector<32x32xbf16>, vector<32x64xbf16>, vector<32x64xf32> -> vector<32x64xf32>
    %148 = arith.addf %143, %147 : vector<32x64xf32>
    %c1_92 = arith.constant 1 : index
    %c0_93 = arith.constant 0 : index
    %c0_94 = arith.constant 0 : index
    %149 = vector.load %arg5[%c1_92, %c0_93, %c0_94] : memref<4x32x1xf32, #tpu.memory_space<vmem>>, vector<1x32x1xf32>
    %150 = vector.shape_cast %149 : vector<1x32x1xf32> to vector<32x1xf32>
    %151 = vector.broadcast %150 : vector<32x1xf32> to vector<32x64xf32>
    %152 = arith.addf %148, %151 : vector<32x64xf32>
    %cst_95 = arith.constant 5.000000e-01 : f32
    %153 = vector.broadcast %cst_95 : f32 to vector<32x64xf32>
    %154 = arith.mulf %153, %152 : vector<32x64xf32>
    %cst_96 = arith.constant 0.707106769 : f32
    %155 = vector.broadcast %cst_96 : f32 to vector<32x64xf32>
    %156 = arith.mulf %152, %155 : vector<32x64xf32>
    %157 = math.erf %156 : vector<32x64xf32>
    %cst_97 = arith.constant 1.000000e+00 : f32
    %158 = vector.broadcast %cst_97 : f32 to vector<32x64xf32>
    %159 = arith.addf %158, %157 : vector<32x64xf32>
    %160 = arith.mulf %154, %159 : vector<32x64xf32>
    %161 = arith.addf %160, %82 : vector<32x64xf32>
    %cst_98 = arith.constant dense<0.000000e+00> : vector<64xf32>
    %162 = vector.multi_reduction <add>, %161, %cst_98 [0] : vector<32x64xf32> to vector<64xf32>
    %163 = vector.shape_cast %162 : vector<64xf32> to vector<1x64xf32>
    %cst_99 = arith.constant 3.200000e+01 : f32
    %164 = vector.broadcast %cst_99 : f32 to vector<1x64xf32>
    %165 = arith.divf %163, %164 : vector<1x64xf32>
    %166 = vector.broadcast %165 : vector<1x64xf32> to vector<32x64xf32>
    %167 = arith.subf %161, %166 : vector<32x64xf32>
    %168 = arith.mulf %167, %167 : vector<32x64xf32>
    %cst_100 = arith.constant dense<0.000000e+00> : vector<64xf32>
    %169 = vector.multi_reduction <add>, %168, %cst_100 [0] : vector<32x64xf32> to vector<64xf32>
    %170 = vector.shape_cast %169 : vector<64xf32> to vector<1x64xf32>
    %cst_101 = arith.constant 0.0322580636 : f32
    %171 = vector.broadcast %cst_101 : f32 to vector<1x64xf32>
    %172 = arith.mulf %170, %171 : vector<1x64xf32>
    %cst_102 = arith.constant 9.99999974E-5 : f32
    %173 = vector.broadcast %cst_102 : f32 to vector<1x64xf32>
    %174 = arith.addf %172, %173 : vector<1x64xf32>
    %175 = math.rsqrt %174 : vector<1x64xf32>
    %176 = vector.broadcast %175 : vector<1x64xf32> to vector<32x64xf32>
    %177 = arith.mulf %167, %176 : vector<32x64xf32>
    %178 = vector.broadcast %3 : vector<32x1xf32> to vector<32x64xf32>
    %179 = arith.addf %177, %178 : vector<32x64xf32>
    %c2_103 = arith.constant 2 : index
    %c0_104 = arith.constant 0 : index
    %c0_105 = arith.constant 0 : index
    %c0_106 = arith.constant 0 : index
    %180 = vector.load %arg3[%c2_103, %c0_104, %c0_105, %c0_106] : memref<4x1x64x64xf32, #tpu.memory_space<vmem>>, vector<1x1x64x64xf32>
    %181 = vector.shape_cast %180 : vector<1x1x64x64xf32> to vector<64x64xf32>
    %182 = vector.extract_strided_slice %181 {offsets = [0, 0], sizes = [32, 64], strides = [1, 1]} : vector<64x64xf32> to vector<32x64xf32>
    %183 = arith.mulf %179, %182 : vector<32x64xf32>
    %184 = vector.extract_strided_slice %181 {offsets = [32, 0], sizes = [32, 64], strides = [1, 1]} : vector<64x64xf32> to vector<32x64xf32>
    %185 = arith.addf %183, %184 : vector<32x64xf32>
    %186 = vector.extract_strided_slice %185 {offsets = [0, 3], sizes = [32, 1], strides = [1, 1]} : vector<32x64xf32> to vector<32x1xf32>
    %187 = vector.extract_strided_slice %185 {offsets = [0, 2], sizes = [32, 1], strides = [1, 1]} : vector<32x64xf32> to vector<32x1xf32>
    %188 = vector.extract_strided_slice %185 {offsets = [0, 1], sizes = [32, 1], strides = [1, 1]} : vector<32x64xf32> to vector<32x1xf32>
    %189 = vector.extract_strided_slice %185 {offsets = [0, 62], sizes = [32, 1], strides = [1, 1]} : vector<32x64xf32> to vector<32x1xf32>
    %190 = vector.extract_strided_slice %185 {offsets = [0, 61], sizes = [32, 1], strides = [1, 1]} : vector<32x64xf32> to vector<32x1xf32>
    %191 = vector.extract_strided_slice %185 {offsets = [0, 60], sizes = [32, 1], strides = [1, 1]} : vector<32x64xf32> to vector<32x1xf32>
    %192 = tpu.concatenate %186, %187, %188, %185, %189, %190, %191 in 1 : vector<32x1xf32>, vector<32x1xf32>, vector<32x1xf32>, vector<32x64xf32>, vector<32x1xf32>, vector<32x1xf32>, vector<32x1xf32> -> vector<32x70xf32>
    %193 = arith.truncf %192 : vector<32x70xf32> to vector<32x70xbf16>
    %c2_107 = arith.constant 2 : index
    %c0_108 = arith.constant 0 : index
    %c0_109 = arith.constant 0 : index
    %c0_110 = arith.constant 0 : index
    %194 = vector.load %arg4[%c2_107, %c0_108, %c0_109, %c0_110] : memref<4x7x32x32xbf16, #tpu.memory_space<vmem>>, vector<1x1x32x32xbf16>
    %195 = vector.shape_cast %194 : vector<1x1x32x32xbf16> to vector<32x32xbf16>
    %196 = vector.extract_strided_slice %193 {offsets = [0, 0], sizes = [32, 64], strides = [1, 1]} : vector<32x70xbf16> to vector<32x64xbf16>
    %cst_111 = arith.constant dense<0.000000e+00> : vector<32x64xf32>
    %197 = tpu.matmul %195, %196, %cst_111 {dimension_numbers = #tpu.dot_dimension_numbers<[1], [0], [0], [1], [0, 0, 1, 1], [], []>} : vector<32x32xbf16>, vector<32x64xbf16>, vector<32x64xf32> -> vector<32x64xf32>
    %c2_112 = arith.constant 2 : index
    %c1_113 = arith.constant 1 : index
    %c0_114 = arith.constant 0 : index
    %c0_115 = arith.constant 0 : index
    %198 = vector.load %arg4[%c2_112, %c1_113, %c0_114, %c0_115] : memref<4x7x32x32xbf16, #tpu.memory_space<vmem>>, vector<1x1x32x32xbf16>
    %199 = vector.shape_cast %198 : vector<1x1x32x32xbf16> to vector<32x32xbf16>
    %200 = vector.extract_strided_slice %193 {offsets = [0, 1], sizes = [32, 64], strides = [1, 1]} : vector<32x70xbf16> to vector<32x64xbf16>
    %cst_116 = arith.constant dense<0.000000e+00> : vector<32x64xf32>
    %201 = tpu.matmul %199, %200, %cst_116 {dimension_numbers = #tpu.dot_dimension_numbers<[1], [0], [0], [1], [0, 0, 1, 1], [], []>} : vector<32x32xbf16>, vector<32x64xbf16>, vector<32x64xf32> -> vector<32x64xf32>
    %202 = arith.addf %197, %201 : vector<32x64xf32>
    %c2_117 = arith.constant 2 : index
    %c2_118 = arith.constant 2 : index
    %c0_119 = arith.constant 0 : index
    %c0_120 = arith.constant 0 : index
    %203 = vector.load %arg4[%c2_117, %c2_118, %c0_119, %c0_120] : memref<4x7x32x32xbf16, #tpu.memory_space<vmem>>, vector<1x1x32x32xbf16>
    %204 = vector.shape_cast %203 : vector<1x1x32x32xbf16> to vector<32x32xbf16>
    %205 = vector.extract_strided_slice %193 {offsets = [0, 2], sizes = [32, 64], strides = [1, 1]} : vector<32x70xbf16> to vector<32x64xbf16>
    %cst_121 = arith.constant dense<0.000000e+00> : vector<32x64xf32>
    %206 = tpu.matmul %204, %205, %cst_121 {dimension_numbers = #tpu.dot_dimension_numbers<[1], [0], [0], [1], [0, 0, 1, 1], [], []>} : vector<32x32xbf16>, vector<32x64xbf16>, vector<32x64xf32> -> vector<32x64xf32>
    %207 = arith.addf %202, %206 : vector<32x64xf32>
    %c2_122 = arith.constant 2 : index
    %c3_123 = arith.constant 3 : index
    %c0_124 = arith.constant 0 : index
    %c0_125 = arith.constant 0 : index
    %208 = vector.load %arg4[%c2_122, %c3_123, %c0_124, %c0_125] : memref<4x7x32x32xbf16, #tpu.memory_space<vmem>>, vector<1x1x32x32xbf16>
    %209 = vector.shape_cast %208 : vector<1x1x32x32xbf16> to vector<32x32xbf16>
    %210 = vector.extract_strided_slice %193 {offsets = [0, 3], sizes = [32, 64], strides = [1, 1]} : vector<32x70xbf16> to vector<32x64xbf16>
    %cst_126 = arith.constant dense<0.000000e+00> : vector<32x64xf32>
    %211 = tpu.matmul %209, %210, %cst_126 {dimension_numbers = #tpu.dot_dimension_numbers<[1], [0], [0], [1], [0, 0, 1, 1], [], []>} : vector<32x32xbf16>, vector<32x64xbf16>, vector<32x64xf32> -> vector<32x64xf32>
    %212 = arith.addf %207, %211 : vector<32x64xf32>
    %c2_127 = arith.constant 2 : index
    %c4_128 = arith.constant 4 : index
    %c0_129 = arith.constant 0 : index
    %c0_130 = arith.constant 0 : index
    %213 = vector.load %arg4[%c2_127, %c4_128, %c0_129, %c0_130] : memref<4x7x32x32xbf16, #tpu.memory_space<vmem>>, vector<1x1x32x32xbf16>
    %214 = vector.shape_cast %213 : vector<1x1x32x32xbf16> to vector<32x32xbf16>
    %215 = vector.extract_strided_slice %193 {offsets = [0, 4], sizes = [32, 64], strides = [1, 1]} : vector<32x70xbf16> to vector<32x64xbf16>
    %cst_131 = arith.constant dense<0.000000e+00> : vector<32x64xf32>
    %216 = tpu.matmul %214, %215, %cst_131 {dimension_numbers = #tpu.dot_dimension_numbers<[1], [0], [0], [1], [0, 0, 1, 1], [], []>} : vector<32x32xbf16>, vector<32x64xbf16>, vector<32x64xf32> -> vector<32x64xf32>
    %217 = arith.addf %212, %216 : vector<32x64xf32>
    %c2_132 = arith.constant 2 : index
    %c5_133 = arith.constant 5 : index
    %c0_134 = arith.constant 0 : index
    %c0_135 = arith.constant 0 : index
    %218 = vector.load %arg4[%c2_132, %c5_133, %c0_134, %c0_135] : memref<4x7x32x32xbf16, #tpu.memory_space<vmem>>, vector<1x1x32x32xbf16>
    %219 = vector.shape_cast %218 : vector<1x1x32x32xbf16> to vector<32x32xbf16>
    %220 = vector.extract_strided_slice %193 {offsets = [0, 5], sizes = [32, 64], strides = [1, 1]} : vector<32x70xbf16> to vector<32x64xbf16>
    %cst_136 = arith.constant dense<0.000000e+00> : vector<32x64xf32>
    %221 = tpu.matmul %219, %220, %cst_136 {dimension_numbers = #tpu.dot_dimension_numbers<[1], [0], [0], [1], [0, 0, 1, 1], [], []>} : vector<32x32xbf16>, vector<32x64xbf16>, vector<32x64xf32> -> vector<32x64xf32>
    %222 = arith.addf %217, %221 : vector<32x64xf32>
    %c2_137 = arith.constant 2 : index
    %c6_138 = arith.constant 6 : index
    %c0_139 = arith.constant 0 : index
    %c0_140 = arith.constant 0 : index
    %223 = vector.load %arg4[%c2_137, %c6_138, %c0_139, %c0_140] : memref<4x7x32x32xbf16, #tpu.memory_space<vmem>>, vector<1x1x32x32xbf16>
    %224 = vector.shape_cast %223 : vector<1x1x32x32xbf16> to vector<32x32xbf16>
    %225 = vector.extract_strided_slice %193 {offsets = [0, 6], sizes = [32, 64], strides = [1, 1]} : vector<32x70xbf16> to vector<32x64xbf16>
    %cst_141 = arith.constant dense<0.000000e+00> : vector<32x64xf32>
    %226 = tpu.matmul %224, %225, %cst_141 {dimension_numbers = #tpu.dot_dimension_numbers<[1], [0], [0], [1], [0, 0, 1, 1], [], []>} : vector<32x32xbf16>, vector<32x64xbf16>, vector<32x64xf32> -> vector<32x64xf32>
    %227 = arith.addf %222, %226 : vector<32x64xf32>
    %c2_142 = arith.constant 2 : index
    %c0_143 = arith.constant 0 : index
    %c0_144 = arith.constant 0 : index
    %228 = vector.load %arg5[%c2_142, %c0_143, %c0_144] : memref<4x32x1xf32, #tpu.memory_space<vmem>>, vector<1x32x1xf32>
    %229 = vector.shape_cast %228 : vector<1x32x1xf32> to vector<32x1xf32>
    %230 = vector.broadcast %229 : vector<32x1xf32> to vector<32x64xf32>
    %231 = arith.addf %227, %230 : vector<32x64xf32>
    %cst_145 = arith.constant 5.000000e-01 : f32
    %232 = vector.broadcast %cst_145 : f32 to vector<32x64xf32>
    %233 = arith.mulf %232, %231 : vector<32x64xf32>
    %cst_146 = arith.constant 0.707106769 : f32
    %234 = vector.broadcast %cst_146 : f32 to vector<32x64xf32>
    %235 = arith.mulf %231, %234 : vector<32x64xf32>
    %236 = math.erf %235 : vector<32x64xf32>
    %cst_147 = arith.constant 1.000000e+00 : f32
    %237 = vector.broadcast %cst_147 : f32 to vector<32x64xf32>
    %238 = arith.addf %237, %236 : vector<32x64xf32>
    %239 = arith.mulf %233, %238 : vector<32x64xf32>
    %240 = arith.addf %239, %161 : vector<32x64xf32>
    %cst_148 = arith.constant dense<0.000000e+00> : vector<64xf32>
    %241 = vector.multi_reduction <add>, %240, %cst_148 [0] : vector<32x64xf32> to vector<64xf32>
    %242 = vector.shape_cast %241 : vector<64xf32> to vector<1x64xf32>
    %cst_149 = arith.constant 3.200000e+01 : f32
    %243 = vector.broadcast %cst_149 : f32 to vector<1x64xf32>
    %244 = arith.divf %242, %243 : vector<1x64xf32>
    %245 = vector.broadcast %244 : vector<1x64xf32> to vector<32x64xf32>
    %246 = arith.subf %240, %245 : vector<32x64xf32>
    %247 = arith.mulf %246, %246 : vector<32x64xf32>
    %cst_150 = arith.constant dense<0.000000e+00> : vector<64xf32>
    %248 = vector.multi_reduction <add>, %247, %cst_150 [0] : vector<32x64xf32> to vector<64xf32>
    %249 = vector.shape_cast %248 : vector<64xf32> to vector<1x64xf32>
    %cst_151 = arith.constant 0.0322580636 : f32
    %250 = vector.broadcast %cst_151 : f32 to vector<1x64xf32>
    %251 = arith.mulf %249, %250 : vector<1x64xf32>
    %cst_152 = arith.constant 9.99999974E-5 : f32
    %252 = vector.broadcast %cst_152 : f32 to vector<1x64xf32>
    %253 = arith.addf %251, %252 : vector<1x64xf32>
    %254 = math.rsqrt %253 : vector<1x64xf32>
    %255 = vector.broadcast %254 : vector<1x64xf32> to vector<32x64xf32>
    %256 = arith.mulf %246, %255 : vector<32x64xf32>
    %257 = vector.broadcast %3 : vector<32x1xf32> to vector<32x64xf32>
    %258 = arith.addf %256, %257 : vector<32x64xf32>
    %c3_153 = arith.constant 3 : index
    %c0_154 = arith.constant 0 : index
    %c0_155 = arith.constant 0 : index
    %c0_156 = arith.constant 0 : index
    %259 = vector.load %arg3[%c3_153, %c0_154, %c0_155, %c0_156] : memref<4x1x64x64xf32, #tpu.memory_space<vmem>>, vector<1x1x64x64xf32>
    %260 = vector.shape_cast %259 : vector<1x1x64x64xf32> to vector<64x64xf32>
    %261 = vector.extract_strided_slice %260 {offsets = [0, 0], sizes = [32, 64], strides = [1, 1]} : vector<64x64xf32> to vector<32x64xf32>
    %262 = arith.mulf %258, %261 : vector<32x64xf32>
    %263 = vector.extract_strided_slice %260 {offsets = [32, 0], sizes = [32, 64], strides = [1, 1]} : vector<64x64xf32> to vector<32x64xf32>
    %264 = arith.addf %262, %263 : vector<32x64xf32>
    %265 = vector.extract_strided_slice %264 {offsets = [0, 3], sizes = [32, 1], strides = [1, 1]} : vector<32x64xf32> to vector<32x1xf32>
    %266 = vector.extract_strided_slice %264 {offsets = [0, 2], sizes = [32, 1], strides = [1, 1]} : vector<32x64xf32> to vector<32x1xf32>
    %267 = vector.extract_strided_slice %264 {offsets = [0, 1], sizes = [32, 1], strides = [1, 1]} : vector<32x64xf32> to vector<32x1xf32>
    %268 = vector.extract_strided_slice %264 {offsets = [0, 62], sizes = [32, 1], strides = [1, 1]} : vector<32x64xf32> to vector<32x1xf32>
    %269 = vector.extract_strided_slice %264 {offsets = [0, 61], sizes = [32, 1], strides = [1, 1]} : vector<32x64xf32> to vector<32x1xf32>
    %270 = vector.extract_strided_slice %264 {offsets = [0, 60], sizes = [32, 1], strides = [1, 1]} : vector<32x64xf32> to vector<32x1xf32>
    %271 = tpu.concatenate %265, %266, %267, %264, %268, %269, %270 in 1 : vector<32x1xf32>, vector<32x1xf32>, vector<32x1xf32>, vector<32x64xf32>, vector<32x1xf32>, vector<32x1xf32>, vector<32x1xf32> -> vector<32x70xf32>
    %272 = arith.truncf %271 : vector<32x70xf32> to vector<32x70xbf16>
    %c3_157 = arith.constant 3 : index
    %c0_158 = arith.constant 0 : index
    %c0_159 = arith.constant 0 : index
    %c0_160 = arith.constant 0 : index
    %273 = vector.load %arg4[%c3_157, %c0_158, %c0_159, %c0_160] : memref<4x7x32x32xbf16, #tpu.memory_space<vmem>>, vector<1x1x32x32xbf16>
    %274 = vector.shape_cast %273 : vector<1x1x32x32xbf16> to vector<32x32xbf16>
    %275 = vector.extract_strided_slice %272 {offsets = [0, 0], sizes = [32, 64], strides = [1, 1]} : vector<32x70xbf16> to vector<32x64xbf16>
    %cst_161 = arith.constant dense<0.000000e+00> : vector<32x64xf32>
    %276 = tpu.matmul %274, %275, %cst_161 {dimension_numbers = #tpu.dot_dimension_numbers<[1], [0], [0], [1], [0, 0, 1, 1], [], []>} : vector<32x32xbf16>, vector<32x64xbf16>, vector<32x64xf32> -> vector<32x64xf32>
    %c3_162 = arith.constant 3 : index
    %c1_163 = arith.constant 1 : index
    %c0_164 = arith.constant 0 : index
    %c0_165 = arith.constant 0 : index
    %277 = vector.load %arg4[%c3_162, %c1_163, %c0_164, %c0_165] : memref<4x7x32x32xbf16, #tpu.memory_space<vmem>>, vector<1x1x32x32xbf16>
    %278 = vector.shape_cast %277 : vector<1x1x32x32xbf16> to vector<32x32xbf16>
    %279 = vector.extract_strided_slice %272 {offsets = [0, 1], sizes = [32, 64], strides = [1, 1]} : vector<32x70xbf16> to vector<32x64xbf16>
    %cst_166 = arith.constant dense<0.000000e+00> : vector<32x64xf32>
    %280 = tpu.matmul %278, %279, %cst_166 {dimension_numbers = #tpu.dot_dimension_numbers<[1], [0], [0], [1], [0, 0, 1, 1], [], []>} : vector<32x32xbf16>, vector<32x64xbf16>, vector<32x64xf32> -> vector<32x64xf32>
    %281 = arith.addf %276, %280 : vector<32x64xf32>
    %c3_167 = arith.constant 3 : index
    %c2_168 = arith.constant 2 : index
    %c0_169 = arith.constant 0 : index
    %c0_170 = arith.constant 0 : index
    %282 = vector.load %arg4[%c3_167, %c2_168, %c0_169, %c0_170] : memref<4x7x32x32xbf16, #tpu.memory_space<vmem>>, vector<1x1x32x32xbf16>
    %283 = vector.shape_cast %282 : vector<1x1x32x32xbf16> to vector<32x32xbf16>
    %284 = vector.extract_strided_slice %272 {offsets = [0, 2], sizes = [32, 64], strides = [1, 1]} : vector<32x70xbf16> to vector<32x64xbf16>
    %cst_171 = arith.constant dense<0.000000e+00> : vector<32x64xf32>
    %285 = tpu.matmul %283, %284, %cst_171 {dimension_numbers = #tpu.dot_dimension_numbers<[1], [0], [0], [1], [0, 0, 1, 1], [], []>} : vector<32x32xbf16>, vector<32x64xbf16>, vector<32x64xf32> -> vector<32x64xf32>
    %286 = arith.addf %281, %285 : vector<32x64xf32>
    %c3_172 = arith.constant 3 : index
    %c3_173 = arith.constant 3 : index
    %c0_174 = arith.constant 0 : index
    %c0_175 = arith.constant 0 : index
    %287 = vector.load %arg4[%c3_172, %c3_173, %c0_174, %c0_175] : memref<4x7x32x32xbf16, #tpu.memory_space<vmem>>, vector<1x1x32x32xbf16>
    %288 = vector.shape_cast %287 : vector<1x1x32x32xbf16> to vector<32x32xbf16>
    %289 = vector.extract_strided_slice %272 {offsets = [0, 3], sizes = [32, 64], strides = [1, 1]} : vector<32x70xbf16> to vector<32x64xbf16>
    %cst_176 = arith.constant dense<0.000000e+00> : vector<32x64xf32>
    %290 = tpu.matmul %288, %289, %cst_176 {dimension_numbers = #tpu.dot_dimension_numbers<[1], [0], [0], [1], [0, 0, 1, 1], [], []>} : vector<32x32xbf16>, vector<32x64xbf16>, vector<32x64xf32> -> vector<32x64xf32>
    %291 = arith.addf %286, %290 : vector<32x64xf32>
    %c3_177 = arith.constant 3 : index
    %c4_178 = arith.constant 4 : index
    %c0_179 = arith.constant 0 : index
    %c0_180 = arith.constant 0 : index
    %292 = vector.load %arg4[%c3_177, %c4_178, %c0_179, %c0_180] : memref<4x7x32x32xbf16, #tpu.memory_space<vmem>>, vector<1x1x32x32xbf16>
    %293 = vector.shape_cast %292 : vector<1x1x32x32xbf16> to vector<32x32xbf16>
    %294 = vector.extract_strided_slice %272 {offsets = [0, 4], sizes = [32, 64], strides = [1, 1]} : vector<32x70xbf16> to vector<32x64xbf16>
    %cst_181 = arith.constant dense<0.000000e+00> : vector<32x64xf32>
    %295 = tpu.matmul %293, %294, %cst_181 {dimension_numbers = #tpu.dot_dimension_numbers<[1], [0], [0], [1], [0, 0, 1, 1], [], []>} : vector<32x32xbf16>, vector<32x64xbf16>, vector<32x64xf32> -> vector<32x64xf32>
    %296 = arith.addf %291, %295 : vector<32x64xf32>
    %c3_182 = arith.constant 3 : index
    %c5_183 = arith.constant 5 : index
    %c0_184 = arith.constant 0 : index
    %c0_185 = arith.constant 0 : index
    %297 = vector.load %arg4[%c3_182, %c5_183, %c0_184, %c0_185] : memref<4x7x32x32xbf16, #tpu.memory_space<vmem>>, vector<1x1x32x32xbf16>
    %298 = vector.shape_cast %297 : vector<1x1x32x32xbf16> to vector<32x32xbf16>
    %299 = vector.extract_strided_slice %272 {offsets = [0, 5], sizes = [32, 64], strides = [1, 1]} : vector<32x70xbf16> to vector<32x64xbf16>
    %cst_186 = arith.constant dense<0.000000e+00> : vector<32x64xf32>
    %300 = tpu.matmul %298, %299, %cst_186 {dimension_numbers = #tpu.dot_dimension_numbers<[1], [0], [0], [1], [0, 0, 1, 1], [], []>} : vector<32x32xbf16>, vector<32x64xbf16>, vector<32x64xf32> -> vector<32x64xf32>
    %301 = arith.addf %296, %300 : vector<32x64xf32>
    %c3_187 = arith.constant 3 : index
    %c6_188 = arith.constant 6 : index
    %c0_189 = arith.constant 0 : index
    %c0_190 = arith.constant 0 : index
    %302 = vector.load %arg4[%c3_187, %c6_188, %c0_189, %c0_190] : memref<4x7x32x32xbf16, #tpu.memory_space<vmem>>, vector<1x1x32x32xbf16>
    %303 = vector.shape_cast %302 : vector<1x1x32x32xbf16> to vector<32x32xbf16>
    %304 = vector.extract_strided_slice %272 {offsets = [0, 6], sizes = [32, 64], strides = [1, 1]} : vector<32x70xbf16> to vector<32x64xbf16>
    %cst_191 = arith.constant dense<0.000000e+00> : vector<32x64xf32>
    %305 = tpu.matmul %303, %304, %cst_191 {dimension_numbers = #tpu.dot_dimension_numbers<[1], [0], [0], [1], [0, 0, 1, 1], [], []>} : vector<32x32xbf16>, vector<32x64xbf16>, vector<32x64xf32> -> vector<32x64xf32>
    %306 = arith.addf %301, %305 : vector<32x64xf32>
    %c3_192 = arith.constant 3 : index
    %c0_193 = arith.constant 0 : index
    %c0_194 = arith.constant 0 : index
    %307 = vector.load %arg5[%c3_192, %c0_193, %c0_194] : memref<4x32x1xf32, #tpu.memory_space<vmem>>, vector<1x32x1xf32>
    %308 = vector.shape_cast %307 : vector<1x32x1xf32> to vector<32x1xf32>
    %309 = vector.broadcast %308 : vector<32x1xf32> to vector<32x64xf32>
    %310 = arith.addf %306, %309 : vector<32x64xf32>
    %cst_195 = arith.constant 5.000000e-01 : f32
    %311 = vector.broadcast %cst_195 : f32 to vector<32x64xf32>
    %312 = arith.mulf %311, %310 : vector<32x64xf32>
    %cst_196 = arith.constant 0.707106769 : f32
    %313 = vector.broadcast %cst_196 : f32 to vector<32x64xf32>
    %314 = arith.mulf %310, %313 : vector<32x64xf32>
    %315 = math.erf %314 : vector<32x64xf32>
    %cst_197 = arith.constant 1.000000e+00 : f32
    %316 = vector.broadcast %cst_197 : f32 to vector<32x64xf32>
    %317 = arith.addf %316, %315 : vector<32x64xf32>
    %318 = arith.mulf %312, %317 : vector<32x64xf32>
    %319 = arith.addf %318, %240 : vector<32x64xf32>
    %c0_198 = arith.constant 0 : index
    %c0_199 = arith.constant 0 : index
    %c0_200 = arith.constant 0 : index
    %320 = vector.load %arg6[%c0_198, %c0_199, %c0_200] : memref<1x32x64xf32, #tpu.memory_space<vmem>>, vector<1x32x64xf32>
    %321 = vector.shape_cast %320 : vector<1x32x64xf32> to vector<32x64xf32>
    %322 = vector.shape_cast %319 : vector<32x64xf32> to vector<1x32x64xf32>
    tpu.vector_store %arg6[%c0_198, %c0_199, %c0_200], %322 {strides = array<i32>} : memref<1x32x64xf32, #tpu.memory_space<vmem>>, vector<1x32x64xf32>,
    return
  }
  func.func @transform_0(%arg0: i32) -> (i32, i32, i32) {
    %c0_i32 = arith.constant 0 : i32
    %c0_i32_0 = arith.constant 0 : i32
    %c0_i32_1 = arith.constant 0 : i32
    return %arg0, %c0_i32, %c0_i32_0 : i32, i32, i32
  }
  func.func @transform_1(%arg0: i32) -> (i32, i32, i32) {
    %c0_i32 = arith.constant 0 : i32
    %c0_i32_0 = arith.constant 0 : i32
    %c0_i32_1 = arith.constant 0 : i32
    return %arg0, %c0_i32, %c0_i32_0 : i32, i32, i32
  }
  func.func @transform_2(%arg0: i32) -> (i32, i32, i32, i32) {
    %c0_i32 = arith.constant 0 : i32
    %c0_i32_0 = arith.constant 0 : i32
    %c0_i32_1 = arith.constant 0 : i32
    %c0_i32_2 = arith.constant 0 : i32
    return %c0_i32, %arg0, %c0_i32_0, %c0_i32_1 : i32, i32, i32, i32
  }
  func.func @transform_3(%arg0: i32) -> (i32, i32, i32, i32) {
    %c0_i32 = arith.constant 0 : i32
    %c0_i32_0 = arith.constant 0 : i32
    %c0_i32_1 = arith.constant 0 : i32
    %c0_i32_2 = arith.constant 0 : i32
    %c0_i32_3 = arith.constant 0 : i32
    return %c0_i32, %c0_i32_0, %c0_i32_1, %c0_i32_2 : i32, i32, i32, i32
  }
  func.func @transform_4(%arg0: i32) -> (i32, i32, i32) {
    %c0_i32 = arith.constant 0 : i32
    %c0_i32_0 = arith.constant 0 : i32
    %c0_i32_1 = arith.constant 0 : i32
    %c0_i32_2 = arith.constant 0 : i32
    return %c0_i32, %c0_i32_0, %c0_i32_1 : i32, i32, i32
  }
  func.func @transform_5(%arg0: i32) -> (i32, i32, i32) {
    %c0_i32 = arith.constant 0 : i32
    %c0_i32_0 = arith.constant 0 : i32
    %c0_i32_1 = arith.constant 0 : i32
    return %arg0, %c0_i32, %c0_i32_0 : i32, i32, i32
  }
}

</mosaic_0001>

<bundles_post_ra>
// kernel: tpu_custom_call.1
= control target key start
LH: loop header
LB: loop body
LE: loop exit
PB: predicated region body
PF: predicated region fallthrough
CT: control target
= control target key end

     0   :  { %s5508_s0 = inlined_call_operand.vmem [shape: f32[2,32,64], index: 0, kind: input, shape index: {}]   ;;  %s5509_s1 = inlined_call_operand.vmem [shape: f32[2,32,1], index: 1, kind: input, shape index: {}]   ;;  %s5510_s2 = inlined_call_operand.hbm [shape: f32[4,2,64,64], index: 2, kind: input, shape index: {}]   ;;  %s5511_s3 = inlined_call_operand.hbm [shape: bf16[4,7,32,32], index: 3, kind: input, shape index: {}]   ;;  %s5512_s4 = inlined_call_operand.vmem [shape: f32[4,32,1], index: 4, kind: input, shape index: {}]   ;;  %s5513_s5 = inlined_call_operand.hbm [shape: f32[2,32,64], index: 5, kind: output, shape index: {}]  }
   0x1   :  { %5534 = sst [smem:[#allocation14_spill]] %s5508_s0 }
   0x2   :  { %5535 = sst [smem:[#allocation15_spill]] %s5509_s1 }
   0x3   :  { %5536 = sst [smem:[#allocation16_spill]] %s5510_s2 }
   0x4   :  { %5537 = sst [smem:[#allocation17_spill]] %s5511_s3 }
   0x5   :  { %10 = vsyncpa [#allocation3], 0 }
   0x6   :  { %12 = vsyncpa [#allocation3 + $0x1], 0 }
   0x7   :  { %13 = vsyncpa [#allocation6], 0 }
   0x8   :  { %14 = vsyncpa [#allocation4], 0 }
   0x9   :  { %16 = vsyncpa [#allocation4 + $0x1], 0  ;;  %s4454_s18 = smov 0   ;;  %s4456_s19 = smov 0  }
   0xa   :  { %s4458_s20 = smov 0   ;;  %s4460_s21 = smov 0  }
   0xb LB: > { %s4475_s22 = sadd.s32 4294967295, %s4399_s21   ;;  %s3475_s23 = sadd.s32 4294967294, %s4399_s21   ;;  %s4399_s21 = sphi %s4460_s21, %s5572_s21   ;;  %s4395_s20 = sphi %s4458_s20, %s5571_s20   ;;  %s4391_s19 = sphi %s4456_s19, %s5570_s19   ;;  %s4387_s18 = sphi %s4454_s18, %s5569_s18  }
   0xc   : > { %s4479_s24 = sadd.s32 1, %s4399_s21   ;;  %s81_s25 = sadd.s32 1, %s4395_s20 }
   0xd   : > { %s78_s26 = ssub.s32 %s4399_s21, %s4479_s24  ;;  %p88_p0 = scmp.ne.s32.totalorder %s4395_s20, %s4391_s19 }
   0xe   : > { %p79_p1 = scmp.eq.s32.totalorder %s78_s26, 0  ;;  %p89_p2 = scmp.eq.s32.totalorder %s4399_s21, 0 }
   0xf   : > { %p94_p3 = scmp.ne.s32.totalorder %s4391_s19, %s4387_s18  ;;  %p95_p4 = scmp.eq.s32.totalorder %s4475_s22, 0 }
  0x10   : > { %s4491_s27 = scalar_select %p79_p1, %s4395_s20, %s81_s25  }
  0x11   : > { %p4493_p5 = por %p89_p2, %p88_p0  ;;  %p4499_p6 = por %p95_p4, %p94_p3 }
  0x12   : > { %p160_p7 = scmp.eq.s32.totalorder %s4475_s22, 1  ;;  %p166_p8 = scmp.eq.s32.totalorder %s3475_s23, 1 }
  0x13   : > { %p3476_p9 = scmp.ge.s32.totalorder %s4399_s21, 1  ;;  %p173_p10 = scmp.lt.s32.totalorder %s4399_s21, 3 }
  0x14   : > { %p4506_p11 = por %p160_p7, %p88_p0  ;;  %p4510_p12 = por %p166_p8, %p94_p3 }
  0x15   : > { %p4514_p13 = pnand %p3476_p9, %p173_p10  ;;  %s5543_s3 = sld [smem:[#allocation17_spill]] }
  0x16   : > { %s4401_s11 = smov [#allocation5]   ;;  %s4402_s13 = smov 64  }
  0x17   : > { %p3904_p1 = pneg %p4514_p13  ;;  %s186_s12 = sshll.u32 %s4401_s11, 4  ;;  %s187_s12 = int_to_ptr.vmem [resolvable:$true] %s186_s12 }
  0x18   : > { %s4403_s14 = smov 4   ;;  %p3478_p2 = scmp.ge.s32.totalorder %s4399_s21, 2 }
  0x19   : > { %p3905_p0 = pnand %p3904_p1, %p95_p4 }
  0x1a   : > { %199 = sbr.rel (%p3478_p2) target bundleno = 45 (0x2d), region = 24 }
  0x1b   : > { %s184_s10 = sshll.u32 %s5543_s3, 4  ;;  %s185_s10 = int_to_ptr.hbm [resolvable:$true] %s184_s10 }
  0x1c   : > { %3907 = dma.hbm_to_vmem [thread:$0]  (!%p3905_p0), %s185_s10, 7168, %s187_s12, [#allocation6], %s4402_s13, %s4402_s13, %s4403_s14  }
  0x1f   : > { %s219_s15 = sand.u32 1, %s4395_s20   ;;  %s3829_s16 = sshll.u32 %s4399_s21, 6 }
  0x20   : > { %s3479_s17 = sshll.u32 %s219_s15, 8  ;;  %s5544_s2 = sld [smem:[#allocation16_spill]] }
  0x21   : > { %s3891_s8 = scalar_select %p4493_p5, [#allocation0], [#allocation10] }
  0x22   : > { %s223_s10 = scalar_lea.vmem [#allocation2], %s3479_s17  ;;  %s4404_s13 = smov 2048  }
  0x23   : > { %s243_s11 = sshll.u32 %s223_s10, 4  ;;  %s233_s12 = sld [smem:[%s3891_s8]]   ;;  %s244_s11 = int_to_ptr.vmem [resolvable:$true] %s243_s11 }
  0x24   : > { %3892 = sst [smem:[#allocation9]] (%p4493_p5), %s4404_s13  ;;  %s4405_s14 = smov 1024  }
  0x25   : > { %3893 = sst [smem:[#allocation9 + $0x1]] (%p4493_p5), %s4405_s14  ;;  %s4406_s23 = smov 8  }
  0x26   : > { %s228_s26 = scalar_lea.hbm %s5544_s2, %s3829_s16  ;;  %3894 = sst [smem:[#allocation9 + $0x2]] (%p4493_p5), %s4406_s23 }
  0x27   : > { %s241_s9 = sshll.u32 %s228_s26, 4  ;;  %s4407_s16 = smov 128   ;;  %s242_s9 = int_to_ptr.hbm [resolvable:$true] %s241_s9 }
  0x28   : > { %3895 = sst [smem:[#allocation9 + $0x3]] (%p4493_p5), %s4407_s16  ;;  %s220_s26 = scalar_lea.sflag [#allocation3], %s219_s15 }
  0x29   : > { %s3482_s25 = sshll.u32 %s233_s12, 26  ;;  %3896 = sst [smem:[#allocation9 + $0x4]] (%p4493_p5), %s4407_s16 }
  0x2a   : > { %s3483_s17 = sadd.s32 134217728, %s3482_s25  ;;  %3897 = sst [smem:[#allocation9 + $0x5]] (%p4493_p5), %s4406_s23 }
  0x2b   : > { %s4408_s8 = smov [#allocation8]  }
  0x2c   : > { %3898 = dma.general (%p4493_p5), %s242_s9, 4096, %s244_s11, %s220_s26, %s4408_s8, [#allocation9], %s3483_s17, 0  }
  0x2d PF: > { %268 = sbr.rel (%p4514_p13) target bundleno = 2493 (0x9bd), region = 40  ;;  %s4552_s10 = sand.u32 (!%p4514_p13), 1, %s4391_s19  }
  0x2e   : > { %s3485_s12 = sshll.u32 (!%p4514_p13), %s4552_s10, 8  ;;  %s271_s13 = scalar_lea.sflag (!%p4514_p13), [#allocation3], %s4552_s10 }
  0x2f   : > { %s4556_s14 = scalar_lea.vmem (!%p4514_p13), [#allocation2], %s3485_s12 }
  0x32   : > { %4374 = dma.done.wait (%p4499_p6), %s271_s13, 4096  }
  0x33   : > { %4376 = vsyncadd (%p4499_p6), %s271_s13, 4294963200 }
  0x34   : > { %4378 = dma.done.wait (%p95_p4), [#allocation6], 7168  }
  0x35   : > { %4380 = vsyncadd (%p95_p4), [#allocation6], 4294960128  ;;  %p317_p3 = scmp.lt.s32.totalorder %s4475_s22, 1  ;;  %v4409_v0 = vmov 0   ;;  %s5545_s0 = sld [smem:[#allocation14_spill]]  ;;  %vm336_vm0 = vcmask 523264  }
  0x36   : > { %3971 = vset.pattern.permute.xlu1 %v4409_v0  ;;  %3970 = vset.pattern.permute.xlu0 %v4409_v0  ;;  %s5546_s1 = sld [smem:[#allocation15_spill]]  ;;  %v4410_v2 = vmov 32.0   ;;  %s5520_s25 = smov 3   ;;  %vm523_vm5 = vcmask 7168   ;;  %vm528_vm6 = vcmask 15360   ;;  %vm533_vm7 = vcmask 23552  }
  0x37   : > { %s318_s28 = scalar_select %p317_p3, %s4475_s22, 1  ;;  %4042 = vset.pattern.permute.xlu2 %v4409_v0  ;;  %4253 = vrcp.f32 %v4410_v2  ;;  %vm538_vm8 = vcmask 547840   ;;  %vm543_vm9 = vcmask 556032   ;;  %vm548_vm10 = vcmask 564224  }
  0x38   : > { %s5528_s17 = smov 1   ;;  %s5526_s26 = smov 125   ;;  %vm592_vm11 = vcmask 261120  }
  0x39   : > { %s3830_s7 = sshll.u32 %s318_s28, 5  ;;  %s5524_s8 = smov 127  }
  0x3a   : > { %s5516_s12 = smov 9   ;;  %s5522_s13 = smov 5  }
  0x3b   : > { %s4571_s29 = scalar_lea.vmem %s5545_s0, %s3830_s7  ;;  %s5518_s28 = smov 7  }
  0x3c   : > { %s326_s16 = scalar_lea.vmem %s5546_s1, %s3830_s7  ;;  %v328_v3 = vld [vmem:[%s4571_s29] sm:$0xff]  ;;  %v329_v4 = vld [vmem:[%s4571_s29 + $0x8] sm:$0xff]  ;;  %v330_v5 = vld [vmem:[%s4571_s29 + $0x10] sm:$0xff]  ;;  %s5514_s7 = smov 126  }
  0x3d   : > { %v334_v1 = vld [vmem:[%s326_s16 + $0x10] sm:$0xff]  ;;  %v331_v6 = vld [vmem:[%s4571_s29 + $0x18] sm:$0xff]  ;;  %v337_v7 = vsel %vm336_vm0, %v328_v3, 0.0  ;;  %v338_v8 = vsel %vm336_vm0, %v329_v4, 0.0  ;;  %v332_v9 = vld [vmem:[%s326_s16] sm:$0xff]  ;;  %v340_v11 = vsel %vm336_vm0, %v330_v5, 0.0  ;;  %v4254_v14 = vpop.eup %4253 }
  0x3e   : > { %407 = vperm.xlu0 %3970, %v334_v1   ;;  %v339_v10 = vadd.f32 %v338_v8, %v337_v7  ;;  %397 = vperm.xlu1 %3971, %v332_v9   ;;  %v342_v12 = vsel %vm336_vm0, %v331_v6, 0.0  ;;  %v335_v16 = vld [vmem:[%s326_s16 + $0x18] sm:$0xff]  ;;  %v333_v17 = vld [vmem:[%s326_s16 + $0x8] sm:$0xff]  ;;  %v351_v19 = vmul.f32 32.0, %v4254_v14  ;;  %vm355_vm1 = vweird.f32 %v4254_v14  ;;  %v421_v1 = vld [vmem:[%s4556_s14 + $0x10] sm:$0xff]  ;;  %s4419_s15 = smov 124  }
  0x3f   : > { %v425_v9 = vld [vmem:[%s4556_s14 + $0x30] sm:$0xff]  ;;  %s5530_s9 = smov 122   ;;  %s5532_s11 = smov 123  }
  0x40   : > { %v341_v13 = vadd.f32 %v340_v11, %v339_v10  ;;  %v352_v22 = vsub.f32 1.0, %v351_v19  ;;  %v426_v11 = vld [vmem:[%s4556_s14 + $0x38] sm:$0xff]  ;;  %s5554_s23 = smov 126   ;;  %s5568_s0 = smov 123  }
  0x41   : > { %s4349_s2 = scalar_lea.hbm %s5513_s5, 64 }
  0x42   : > { %v343_v15 = vadd.f32 %v342_v12, %v341_v13  ;;  %v353_v24 = vmul.f32 %v4254_v14, %v352_v22  ;;  %v419_v12 = vld [vmem:[%s4556_s14] sm:$0xff]  ;;  %v424_v22 = vld [vmem:[%s4556_s14 + $0x28] sm:$0xff] }
  0x44   : > { %v344_v18 = vrot.slane %v343_v15, 4  ;;  %v354_v26 = vadd.f32 %v4254_v14, %v353_v24 }
  0x46   : > { %412 = vperm.xlu0 %3970, %v335_v16   ;;  %v345_v20 = vadd.f32 %v344_v18, %v343_v15  ;;  %402 = vperm.xlu1 %3971, %v333_v17   ;;  %v4584_v28 = vsel %vm355_vm1, %v4254_v14, %v354_v26  ;;  %v420_v15 = vld [vmem:[%s4556_s14 + $0x8] sm:$0xff] }
  0x48   : > { %v346_v21 = vrot.slane %v345_v20, 2 }
  0x4a   : > { %v347_v23 = vadd.f32 %v346_v21, %v345_v20  ;;  %v423_v21 = vld [vmem:[%s4556_s14 + $0x20] sm:$0xff] }
  0x4c   : > { %v348_v25 = vrot.slane %v347_v23, 1 }
  0x4e   : > { %v349_v27 = vadd.f32 %v348_v25, %v347_v23 }
  0x50   : > { %v357_v29 = vmul.f32 %v4584_v28, %v349_v27 }
  0x52   : > { %v358_v30 = vsub.f32 %v328_v3, %v357_v29  ;;  %v359_v31 = vsub.f32 %v329_v4, %v357_v29  ;;  %v361_v34 = vsub.f32 %v331_v6, %v357_v29  ;;  %v360_v37 = vsub.f32 %v330_v5, %v357_v29  ;;  %v422_v4 = vld [vmem:[%s4556_s14 + $0x18] sm:$0xff] }
  0x54   : > { %v362_v32 = vmul.f32 %v358_v30, %v358_v30  ;;  %v363_v33 = vmul.f32 %v359_v31, %v359_v31  ;;  %v365_v38 = vmul.f32 %v361_v34, %v361_v34  ;;  %v364_v39 = vmul.f32 %v360_v37, %v360_v37 }
  0x56   : > { %v366_v35 = vsel %vm336_vm0, %v362_v32, 0.0  ;;  %v367_v36 = vsel %vm336_vm0, %v363_v33, 0.0  ;;  %v369_v41 = vsel %vm336_vm0, %v364_v39, 0.0  ;;  %v371_v42 = vsel %vm336_vm0, %v365_v38, 0.0 }
  0x57   : > { %v368_v40 = vadd.f32 %v367_v36, %v366_v35 }
  0x59   : > { %v370_v43 = vadd.f32 %v369_v41, %v368_v40 }
  0x5b   : > { %v372_v44 = vadd.f32 %v371_v42, %v370_v43 }
  0x5d   : > { %v373_v45 = vrot.slane %v372_v44, 4 }
  0x5f   : > { %v374_v46 = vadd.f32 %v373_v45, %v372_v44 }
  0x61   : > { %v375_v47 = vrot.slane %v374_v46, 2 }
  0x63   : > { %v376_v48 = vadd.f32 %v375_v47, %v374_v46 }
  0x65   : > { %v377_v49 = vrot.slane %v376_v48, 1 }
  0x67   : > { %v378_v50 = vadd.f32 %v377_v49, %v376_v48 }
  0x69   : > { %v379_v51 = vmul.f32 0.032258064, %v378_v50 }
  0x6b   : > { %v380_v52 = vadd.f32 0.0001, %v379_v51 }
  0x6d   : > { %4255 = vrsqrt.f32 %v380_v52  ;;  %vm387_vm2 = vweird.f32 %v380_v52 }
  0x73   : > { %v4256_v53 = vpop.eup %4255 }
  0x74   : > { %v382_v54 = vmul.f32 %v4256_v53, %v380_v52  ;;  %vm388_vm3 = vweird.f32 %v4256_v53 }
  0x75   : > { %vm389_vm4 = vmor %vm387_vm2, %vm388_vm3 }
  0x76   : > { %v383_v55 = vmul.f32 %v4256_v53, %v382_v54 }
  0x78   : > { %v384_v56 = vmul.f32 0.5, %v383_v55 }
  0x7a   : > { %v385_v57 = vsub.f32 1.5, %v384_v56 }
  0x7c   : > { %v386_v58 = vmul.f32 %v4256_v53, %v385_v57 }
  0x7e   : > { %v390_v59 = vsel %vm389_vm4, %v4256_v53, %v386_v58 }
  0x7f   : > { %v393_v61 = vmul.f32 %v390_v59, %v360_v37  ;;  %v394_v0 = vmul.f32 %v390_v59, %v361_v34  ;;  %v391_v2 = vmul.f32 %v390_v59, %v358_v30  ;;  %v392_v3 = vmul.f32 %v390_v59, %v359_v31 }
  0xb0   : > { %v4591_v60 = vpop.permute.xlu0 %407  ;;  %v4593_v62 = vpop.permute.xlu1 %397 }
  0xb1   : > { %v417_v63 = vadd.f32 %v4591_v60, %v393_v61  ;;  %v415_v10 = vadd.f32 %v4593_v62, %v391_v2 }
  0xb3   : > { %v429_v6 = vmul.f32 %v421_v1, %v417_v63  ;;  %v427_v18 = vmul.f32 %v419_v12, %v415_v10 }
  0xb5   : > { %v433_v16 = vadd.f32 %v429_v6, %v425_v9  ;;  %v431_v23 = vadd.f32 %v427_v18, %v423_v21 }
  0xb8   : > { %v4598_v5 = vpop.permute.xlu0 %412  ;;  %v4601_v8 = vpop.permute.xlu1 %402 }
  0xb9   : > { %v418_v7 = vadd.f32 %v4598_v5, %v394_v0  ;;  %v416_v14 = vadd.f32 %v4601_v8, %v392_v3 }
  0xbb   : > { %v430_v13 = vmul.f32 %v422_v4, %v418_v7  ;;  %v428_v19 = vmul.f32 %v420_v15, %v416_v14 }
  0xbd   : > { %v434_v17 = vadd.f32 %v430_v13, %v426_v11  ;;  %v432_v24 = vadd.f32 %v428_v19, %v424_v22 }
  0xbf   : > { %v3987_v20 = vpack.i.bf16 %v434_v17, %v433_v16  ;;  %v4002_v25 = vpack.i.bf16 %v432_v24, %v431_v23 }
  0xc1   : > { %3988 = vrot.lane.b32.xlu1 %v3987_v20, %s5520_s25  ;;  %3983 = vrot.lane.b32.xlu0 %v3987_v20, %s5528_s17 }
  0xc2   : > { %3973 = vrot.lane.b32.xlu2 %v3987_v20, %s5526_s26 }
  0xc9   : > { %4003 = vrot.lane.b32.xlu1 %v4002_v25, %s5524_s8  ;;  %3998 = vrot.lane.b32.xlu0 %v4002_v25, %s5526_s26 }
  0xca   : > { %3978 = vrot.lane.b32.xlu2 %v3987_v20, %s5524_s8 }
  0xd1   : > { %4018 = vrot.lane.b32.xlu1 %v3987_v20, %s5516_s12  ;;  %4013 = vrot.lane.b32.xlu0 %v4002_v25, %s5528_s17 }
  0xd2   : > { %3993 = vrot.lane.b32.xlu2 %v3987_v20, %s5522_s13 }
  0xd9   : > { %4033 = vrot.lane.b32.xlu1 %v4002_v25, %s5518_s28  ;;  %4028 = vrot.lane.b32.xlu0 %v4002_v25, %s5522_s13 }
  0xda   : > { %4008 = vrot.lane.b32.xlu2 %v3987_v20, %s5518_s28  ;;  %s5552_s28 = smov 7  }
  0xe2   : > { %4023 = vrot.lane.b32.xlu2 %v4002_v25, %s5520_s25 }
  0xea   : > { %4038 = vrot.lane.b32.xlu2 %v4002_v25, %s5516_s12 }
 0x11c   : > { %v3974_v26 = vpop.permute.xlu2 %3973 }
 0x11d   : > { %v3976_v37 = vunpack.i.h.bf16 %v3974_v26  ;;  %v3975_v38 = vunpack.i.l.bf16 %v3974_v26 }
 0x124   : > { %v3979_v27 = vpop.permute.xlu2 %3978 }
 0x125   : > { %v3981_v32 = vunpack.i.h.bf16 %v3979_v27  ;;  %v3980_v33 = vunpack.i.l.bf16 %v3979_v27 }
 0x127   : > { %v526_v39 = vsel %vm523_vm5, %v3975_v38, %v3980_v33  ;;  %v527_v40 = vsel %vm523_vm5, %v3976_v37, %v3981_v32 }
 0x12c   : > { %v3994_v29 = vpop.permute.xlu2 %3993 }
 0x12d   : > { %v3996_v49 = vunpack.i.h.bf16 %v3994_v29  ;;  %v3995_v50 = vunpack.i.l.bf16 %v3994_v29 }
 0x133   : > { %v3989_v30 = vpop.permute.xlu1 %3988  ;;  %v3984_v31 = vpop.permute.xlu0 %3983 }
 0x134   : > { %v4009_v34 = vpop.permute.xlu2 %4008  ;;  %v3986_v35 = vunpack.i.h.bf16 %v3984_v31  ;;  %v3985_v36 = vunpack.i.l.bf16 %v3984_v31  ;;  %v3991_v41 = vunpack.i.h.bf16 %v3989_v30  ;;  %v3990_v42 = vunpack.i.l.bf16 %v3989_v30 }
 0x135   : > { %v4011_v54 = vunpack.i.h.bf16 %v4009_v34  ;;  %v4010_v55 = vunpack.i.l.bf16 %v4009_v34 }
 0x136   : > { %v531_v43 = vsel %vm528_vm6, %v526_v39, %v3985_v36  ;;  %v532_v44 = vsel %vm528_vm6, %v527_v40, %v3986_v35 }
 0x137   : > { %v536_v47 = vsel %vm533_vm7, %v531_v43, %v3990_v42  ;;  %v537_v48 = vsel %vm533_vm7, %v532_v44, %v3991_v41  ;;  %v906_v44 = vld [vmem:[%s5512_s4 + $0x8] sm:$0xff] }
 0x138   : > { %v541_v52 = vsel %vm538_vm8, %v536_v47, %v3995_v50  ;;  %v542_v53 = vsel %vm538_vm8, %v537_v48, %v3996_v49  ;;  %v3832_v47 = vld [vmem:[#allocation5] sm:$0xff]  ;;  %v3833_v49 = vld [vmem:[#allocation5 + $0x8] sm:$0xff] }
 0x139   : > { %v546_v58 = vsel %vm543_vm9, %v541_v52, %v4010_v55  ;;  %v547_v59 = vsel %vm543_vm9, %v542_v53, %v4011_v54  ;;  %v3836_v54 = vld [vmem:[#allocation5 + $0x20] sm:$0xff] }
 0x13b   : > { %v4004_v45 = vpop.permute.xlu1 %4003  ;;  %v3999_v46 = vpop.permute.xlu0 %3998 }
 0x13c   : > { %v4024_v51 = vpop.permute.xlu2 %4023  ;;  %v4006_v0 = vunpack.i.h.bf16 %v4004_v45  ;;  %v4005_v1 = vunpack.i.l.bf16 %v4004_v45  ;;  %v4001_v2 = vunpack.i.h.bf16 %v3999_v46  ;;  %v4000_v3 = vunpack.i.l.bf16 %v3999_v46  ;;  %v905_v45 = vld [vmem:[%s5512_s4] sm:$0xff]  ;;  %v908_v46 = vld [vmem:[%s5512_s4 + $0x18] sm:$0xff] }
 0x13d   : > { %v4026_v19 = vunpack.i.h.bf16 %v4024_v51  ;;  %v4025_v20 = vunpack.i.l.bf16 %v4024_v51 }
 0x13e   : > { %v525_v12 = vsel %vm523_vm5, %v4001_v2, %v4006_v0  ;;  %v524_v13 = vsel %vm523_vm5, %v4000_v3, %v4005_v1  ;;  %v3837_v1 = vld [vmem:[#allocation5 + $0x28] sm:$0xff] }
 0x143   : > { %v4019_v56 = vpop.permute.xlu1 %4018  ;;  %v4014_v57 = vpop.permute.xlu0 %4013 }
 0x144   : > { %v4021_v61 = vunpack.i.h.bf16 %v4019_v56  ;;  %v4020_v63 = vunpack.i.l.bf16 %v4019_v56  ;;  %v4016_v7 = vunpack.i.h.bf16 %v4014_v57  ;;  %v4015_v9 = vunpack.i.l.bf16 %v4014_v57  ;;  %v4039_v16 = vpop.permute.xlu2 %4038 }
 0x145   : > { %v4041_v31 = vunpack.i.h.bf16 %v4039_v16  ;;  %v4040_v32 = vunpack.i.l.bf16 %v4039_v16 }
 0x146   : > { %v552_v4 = vsel %vm548_vm10, %v547_v59, %v4021_v61  ;;  %v551_v6 = vsel %vm548_vm10, %v546_v58, %v4020_v63  ;;  %v529_v17 = vsel %vm528_vm6, %v524_v13, %v4015_v9  ;;  %v530_v18 = vsel %vm528_vm6, %v525_v12, %v4016_v7  ;;  %v3834_v58 = vld [vmem:[#allocation5 + $0x10] sm:$0xff]  ;;  %v3839_v7 = vld [vmem:[#allocation5 + $0x38] sm:$0xff]  ;;  %v3845_v12 = vld [vmem:[#allocation5 + $0x68] sm:$0xff] }
 0x147   : > { %v556_v10 = vpack.c.bf16 %v552_v4, %v552_v4  ;;  %v555_v11 = vpack.c.bf16 %v551_v6, %v551_v6  ;;  %v534_v29 = vsel %vm533_vm7, %v529_v17, %v4025_v20  ;;  %v535_v30 = vsel %vm533_vm7, %v530_v18, %v4026_v19  ;;  %v3842_v59 = vld [vmem:[#allocation5 + $0x50] sm:$0xff]  ;;  %v3835_v4 = vld [vmem:[#allocation5 + $0x18] sm:$0xff]  ;;  %v3841_v13 = vld [vmem:[#allocation5 + $0x48] sm:$0xff] }
 0x148   : > { %v3838_v61 = vld [vmem:[#allocation5 + $0x30] sm:$0xff]  ;;  %v3843_v6 = vld [vmem:[#allocation5 + $0x58] sm:$0xff] }
 0x149   : > { %v583_v14 = vunpack.c.l.b16 %v556_v10  ;;  %v582_v15 = vunpack.c.l.b16 %v555_v11  ;;  %v907_v9 = vld [vmem:[%s5512_s4 + $0x10] sm:$0xff]  ;;  %v3844_v10 = vld [vmem:[#allocation5 + $0x60] sm:$0xff] }
 0x14a   : > { %v3840_v11 = vld [vmem:[#allocation5 + $0x40] sm:$0xff] }
 0x14b   : > { %v585_v21 = vpack.c.b16 %v583_v14, %v582_v15  ;;  %v4034_v22 = vpop.permute.xlu1 %4033  ;;  %v4029_v23 = vpop.permute.xlu0 %4028 }
 0x14c   : > { %v4036_v24 = vunpack.i.h.bf16 %v4034_v22  ;;  %v4035_v25 = vunpack.i.l.bf16 %v4034_v22  ;;  %v4031_v26 = vunpack.i.h.bf16 %v4029_v23  ;;  %v4030_v27 = vunpack.i.l.bf16 %v4029_v23 }
 0x14d   : > { %588 = vrot.lane.b32.xlu1 %v585_v21, %s5524_s8  ;;  %642 = vmatpush.bf16.msra.mxu1 %v585_v21 }
 0x14e   : > { %v539_v33 = vsel %vm538_vm8, %v534_v29, %v4030_v27  ;;  %v540_v34 = vsel %vm538_vm8, %v535_v30, %v4031_v26  ;;  %672 = vrot.lane.b32.xlu0 %v585_v21, %s5514_s7 }
 0x14f   : > { %v544_v35 = vsel %vm543_vm9, %v539_v33, %v4035_v25  ;;  %v545_v36 = vsel %vm543_vm9, %v540_v34, %v4036_v24 }
 0x150   : > { %v549_v37 = vsel %vm548_vm10, %v544_v35, %v4040_v32  ;;  %v550_v38 = vsel %vm548_vm10, %v545_v36, %v4041_v31 }
 0x151   : > { %v553_v39 = vpack.c.bf16 %v549_v37, %v549_v37  ;;  %v554_v40 = vpack.c.bf16 %v550_v38, %v550_v38 }
 0x153   : > { %v580_v41 = vunpack.c.l.b16 %v553_v39  ;;  %v581_v42 = vunpack.c.l.b16 %v554_v40 }
 0x155   : > { %v584_v43 = vpack.c.b16 %v581_v42, %v580_v41  ;;  %722 = vrot.lane.b32.xlu1 %v585_v21, %s5526_s26 }
 0x157   : > { %586 = vrot.lane.b32.xlu0 %v584_v43, %s5524_s8  ;;  %670 = vrot.lane.b32.xlu2 %v584_v43, %s5514_s7  ;;  %s5553_s7 = smov 9  }
 0x158   : > { %643 = vmatpush.bf16.msra.mxu1 %v584_v43 }
 0x15b   : > { %3510 = vmatmul.msk.bf16.vlgmr.msra.gmra.mxu1 %vm592_vm11, %v3832_v47 }
 0x15d   : > { %772 = vrot.lane.b32.xlu1 %v585_v21, %s4419_s15 }
 0x15f   : > { %872 = vrot.lane.b32.xlu0 %v585_v21, %s5530_s9  ;;  %720 = vrot.lane.b32.xlu2 %v584_v43, %s5526_s26 }
 0x165   : > { %770 = vrot.lane.b32.xlu1 %v584_v43, %s4419_s15 }
 0x167   : > { %870 = vrot.lane.b32.xlu0 %v584_v43, %s5530_s9  ;;  %822 = vrot.lane.b32.xlu2 %v585_v21, %s5532_s11 }
 0x16b   : > { %3511 = vmatmul.msk.bf16.gmra.mxu1 %vm592_vm11, %v3833_v49 }
 0x16d   : > { %916 = vperm.xlu1 %3971, %v906_v44  }
 0x16f   : > { %911 = vperm.xlu0 %3970, %v905_v45   ;;  %820 = vrot.lane.b32.xlu2 %v584_v43, %s5532_s11 }
 0x177   : > { %926 = vperm.xlu0 %3970, %v908_v46   ;;  %921 = vperm.xlu2 %4042, %v907_v9  }
 0x1b1   : > { %v671_v48 = vpop.permute.xlu2 %670 }
 0x1b9   : > { %v721_v50 = vpop.permute.xlu2 %720 }
 0x1bf   : > { %v589_v51 = vpop.permute.xlu1 %588 }
 0x1c0   : > { %v673_v52 = vpop.permute.xlu0 %672  ;;  %605 = vmatpush.bf16.msra.mxu0 %v589_v51 }
 0x1c1   : > { %688 = vmatpush.bf16.msra.mxu2 %v673_v52  ;;  %v823_v53 = vpop.permute.xlu2 %822 }
 0x1c2   : > { %838 = vmatpush.bf16.msrb.mxu1 %v823_v53 }
 0x1c5   : > { %689 = vmatpush.bf16.msra.mxu2 %v671_v48 }
 0x1c7   : > { %v723_v55 = vpop.permute.xlu1 %722 }
 0x1c8   : > { %3520 = vmatmul.msk.bf16.vlgmr.msra.gmra.mxu2 %vm592_vm11, %v3836_v54  ;;  %738 = vmatpush.bf16.msra.mxu3 %v723_v55 }
 0x1c9   : > { %v587_v56 = vpop.permute.xlu0 %586  ;;  %v821_v57 = vpop.permute.xlu2 %820 }
 0x1ca   : > { %606 = vmatpush.bf16.msra.mxu0 %v587_v56  ;;  %839 = vmatpush.bf16.msrb.mxu1 %v821_v57 }
 0x1cc   : > { %739 = vmatpush.bf16.msra.mxu3 %v721_v50 }
 0x1cd   : > { %3500 = vmatmul.msk.bf16.vlgmr.msra.gmra.mxu0 %vm592_vm11, %v3834_v58  ;;  %3550 = vmatmul.msk.bf16.vlgmr.msrb.gmra.mxu1 %vm592_vm11, %v3842_v59 }
 0x1cf   : > { %v773_v63 = vpop.permute.xlu1 %772  ;;  %3530 = vmatmul.msk.bf16.vlgmr.msra.gmra.mxu3 %vm592_vm11, %v3838_v61 }
 0x1d0   : > { %788 = vmatpush.bf16.msrb.mxu0 %v773_v63 }
 0x1d1   : > { %v873_v0 = vpop.permute.xlu0 %872 }
 0x1d2   : > { %888 = vmatpush.bf16.msrb.mxu2 %v873_v0 }
 0x1d7   : > { %v771_v2 = vpop.permute.xlu1 %770 }
 0x1d8   : > { %3521 = vmatmul.msk.bf16.gmra.mxu2 %vm592_vm11, %v3837_v1  ;;  %789 = vmatpush.bf16.msrb.mxu0 %v771_v2  ;;  %v645_v14 = vpop.f32.mrf.mxu1 }
 0x1d9   : > { %v871_v3 = vpop.permute.xlu0 %870 }
 0x1da   : > { %889 = vmatpush.bf16.msrb.mxu2 %v871_v3 }
 0x1dd   : > { %3501 = vmatmul.msk.bf16.gmra.mxu0 %vm592_vm11, %v3835_v4  ;;  %3551 = vmatmul.msk.bf16.gmra.mxu1 %vm592_vm11, %v3843_v6 }
 0x1df   : > { %3531 = vmatmul.msk.bf16.gmra.mxu3 %vm592_vm11, %v3839_v7  ;;  %v917_v55 = vpop.permute.xlu1 %916 }
 0x1e0   : > { %v647_v15 = vpop.f32.mrf.mxu1 }
 0x1e1   : > { %v912_v40 = vpop.permute.xlu0 %911 }
 0x1e8   : > { %3560 = vmatmul.msk.bf16.vlgmr.msrb.gmra.mxu2 %vm592_vm11, %v3844_v10  ;;  %v650_v19 = vpop.f32.mrf.mxu1 }
 0x1ed   : > { %3540 = vmatmul.msk.bf16.vlgmr.msrb.gmra.mxu0 %vm592_vm11, %v3840_v11  ;;  %v922_v11 = vpop.permute.xlu2 %921 }
 0x1f0   : > { %v652_v23 = vpop.f32.mrf.mxu1 }
 0x1f8   : > { %3561 = vmatmul.msk.bf16.gmra.mxu2 %vm592_vm11, %v3845_v12 }
 0x1fd   : > { %3541 = vmatmul.msk.bf16.gmra.mxu0 %vm592_vm11, %v3841_v13 }
 0x24a   : > { %v608_v16 = vpop.f32.mrf.mxu0  ;;  %v841_v29 = vpop.f32.mrf.mxu1 }
 0x24b   : > { %v691_v17 = vpop.f32.mrf.mxu2  ;;  %v646_v26 = vadd.f32 %v645_v14, %v608_v16 }
 0x24d   : > { %v701_v30 = vadd.f32 %v691_v17, %v646_v26 }
 0x252   : > { %v610_v18 = vpop.f32.mrf.mxu0  ;;  %v741_v24 = vpop.f32.mrf.mxu3 }
 0x253   : > { %v693_v20 = vpop.f32.mrf.mxu2  ;;  %v751_v31 = vadd.f32 %v741_v24, %v701_v30  ;;  %v648_v34 = vadd.f32 %v647_v15, %v610_v18  ;;  %v843_v41 = vpop.f32.mrf.mxu1 }
 0x255   : > { %v702_v38 = vadd.f32 %v693_v20, %v648_v34 }
 0x25a   : > { %v613_v21 = vpop.f32.mrf.mxu0  ;;  %v743_v32 = vpop.f32.mrf.mxu3 }
 0x25b   : > { %v696_v22 = vpop.f32.mrf.mxu2  ;;  %v752_v42 = vadd.f32 %v743_v32, %v702_v38  ;;  %v651_v45 = vadd.f32 %v650_v19, %v613_v21  ;;  %v846_v59 = vpop.f32.mrf.mxu1 }
 0x25c   : > { %v927_v38 = vpop.permute.xlu0 %926 }
 0x25d   : > { %v703_v52 = vadd.f32 %v696_v22, %v651_v45 }
 0x262   : > { %v615_v25 = vpop.f32.mrf.mxu0  ;;  %v746_v49 = vpop.f32.mrf.mxu3 }
 0x263   : > { %v698_v27 = vpop.f32.mrf.mxu2  ;;  %v753_v56 = vadd.f32 %v746_v49, %v703_v52  ;;  %v653_v63 = vadd.f32 %v652_v23, %v615_v25 }
 0x265   : > { %v704_v12 = vadd.f32 %v698_v27, %v653_v63  ;;  %v848_v27 = vpop.f32.mrf.mxu1 }
 0x26a   : > { %v791_v33 = vpop.f32.mrf.mxu0  ;;  %v748_v7 = vpop.f32.mrf.mxu3 }
 0x26b   : > { %v801_v35 = vadd.f32 %v791_v33, %v751_v31  ;;  %v891_v36 = vpop.f32.mrf.mxu2  ;;  %v754_v16 = vadd.f32 %v748_v7, %v704_v12 }
 0x26d   : > { %v851_v37 = vadd.f32 %v841_v29, %v801_v35 }
 0x26f   : > { %v901_v39 = vadd.f32 %v891_v36, %v851_v37 }
 0x271   : > { %v4687_v43 = vadd.f32 %v912_v40, %v901_v39 }
 0x272   : > { %v793_v44 = vpop.f32.mrf.mxu0 }
 0x273   : > { %v4690_v46 = vmul.f32 0.70710677, %v4687_v43  ;;  %v802_v47 = vadd.f32 %v793_v44, %v752_v42  ;;  %v893_v48 = vpop.f32.mrf.mxu2 }
 0x275   : > { %v941_v50 = vmul.f32 %v4690_v46, %v4690_v46  ;;  %v852_v51 = vadd.f32 %v843_v41, %v802_v47 }
 0x277   : > { %v4694_v53 = vmin.f32 %v941_v50, 16.0  ;;  %v902_v54 = vadd.f32 %v893_v48, %v852_v51 }
 0x279   : > { %v954_v57 = vmul.f32 3.8918573e-05, %v4694_v53  ;;  %v4697_v58 = vadd.f32 %v917_v55, %v902_v54  ;;  %v943_v9 = vmul.f32 2.1237322e-06, %v4694_v53 }
 0x27a   : > { %v796_v61 = vpop.f32.mrf.mxu0 }
 0x27b   : > { %v955_v0 = vadd.f32 0.001143296, %v954_v57  ;;  %v803_v1 = vadd.f32 %v796_v61, %v753_v56  ;;  %v4700_v2 = vmul.f32 0.70710677, %v4697_v58  ;;  %v896_v3 = vpop.f32.mrf.mxu2  ;;  %v944_v19 = vadd.f32 0.00028619796, %v943_v9 }
 0x27d   : > { %v956_v4 = vmul.f32 %v955_v0, %v4694_v53  ;;  %v853_v6 = vadd.f32 %v846_v59, %v803_v1  ;;  %v981_v10 = vmul.f32 %v4700_v2, %v4700_v2  ;;  %v945_v32 = vmul.f32 %v944_v19, %v4694_v53 }
 0x27f   : > { %v957_v13 = vadd.f32 0.014752088, %v956_v4  ;;  %v903_v14 = vadd.f32 %v896_v3, %v853_v6  ;;  %v4706_v15 = vmin.f32 %v981_v10, 16.0  ;;  %v946_v45 = vadd.f32 0.0036580483, %v945_v32 }
 0x281   : > { %v958_v17 = vmul.f32 %v957_v13, %v4694_v53  ;;  %v4709_v18 = vadd.f32 %v922_v11, %v903_v14  ;;  %v983_v20 = vmul.f32 2.1237322e-06, %v4706_v15  ;;  %v994_v21 = vmul.f32 3.8918573e-05, %v4706_v15 }
 0x282   : > { %v798_v22 = vpop.f32.mrf.mxu0  ;;  %v947_v56 = vmul.f32 %v946_v45, %v4694_v53 }
 0x283   : > { %v959_v23 = vadd.f32 0.112945676, %v958_v17  ;;  %v804_v24 = vadd.f32 %v798_v22, %v754_v16  ;;  %v984_v25 = vadd.f32 0.00028619796, %v983_v20  ;;  %v995_v26 = vadd.f32 0.001143296, %v994_v21  ;;  %v898_v35 = vpop.f32.mrf.mxu2 }
 0x284   : > { %v4714_v29 = vmul.f32 0.70710677, %v4709_v18  ;;  %v948_v6 = vadd.f32 0.05243302, %v947_v56 }
 0x285   : > { %v960_v30 = vmul.f32 %v959_v23, %v4694_v53  ;;  %v854_v31 = vadd.f32 %v848_v27, %v804_v24  ;;  %v996_v33 = vmul.f32 %v995_v26, %v4706_v15  ;;  %v985_v39 = vmul.f32 %v984_v25, %v4706_v15 }
 0x286   : > { %v1021_v34 = vmul.f32 %v4714_v29, %v4714_v29  ;;  %v949_v22 = vmul.f32 %v948_v6, %v4694_v53 }
 0x287   : > { %v961_v36 = vadd.f32 0.4994258, %v960_v30  ;;  %v904_v37 = vadd.f32 %v898_v35, %v854_v31  ;;  %v997_v40 = vadd.f32 0.014752088, %v996_v33  ;;  %v986_v52 = vadd.f32 0.0036580483, %v985_v39 }
 0x288   : > { %v4722_v41 = vmin.f32 %v1021_v34, 16.0  ;;  %v950_v33 = vadd.f32 0.18741608, %v949_v22 }
 0x289   : > { %v962_v42 = vmul.f32 %v961_v36, %v4694_v53  ;;  %v4725_v44 = vadd.f32 %v927_v38, %v904_v37  ;;  %v998_v47 = vmul.f32 %v997_v40, %v4706_v15  ;;  %v987_v63 = vmul.f32 %v986_v52, %v4706_v15 }
 0x28a   : > { %v1023_v48 = vmul.f32 2.1237322e-06, %v4722_v41  ;;  %v1034_v50 = vmul.f32 3.8918573e-05, %v4722_v41 }
 0x28b   : > { %v4729_v49 = vadd.f32 1.0, %v962_v42  ;;  %v4733_v51 = vmul.f32 0.70710677, %v4725_v44  ;;  %v999_v54 = vadd.f32 0.112945676, %v998_v47 }
 0x28c   : > { %v1024_v55 = vadd.f32 0.00028619796, %v1023_v48  ;;  %v1035_v59 = vadd.f32 0.001143296, %v1034_v50  ;;  %v988_v13 = vadd.f32 0.05243302, %v987_v63  ;;  %v951_v48 = vmul.f32 %v950_v33, %v4694_v53 }
 0x28d   : > { %4257 = vrcp.f32 %v4729_v49  ;;  %v1000_v57 = vmul.f32 %v999_v54, %v4706_v15  ;;  %v1061_v61 = vmul.f32 %v4733_v51, %v4733_v51  ;;  %v975_v52 = vand.u32 2147483648, %v4729_v49 }
 0x28e   : > { %v1025_v1 = vmul.f32 %v1024_v55, %v4722_v41  ;;  %v1036_v3 = vmul.f32 %v1035_v59, %v4722_v41  ;;  %v989_v26 = vmul.f32 %v988_v13, %v4706_v15  ;;  %vm969_vm15 = vweird.f32 %v4729_v49 }
 0x28f   : > { %v1001_v0 = vadd.f32 0.4994258, %v1000_v57  ;;  %v4743_v4 = vmin.f32 %v1061_v61, 16.0  ;;  %v973_v6 = vand.u32 2147483647, %v4729_v49 }
 0x290   : > { %v1037_v10 = vadd.f32 0.014752088, %v1036_v3  ;;  %v1026_v16 = vadd.f32 0.0036580483, %v1025_v1  ;;  %v990_v38 = vadd.f32 0.18741608, %v989_v26 }
 0x291   : > { %v1002_v7 = vmul.f32 %v1001_v0, %v4706_v15  ;;  %v1063_v11 = vmul.f32 2.1237322e-06, %v4743_v4  ;;  %v1074_v12 = vmul.f32 3.8918573e-05, %v4743_v4  ;;  %vm974_vm4 = vcmp.eq.f32.partialorder %v973_v6, 8.507059e+37 }
 0x292   : > { %v1038_v17 = vmul.f32 %v1037_v10, %v4722_v41  ;;  %v1027_v27 = vmul.f32 %v1026_v16, %v4722_v41  ;;  %v991_v57 = vmul.f32 %v990_v38, %v4706_v15  ;;  %v952_v16 = vadd.f32 1.1283791, %v951_v48 }
 0x293   : > { %v4746_v9 = vpop.eup %4257  ;;  %v1003_v14 = vadd.f32 1.0, %v1002_v7  ;;  %v1064_v19 = vadd.f32 0.00028619796, %v1063_v11  ;;  %v1075_v20 = vadd.f32 0.001143296, %v1074_v12 }
 0x294   : > { %v965_v21 = vmul.f32 %v4746_v9, %v4729_v49  ;;  %v1039_v23 = vadd.f32 0.112945676, %v1038_v17  ;;  %v1028_v40 = vadd.f32 0.05243302, %v1027_v27  ;;  %vm970_vm13 = vweird.f32 %v4746_v9 }
 0x295   : > { %4259 = vrcp.f32 %v1003_v14  ;;  %v1065_v24 = vmul.f32 %v1064_v19, %v4743_v4  ;;  %v1076_v25 = vmul.f32 %v1075_v20, %v4743_v4  ;;  %v1015_v0 = vand.u32 2147483648, %v1003_v14  ;;  %vm4776_vm2 = vmor %vm969_vm15, %vm970_vm13 }
 0x296   : > { %v1040_v30 = vmul.f32 %v1039_v23, %v4722_v41  ;;  %v966_v31 = vsub.f32 1.0, %v965_v21  ;;  %v1029_v61 = vmul.f32 %v1028_v40, %v4722_v41  ;;  %vm1009_vm14 = vweird.f32 %v1003_v14 }
 0x297   : > { %v1077_v32 = vadd.f32 0.014752088, %v1076_v25  ;;  %v1066_v36 = vadd.f32 0.0036580483, %v1065_v24  ;;  %v1013_v1 = vand.u32 2147483647, %v1003_v14 }
 0x298   : > { %v1041_v34 = vadd.f32 0.4994258, %v1040_v30  ;;  %v967_v42 = vmul.f32 %v4746_v9, %v966_v31  ;;  %v992_v11 = vadd.f32 1.1283791, %v991_v57  ;;  %v1030_v13 = vadd.f32 0.18741608, %v1029_v61 }
 0x299   : > { %v1078_v37 = vmul.f32 %v1077_v32, %v4743_v4  ;;  %v1067_v55 = vmul.f32 %v1066_v36, %v4743_v4  ;;  %v1016_v17 = vor.u32 1.1754944e-38, %v1015_v0  ;;  %v976_v19 = vor.u32 1.1754944e-38, %v975_v52 }
 0x29a   : > { %v1042_v45 = vmul.f32 %v1041_v34, %v4722_v41  ;;  %v968_v63 = vadd.f32 %v4746_v9, %v967_v42  ;;  %vm1014_vm3 = vcmp.eq.f32.partialorder %v1013_v1, 8.507059e+37  ;;  %v993_v25 = vmul.f32 %v992_v11, %v4700_v2 }
 0x29b   : > { %v4260_v35 = vpop.eup %4259  ;;  %v1079_v47 = vadd.f32 0.112945676, %v1078_v37  ;;  %v1068_v7 = vadd.f32 0.05243302, %v1067_v55  ;;  %v1031_v26 = vmul.f32 %v1030_v13, %v4722_v41  ;;  %v953_v30 = vmul.f32 %v952_v16, %v4690_v46  ;;  %v4296_v13 = vld [vmem:[%s4571_s29] sm:$0xff]  ;;  %v4297_v16 = vld [vmem:[%s4571_s29 + $0x10] sm:$0xff] }
 0x29c   : > { %v1005_v39 = vmul.f32 %v4260_v35, %v1003_v14  ;;  %v1043_v54 = vadd.f32 1.0, %v1042_v45  ;;  %vm1010_vm12 = vweird.f32 %v4260_v35  ;;  %v972_v49 = vsel %vm4776_vm2, %v4746_v9, %v968_v63 }
 0x29d   : > { %v1080_v56 = vmul.f32 %v1079_v47, %v4743_v4  ;;  %vm4772_vm1 = vmor %vm1009_vm14, %vm1010_vm12  ;;  %v1069_v23 = vmul.f32 %v1068_v7, %v4743_v4  ;;  %v977_v24 = vsel %vm974_vm4, %v976_v19, %v972_v49  ;;  %v934_v57 = vmul.f32 0.5, %v4697_v58 }
 0x29e   : > { %v1006_v50 = vsub.f32 1.0, %v1005_v39  ;;  %4261 = vrcp.f32 %v1043_v54  ;;  %v978_v32 = vmul.f32 %v977_v24, %v953_v30  ;;  %v1055_v33 = vand.u32 2147483648, %v1043_v54 }
 0x29f   : > { %v1081_v3 = vadd.f32 0.4994258, %v1080_v56  ;;  %v1070_v34 = vadd.f32 0.18741608, %v1069_v23  ;;  %v1053_v37 = vand.u32 2147483647, %v1043_v54  ;;  %vm1049_vm13 = vweird.f32 %v1043_v54 }
 0x2a0   : > { %v1007_v59 = vmul.f32 %v4260_v35, %v1006_v50  ;;  %v3562_v2 = vclamps-f32 %v978_v32, 1.0  ;;  %v1056_v41 = vor.u32 1.1754944e-38, %v1055_v33 }
 0x2a1   : > { %v1082_v14 = vmul.f32 %v1081_v3, %v4743_v4  ;;  %v1071_v42 = vmul.f32 %v1070_v34, %v4743_v4  ;;  %vm1054_vm15 = vcmp.eq.f32.partialorder %v1053_v37, 8.507059e+37  ;;  %v933_v4 = vmul.f32 0.5, %v4687_v43 }
 0x2a2   : > { %v1008_v53 = vadd.f32 %v4260_v35, %v1007_v59  ;;  %v1101_v56 = vadd.f32 1.0, %v3562_v2 }
 0x2a3   : > { %v1083_v20 = vadd.f32 1.0, %v1082_v14  ;;  %v1072_v59 = vadd.f32 1.1283791, %v1071_v42 }
 0x2a4   : > { %v1012_v12 = vsel %vm4772_vm1, %v4260_v35, %v1008_v53  ;;  %v4262_v21 = vpop.eup %4261  ;;  %v1032_v35 = vadd.f32 1.1283791, %v1031_v26  ;;  %v1105_v6 = vmul.f32 %v1101_v56, %v933_v4 }
 0x2a5   : > { %v1017_v22 = vsel %vm1014_vm3, %v1016_v17, %v1012_v12  ;;  %v1045_v27 = vmul.f32 %v4262_v21, %v1043_v54  ;;  %4263 = vrcp.f32 %v1083_v20  ;;  %vm1050_vm12 = vweird.f32 %v4262_v21  ;;  %v4295_v12 = vld [vmem:[%s4571_s29 + $0x8] sm:$0xff] }
 0x2a6   : > { %v1018_v31 = vmul.f32 %v1017_v22, %v993_v25  ;;  %vm1051_vm14 = vmor %vm1049_vm13, %vm1050_vm12  ;;  %v1033_v46 = vmul.f32 %v1032_v35, %v4714_v29  ;;  %v1095_v54 = vand.u32 2147483648, %v1083_v20  ;;  %v1093_v0 = vand.u32 2147483647, %v1083_v20  ;;  %v4298_v25 = vld [vmem:[%s4571_s29 + $0x18] sm:$0xff]  ;;  %s5551_s29 = smov 3  }
 0x2a7   : > { %v1046_v9 = vsub.f32 1.0, %v1045_v27  ;;  %v935_v29 = vmul.f32 0.5, %v4709_v18  ;;  %vm1089_vm2 = vweird.f32 %v1083_v20  ;;  %v1073_v7 = vmul.f32 %v1072_v59, %v4733_v51 }
 0x2a8   : > { %v3563_v38 = vclamps-f32 %v1018_v31, 1.0  ;;  %v1096_v58 = vor.u32 1.1754944e-38, %v1095_v54  ;;  %vm1094_vm4 = vcmp.eq.f32.partialorder %v1093_v0, 8.507059e+37  ;;  %v4800_v14 = vadd.f32 %v4296_v13, %v1105_v6  ;;  %v3568_v13 = vld [vmem:[%s4556_s14 + $0x50] sm:$0xff] }
 0x2a9   : > { %v1047_v36 = vmul.f32 %v4262_v21, %v1046_v9  ;;  %v936_v51 = vmul.f32 0.5, %v4725_v44 }
 0x2aa   : > { %v1102_v50 = vadd.f32 1.0, %v3563_v38 }
 0x2ab   : > { %v1048_v39 = vadd.f32 %v4262_v21, %v1047_v36  ;;  %v4264_v40 = vpop.eup %4263 }
 0x2ac   : > { %v1085_v47 = vmul.f32 %v4264_v40, %v1083_v20  ;;  %vm1090_vm1 = vweird.f32 %v4264_v40  ;;  %v1106_v53 = vmul.f32 %v1102_v50, %v934_v57 }
 0x2ad   : > { %v1052_v45 = vsel %vm1051_vm14, %v4262_v21, %v1048_v39  ;;  %vm1091_vm3 = vmor %vm1089_vm2, %vm1090_vm1  ;;  %v1113_v21 = vsel %vm336_vm0, %v4800_v14, 0.0 }
 0x2ae   : > { %v1057_v48 = vsel %vm1054_vm15, %v1056_v41, %v1052_v45  ;;  %v1086_v55 = vsub.f32 1.0, %v1085_v47  ;;  %v4797_v43 = vadd.f32 %v4295_v12, %v1106_v53 }
 0x2af   : > { %v1058_v52 = vmul.f32 %v1057_v48, %v1033_v46 }
 0x2b0   : > { %v1087_v63 = vmul.f32 %v4264_v40, %v1086_v55  ;;  %v1114_v19 = vsel %vm336_vm0, %v4797_v43, 0.0 }
 0x2b1   : > { %v3564_v61 = vclamps-f32 %v1058_v52, 1.0  ;;  %v1115_v24 = vadd.f32 %v1114_v19, %v1113_v21  ;;  %v3572_v21 = vld [vmem:[%s4556_s14 + $0x70] sm:$0xff] }
 0x2b2   : > { %v1088_v3 = vadd.f32 %v4264_v40, %v1087_v63 }
 0x2b3   : > { %v1103_v1 = vadd.f32 1.0, %v3564_v61 }
 0x2b4   : > { %v1092_v10 = vsel %vm1091_vm3, %v4264_v40, %v1088_v3 }
 0x2b5   : > { %v1107_v15 = vmul.f32 %v1103_v1, %v935_v29  ;;  %v1097_v11 = vsel %vm1094_vm4, %v1096_v58, %v1092_v10 }
 0x2b6   : > { %v1098_v18 = vmul.f32 %v1097_v11, %v1073_v7 }
 0x2b7   : > { %v4803_v49 = vadd.f32 %v4297_v16, %v1107_v15  ;;  %v3569_v16 = vld [vmem:[%s4556_s14 + $0x58] sm:$0xff] }
 0x2b8   : > { %v3565_v17 = vclamps-f32 %v1098_v18, 1.0 }
 0x2b9   : > { %v1116_v22 = vsel %vm336_vm0, %v4803_v49, 0.0 }
 0x2ba   : > { %v1104_v20 = vadd.f32 1.0, %v3565_v17  ;;  %v1117_v27 = vadd.f32 %v1116_v22, %v1115_v24 }
 0x2bc   : > { %v1108_v23 = vmul.f32 %v1104_v20, %v936_v51  ;;  %v3573_v20 = vld [vmem:[%s4556_s14 + $0x78] sm:$0xff] }
 0x2be   : > { %v4813_v26 = vadd.f32 %v4298_v25, %v1108_v23  ;;  %v3566_v23 = vld [vmem:[%s4556_s14 + $0x40] sm:$0xff] }
 0x2c0   : > { %v1118_v30 = vsel %vm336_vm0, %v4813_v26, 0.0 }
 0x2c1   : > { %v1119_v31 = vadd.f32 %v1118_v30, %v1117_v27  ;;  %v3567_v27 = vld [vmem:[%s4556_s14 + $0x48] sm:$0xff] }
 0x2c3   : > { %v1120_v9 = vrot.slane %v1119_v31, 4 }
 0x2c5   : > { %v1121_v32 = vadd.f32 %v1120_v9, %v1119_v31 }
 0x2c7   : > { %v1122_v44 = vrot.slane %v1121_v32, 2 }
 0x2c9   : > { %v1123_v33 = vadd.f32 %v1122_v44, %v1121_v32 }
 0x2cb   : > { %v1124_v34 = vrot.slane %v1123_v33, 1 }
 0x2cd   : > { %v1125_v35 = vadd.f32 %v1124_v34, %v1123_v33  ;;  %v3570_v33 = vld [vmem:[%s4556_s14 + $0x60] sm:$0xff]  ;;  %v3571_v34 = vld [vmem:[%s4556_s14 + $0x68] sm:$0xff] }
 0x2cf   : > { %v1126_v36 = vmul.f32 %v1125_v35, %v4584_v28 }
 0x2d1   : > { %v1127_v37 = vsub.f32 %v4800_v14, %v1126_v36  ;;  %v1128_v38 = vsub.f32 %v4797_v43, %v1126_v36  ;;  %v1129_v39 = vsub.f32 %v4803_v49, %v1126_v36  ;;  %v1130_v40 = vsub.f32 %v4813_v26, %v1126_v36 }
 0x2d3   : > { %v1131_v2 = vmul.f32 %v1127_v37, %v1127_v37  ;;  %v1132_v41 = vmul.f32 %v1128_v38, %v1128_v38  ;;  %v1133_v42 = vmul.f32 %v1129_v39, %v1129_v39  ;;  %v1134_v46 = vmul.f32 %v1130_v40, %v1130_v40 }
 0x2d5   : > { %v1135_v45 = vsel %vm336_vm0, %v1131_v2, 0.0  ;;  %v1136_v47 = vsel %vm336_vm0, %v1132_v41, 0.0  ;;  %v1138_v50 = vsel %vm336_vm0, %v1133_v42, 0.0  ;;  %v1140_v55 = vsel %vm336_vm0, %v1134_v46, 0.0 }
 0x2d6   : > { %v1137_v48 = vadd.f32 %v1136_v47, %v1135_v45 }
 0x2d8   : > { %v1139_v52 = vadd.f32 %v1138_v50, %v1137_v48 }
 0x2da   : > { %v1141_v56 = vadd.f32 %v1140_v55, %v1139_v52 }
 0x2dc   : > { %v1142_v57 = vrot.slane %v1141_v56, 4 }
 0x2de   : > { %v1143_v59 = vadd.f32 %v1142_v57, %v1141_v56 }
 0x2e0   : > { %v1144_v54 = vrot.slane %v1143_v59, 2 }
 0x2e2   : > { %v1145_v61 = vadd.f32 %v1144_v54, %v1143_v59 }
 0x2e4   : > { %v1146_v63 = vrot.slane %v1145_v61, 1 }
 0x2e6   : > { %v1147_v0 = vadd.f32 %v1146_v63, %v1145_v61 }
 0x2e8   : > { %v1148_v4 = vmul.f32 0.032258064, %v1147_v0 }
 0x2ea   : > { %v1149_v29 = vadd.f32 0.0001, %v1148_v4 }
 0x2ec   : > { %4265 = vrsqrt.f32 %v1149_v29  ;;  %vm1156_vm13 = vweird.f32 %v1149_v29 }
 0x2f2   : > { %v4266_v53 = vpop.eup %4265 }
 0x2f3   : > { %v1151_v1 = vmul.f32 %v4266_v53, %v1149_v29  ;;  %vm1157_vm12 = vweird.f32 %v4266_v53 }
 0x2f4   : > { %vm1158_vm14 = vmor %vm1156_vm13, %vm1157_vm12 }
 0x2f5   : > { %v1152_v3 = vmul.f32 %v4266_v53, %v1151_v1 }
 0x2f7   : > { %v1153_v6 = vmul.f32 0.5, %v1152_v3 }
 0x2f9   : > { %v1154_v58 = vsub.f32 1.5, %v1153_v6 }
 0x2fb   : > { %v1155_v15 = vmul.f32 %v4266_v53, %v1154_v58 }
 0x2fd   : > { %v1159_v7 = vsel %vm1158_vm14, %v4266_v53, %v1155_v15 }
 0x2fe   : > { %v1160_v10 = vmul.f32 %v1159_v7, %v1127_v37  ;;  %v1161_v11 = vmul.f32 %v1159_v7, %v1128_v38  ;;  %v1162_v12 = vmul.f32 %v1159_v7, %v1129_v39  ;;  %v1163_v18 = vmul.f32 %v1159_v7, %v1130_v40 }
 0x300   : > { %v1166_v17 = vadd.f32 %v1162_v12, %v4591_v60  ;;  %v1167_v19 = vadd.f32 %v1163_v18, %v4598_v5  ;;  %v1164_v51 = vadd.f32 %v1160_v10, %v4593_v62  ;;  %v1165_v22 = vadd.f32 %v1161_v11, %v4601_v8 }
 0x302   : > { %v1179_v24 = vmul.f32 %v3568_v13, %v1166_v17  ;;  %v1180_v25 = vmul.f32 %v3569_v16, %v1167_v19  ;;  %v1177_v9 = vmul.f32 %v3566_v23, %v1164_v51  ;;  %v1178_v32 = vmul.f32 %v3567_v27, %v1165_v22 }
 0x304   : > { %v1184_v30 = vadd.f32 %v3573_v20, %v1180_v25  ;;  %v1183_v31 = vadd.f32 %v3572_v21, %v1179_v24  ;;  %v1181_v35 = vadd.f32 %v3570_v33, %v1177_v9  ;;  %v1182_v36 = vadd.f32 %v3571_v34, %v1178_v32 }
 0x306   : > { %v4053_v44 = vpack.i.bf16 %v1184_v30, %v1183_v31  ;;  %v4068_v37 = vpack.i.bf16 %v1182_v36, %v1181_v35 }
 0x308   : > { %4054 = vrot.lane.b32.xlu0 %v4053_v44, %s5528_s17  ;;  %4049 = vrot.lane.b32.xlu2 %v4053_v44, %s5524_s8 }
 0x309   : > { %4044 = vrot.lane.b32.xlu1 %v4053_v44, %s5526_s26 }
 0x310   : > { %4064 = vrot.lane.b32.xlu2 %v4053_v44, %s5522_s13  ;;  %4069 = vrot.lane.b32.xlu0 %v4068_v37, %s5526_s26 }
 0x311   : > { %4059 = vrot.lane.b32.xlu1 %v4053_v44, %s5551_s29 }
 0x318   : > { %4079 = vrot.lane.b32.xlu2 %v4053_v44, %s5552_s28  ;;  %4084 = vrot.lane.b32.xlu0 %v4068_v37, %s5528_s17  ;;  %s5559_s17 = smov 1  }
 0x319   : > { %4074 = vrot.lane.b32.xlu1 %v4068_v37, %s5524_s8 }
 0x320   : > { %4094 = vrot.lane.b32.xlu2 %v4068_v37, %s5551_s29  ;;  %4099 = vrot.lane.b32.xlu0 %v4068_v37, %s5522_s13  ;;  %s5562_s13 = smov 5  }
 0x321   : > { %4089 = vrot.lane.b32.xlu1 %v4053_v44, %s5553_s7 }
 0x328   : > { %4109 = vrot.lane.b32.xlu2 %v4068_v37, %s5553_s7 }
 0x329   : > { %4104 = vrot.lane.b32.xlu1 %v4068_v37, %s5552_s28 }
 0x362   : > { %v4050_v38 = vpop.permute.xlu2 %4049 }
 0x363   : > { %v4052_v48 = vunpack.i.h.bf16 %v4050_v38  ;;  %v4051_v50 = vunpack.i.l.bf16 %v4050_v38 }
 0x36a   : > { %v4065_v2 = vpop.permute.xlu2 %4064 }
 0x36b   : > { %v4067_v1 = vunpack.i.h.bf16 %v4065_v2  ;;  %v4066_v3 = vunpack.i.l.bf16 %v4065_v2 }
 0x372   : > { %v4080_v46 = vpop.permute.xlu2 %4079 }
 0x373   : > { %v4082_v11 = vunpack.i.h.bf16 %v4080_v46  ;;  %v4081_v12 = vunpack.i.l.bf16 %v4080_v46 }
 0x37a   : > { %v4055_v39 = vpop.permute.xlu0 %4054  ;;  %v4095_v6 = vpop.permute.xlu2 %4094 }
 0x37b   : > { %v4045_v40 = vpop.permute.xlu1 %4044  ;;  %v4057_v52 = vunpack.i.h.bf16 %v4055_v39  ;;  %v4056_v55 = vunpack.i.l.bf16 %v4055_v39  ;;  %v4097_v37 = vunpack.i.h.bf16 %v4095_v6  ;;  %v4096_v38 = vunpack.i.l.bf16 %v4095_v6 }
 0x37c   : > { %v4047_v45 = vunpack.i.h.bf16 %v4045_v40  ;;  %v4046_v47 = vunpack.i.l.bf16 %v4045_v40 }
 0x37e   : > { %v1276_v56 = vsel %vm523_vm5, %v4047_v45, %v4052_v48  ;;  %v1275_v57 = vsel %vm523_vm5, %v4046_v47, %v4051_v50 }
 0x37f   : > { %v1279_v0 = vsel %vm528_vm6, %v1275_v57, %v4056_v55  ;;  %v1280_v4 = vsel %vm528_vm6, %v1276_v56, %v4057_v52 }
 0x382   : > { %v4070_v41 = vpop.permute.xlu0 %4069  ;;  %v4110_v39 = vpop.permute.xlu2 %4109 }
 0x383   : > { %v4060_v42 = vpop.permute.xlu1 %4059  ;;  %v4072_v18 = vunpack.i.h.bf16 %v4070_v41  ;;  %v4071_v13 = vunpack.i.l.bf16 %v4070_v41  ;;  %v4112_v47 = vunpack.i.h.bf16 %v4110_v39  ;;  %v4111_v48 = vunpack.i.l.bf16 %v4110_v39 }
 0x384   : > { %v4062_v59 = vunpack.i.h.bf16 %v4060_v42  ;;  %v4061_v54 = vunpack.i.l.bf16 %v4060_v42 }
 0x386   : > { %v1283_v29 = vsel %vm533_vm7, %v1279_v0, %v4061_v54  ;;  %v1284_v53 = vsel %vm533_vm7, %v1280_v4, %v4062_v59 }
 0x387   : > { %v1287_v7 = vsel %vm538_vm8, %v1283_v29, %v4066_v3  ;;  %v1288_v10 = vsel %vm538_vm8, %v1284_v53, %v4067_v1  ;;  %v3646_v29 = vld [vmem:[%s5512_s4 + $0x30] sm:$0xff]  ;;  %v3644_v53 = vld [vmem:[%s5512_s4 + $0x20] sm:$0xff]  ;;  %v3647_v1 = vld [vmem:[%s5512_s4 + $0x38] sm:$0xff] }
 0x388   : > { %v1291_v23 = vsel %vm543_vm9, %v1287_v7, %v4081_v12  ;;  %v1292_v24 = vsel %vm543_vm9, %v1288_v10, %v4082_v11  ;;  %v3645_v3 = vld [vmem:[%s5512_s4 + $0x28] sm:$0xff]  ;;  %v3847_v10 = vld [vmem:[#allocation5 + $0x78] sm:$0xff] }
 0x38a   : > { %v4085_v63 = vpop.permute.xlu0 %4084 }
 0x38b   : > { %v4075_v61 = vpop.permute.xlu1 %4074  ;;  %v4087_v17 = vunpack.i.h.bf16 %v4085_v63  ;;  %v4086_v19 = vunpack.i.l.bf16 %v4085_v63 }
 0x38c   : > { %v4077_v58 = vunpack.i.h.bf16 %v4075_v61  ;;  %v4076_v15 = vunpack.i.l.bf16 %v4075_v61 }
 0x38e   : > { %v1273_v21 = vsel %vm523_vm5, %v4071_v13, %v4076_v15  ;;  %v1274_v22 = vsel %vm523_vm5, %v4072_v18, %v4077_v58  ;;  %v3846_v58 = vld [vmem:[#allocation5 + $0x70] sm:$0xff]  ;;  %v3848_v13 = vld [vmem:[#allocation5 + $0x80] sm:$0xff] }
 0x38f   : > { %v1277_v32 = vsel %vm528_vm6, %v1273_v21, %v4086_v19  ;;  %v1278_v44 = vsel %vm528_vm6, %v1274_v22, %v4087_v17  ;;  %v3849_v22 = vld [vmem:[#allocation5 + $0x88] sm:$0xff] }
 0x390   : > { %v1281_v41 = vsel %vm533_vm7, %v1277_v32, %v4096_v38  ;;  %v1282_v42 = vsel %vm533_vm7, %v1278_v44, %v4097_v37  ;;  %v3857_v32 = vld [vmem:[#allocation5 + $0xc8] sm:$0xff]  ;;  %v3855_v44 = vld [vmem:[#allocation5 + $0xb8] sm:$0xff] }
 0x392   : > { %v4100_v30 = vpop.permute.xlu0 %4099 }
 0x393   : > { %v4090_v16 = vpop.permute.xlu1 %4089  ;;  %v4102_v35 = vunpack.i.h.bf16 %v4100_v30  ;;  %v4101_v36 = vunpack.i.l.bf16 %v4100_v30  ;;  %v3853_v30 = vld [vmem:[#allocation5 + $0xa8] sm:$0xff] }
 0x394   : > { %v4092_v51 = vunpack.i.h.bf16 %v4090_v16  ;;  %v4091_v20 = vunpack.i.l.bf16 %v4090_v16  ;;  %v3850_v16 = vld [vmem:[#allocation5 + $0x90] sm:$0xff] }
 0x395   : > { %v1285_v50 = vsel %vm538_vm8, %v1281_v41, %v4101_v36  ;;  %v1286_v52 = vsel %vm538_vm8, %v1282_v42, %v4102_v35 }
 0x396   : > { %v1296_v25 = vsel %vm548_vm10, %v1292_v24, %v4092_v51  ;;  %v1295_v27 = vsel %vm548_vm10, %v1291_v23, %v4091_v20  ;;  %v3852_v51 = vld [vmem:[#allocation5 + $0xa0] sm:$0xff]  ;;  %v3851_v23 = vld [vmem:[#allocation5 + $0x98] sm:$0xff] }
 0x397   : > { %v1300_v31 = vpack.c.bf16 %v1296_v25, %v1296_v25  ;;  %v1299_v9 = vpack.c.bf16 %v1295_v27, %v1295_v27  ;;  %v3856_v27 = vld [vmem:[#allocation5 + $0xc0] sm:$0xff] }
 0x399   : > { %v1328_v33 = vunpack.c.l.b16 %v1300_v31  ;;  %v1327_v34 = vunpack.c.l.b16 %v1299_v9  ;;  %v3854_v31 = vld [vmem:[#allocation5 + $0xb0] sm:$0xff] }
 0x39a   : > { %v3858_v9 = vld [vmem:[#allocation5 + $0xd0] sm:$0xff] }
 0x39b   : > { %v1330_v40 = vpack.c.b16 %v1328_v33, %v1327_v34  ;;  %v4105_v2 = vpop.permute.xlu1 %4104  ;;  %v3859_v33 = vld [vmem:[#allocation5 + $0xd8] sm:$0xff] }
 0x39c   : > { %v4107_v46 = vunpack.i.h.bf16 %v4105_v2  ;;  %v4106_v45 = vunpack.i.l.bf16 %v4105_v2 }
 0x39d   : > { %1416 = vrot.lane.b32.xlu2 %v1330_v40, %s5554_s23  ;;  %1386 = vmatpush.bf16.msra.mxu0 %v1330_v40 }
 0x39e   : > { %v1289_v55 = vsel %vm543_vm9, %v1285_v50, %v4106_v45  ;;  %v1290_v56 = vsel %vm543_vm9, %v1286_v52, %v4107_v46  ;;  %1333 = vrot.lane.b32.xlu0 %v1330_v40, %s5524_s8 }
 0x39f   : > { %v1293_v57 = vsel %vm548_vm10, %v1289_v55, %v4111_v48  ;;  %v1294_v59 = vsel %vm548_vm10, %v1290_v56, %v4112_v47 }
 0x3a0   : > { %v1297_v54 = vpack.c.bf16 %v1293_v57, %v1293_v57  ;;  %v1298_v61 = vpack.c.bf16 %v1294_v59, %v1294_v59 }
 0x3a2   : > { %v1325_v63 = vunpack.c.l.b16 %v1297_v54  ;;  %v1326_v0 = vunpack.c.l.b16 %v1298_v61 }
 0x3a4   : > { %v1329_v4 = vpack.c.b16 %v1326_v0, %v1325_v63 }
 0x3a5   : > { %1516 = vrot.lane.b32.xlu2 %v1330_v40, %s4419_s15 }
 0x3a6   : > { %1414 = vrot.lane.b32.xlu0 %v1329_v4, %s5554_s23  ;;  %1331 = vrot.lane.b32.xlu1 %v1329_v4, %s5524_s8  ;;  %s5561_s8 = smov 125  }
 0x3a7   : > { %1387 = vmatpush.bf16.msra.mxu0 %v1329_v4 }
 0x3aa   : > { %3592 = vmatmul.msk.bf16.vlgmr.msra.gmra.mxu0 %vm592_vm11, %v3846_v58 }
 0x3ad   : > { %1566 = vrot.lane.b32.xlu2 %v1330_v40, %s5532_s11 }
 0x3ae   : > { %1464 = vrot.lane.b32.xlu0 %v1329_v4, %s5526_s26  ;;  %1466 = vrot.lane.b32.xlu1 %v1330_v40, %s5526_s26  ;;  %s5560_s26 = smov 127  }
 0x3b5   : > { %1614 = vrot.lane.b32.xlu2 %v1329_v4, %s5530_s9 }
 0x3b6   : > { %1616 = vrot.lane.b32.xlu0 %v1330_v40, %s5530_s9  ;;  %1514 = vrot.lane.b32.xlu1 %v1329_v4, %s4419_s15  ;;  %s5563_s9 = smov 122  }
 0x3ba   : > { %3593 = vmatmul.msk.bf16.gmra.mxu0 %vm592_vm11, %v3847_v10 }
 0x3bd   : > { %1666 = vperm.xlu2 %4042, %v3646_v29  }
 0x3be   : > { %1656 = vperm.xlu0 %3970, %v3644_v53   ;;  %1564 = vrot.lane.b32.xlu1 %v1329_v4, %s5532_s11 }
 0x3c6   : > { %1671 = vperm.xlu0 %3970, %v3647_v1   ;;  %1661 = vperm.xlu1 %3971, %v3645_v3  }
 0x3f7   : > { %v1417_v6 = vpop.permute.xlu2 %1416 }
 0x3f8   : > { %1432 = vmatpush.bf16.msra.mxu1 %v1417_v6 }
 0x3ff   : > { %v1517_v15 = vpop.permute.xlu2 %1516 }
 0x407   : > { %v1567_v7 = vpop.permute.xlu2 %1566 }
 0x408   : > { %1582 = vmatpush.bf16.msrb.mxu0 %v1567_v7 }
 0x40f   : > { %v1615_v24 = vpop.permute.xlu2 %1614 }
 0x410   : > { %v1334_v11 = vpop.permute.xlu0 %1333 }
 0x411   : > { %1349 = vmatpush.bf16.msrb.mxu3 %v1334_v11 }
 0x418   : > { %v1415_v12 = vpop.permute.xlu0 %1414  ;;  %v1332_v18 = vpop.permute.xlu1 %1331 }
 0x419   : > { %1350 = vmatpush.bf16.msrb.mxu3 %v1332_v18  ;;  %1433 = vmatpush.bf16.msra.mxu1 %v1415_v12 }
 0x41c   : > { %3582 = vmatmul.msk.bf16.vlgmr.msrb.gmra.mxu3 %vm592_vm11, %v3848_v13  ;;  %3602 = vmatmul.msk.bf16.vlgmr.msra.gmra.mxu1 %vm592_vm11, %v3850_v16 }
 0x41d   : > { %1532 = vmatpush.bf16.msra.mxu3 %v1517_v15 }
 0x420   : > { %v1465_v17 = vpop.permute.xlu0 %1464  ;;  %v1467_v19 = vpop.permute.xlu1 %1466 }
 0x421   : > { %1482 = vmatpush.bf16.msra.mxu2 %v1467_v19 }
 0x425   : > { %1483 = vmatpush.bf16.msra.mxu2 %v1465_v17 }
 0x427   : > { %v1389_v34 = vpop.f32.mrf.mxu0 }
 0x428   : > { %v1617_v20 = vpop.permute.xlu0 %1616  ;;  %3612 = vmatmul.msk.bf16.vlgmr.msra.gmra.mxu2 %vm592_vm11, %v3852_v51  ;;  %v1515_v21 = vpop.permute.xlu1 %1514 }
 0x429   : > { %1533 = vmatpush.bf16.msra.mxu3 %v1515_v21  ;;  %1632 = vmatpush.bf16.msrb.mxu1 %v1617_v20 }
 0x42c   : > { %3583 = vmatmul.msk.bf16.gmra.mxu3 %vm592_vm11, %v3849_v22  ;;  %3603 = vmatmul.msk.bf16.gmra.mxu1 %vm592_vm11, %v3851_v23 }
 0x42d   : > { %1633 = vmatpush.bf16.msrb.mxu1 %v1615_v24 }
 0x42f   : > { %v1391_v36 = vpop.f32.mrf.mxu0 }
 0x430   : > { %v1565_v25 = vpop.permute.xlu1 %1564  ;;  %v1657_v29 = vpop.permute.xlu0 %1656 }
 0x431   : > { %1583 = vmatpush.bf16.msrb.mxu0 %v1565_v25 }
 0x434   : > { %3632 = vmatmul.msk.bf16.vlgmr.msrb.gmra.mxu0 %vm592_vm11, %v3856_v27 }
 0x437   : > { %v1394_v40 = vpop.f32.mrf.mxu0 }
 0x438   : > { %3613 = vmatmul.msk.bf16.gmra.mxu2 %vm592_vm11, %v3853_v30  ;;  %v1662_v19 = vpop.permute.xlu1 %1661 }
 0x43c   : > { %3622 = vmatmul.msk.bf16.vlgmr.msra.gmra.mxu3 %vm592_vm11, %v3854_v31  ;;  %3642 = vmatmul.msk.bf16.vlgmr.msrb.gmra.mxu1 %vm592_vm11, %v3858_v9 }
 0x43f   : > { %v1396_v42 = vpop.f32.mrf.mxu0 }
 0x444   : > { %3633 = vmatmul.msk.bf16.gmra.mxu0 %vm592_vm11, %v3857_v32 }
 0x44c   : > { %3623 = vmatmul.msk.bf16.gmra.mxu3 %vm592_vm11, %v3855_v44  ;;  %3643 = vmatmul.msk.bf16.gmra.mxu1 %vm592_vm11, %v3859_v33 }
 0x499   : > { %v1435_v35 = vpop.f32.mrf.mxu1 }
 0x49f   : > { %v1352_v37 = vpop.f32.mrf.mxu3 }
 0x4a0   : > { %v1390_v48 = vadd.f32 %v1389_v34, %v1352_v37 }
 0x4a1   : > { %v1437_v38 = vpop.f32.mrf.mxu1 }
 0x4a2   : > { %v1445_v52 = vadd.f32 %v1435_v35, %v1390_v48 }
 0x4a7   : > { %v1354_v39 = vpop.f32.mrf.mxu3 }
 0x4a8   : > { %v1392_v54 = vadd.f32 %v1391_v36, %v1354_v39 }
 0x4a9   : > { %v1440_v2 = vpop.f32.mrf.mxu1 }
 0x4aa   : > { %v1446_v0 = vadd.f32 %v1437_v38, %v1392_v54  ;;  %v1667_v38 = vpop.permute.xlu2 %1666 }
 0x4ab   : > { %v1485_v45 = vpop.f32.mrf.mxu2 }
 0x4ac   : > { %v1495_v56 = vadd.f32 %v1485_v45, %v1445_v52 }
 0x4af   : > { %v1357_v41 = vpop.f32.mrf.mxu3 }
 0x4b0   : > { %v1395_v15 = vadd.f32 %v1394_v40, %v1357_v41 }
 0x4b1   : > { %v1442_v46 = vpop.f32.mrf.mxu1  ;;  %v1585_v50 = vpop.f32.mrf.mxu0 }
 0x4b2   : > { %v1447_v13 = vadd.f32 %v1440_v2, %v1395_v15 }
 0x4b3   : > { %v1487_v57 = vpop.f32.mrf.mxu2 }
 0x4b4   : > { %v1496_v1 = vadd.f32 %v1487_v57, %v1446_v0 }
 0x4b7   : > { %v1359_v47 = vpop.f32.mrf.mxu3 }
 0x4b8   : > { %v1397_v24 = vadd.f32 %v1396_v42, %v1359_v47 }
 0x4b9   : > { %v1635_v55 = vpop.f32.mrf.mxu1  ;;  %v1587_v53 = vpop.f32.mrf.mxu0 }
 0x4ba   : > { %v1448_v36 = vadd.f32 %v1442_v46, %v1397_v24 }
 0x4bb   : > { %v1490_v11 = vpop.f32.mrf.mxu2 }
 0x4bc   : > { %v1497_v51 = vadd.f32 %v1490_v11, %v1447_v13 }
 0x4bf   : > { %v1535_v59 = vpop.f32.mrf.mxu3 }
 0x4c0   : > { %v1545_v61 = vadd.f32 %v1535_v59, %v1495_v56 }
 0x4c1   : > { %v1637_v6 = vpop.f32.mrf.mxu1  ;;  %v1590_v22 = vpop.f32.mrf.mxu0 }
 0x4c2   : > { %v1595_v63 = vadd.f32 %v1585_v50, %v1545_v61 }
 0x4c3   : > { %v1492_v33 = vpop.f32.mrf.mxu2 }
 0x4c4   : > { %v1645_v4 = vadd.f32 %v1635_v55, %v1595_v63  ;;  %v1498_v2 = vadd.f32 %v1492_v33, %v1448_v36 }
 0x4c6   : > { %v4914_v3 = vadd.f32 %v1657_v29, %v1645_v4 }
 0x4c7   : > { %v1537_v58 = vpop.f32.mrf.mxu3 }
 0x4c8   : > { %v4917_v7 = vmul.f32 0.70710677, %v4914_v3  ;;  %v1546_v10 = vadd.f32 %v1537_v58, %v1496_v1  ;;  %v1672_v1 = vpop.permute.xlu0 %1671 }
 0x4c9   : > { %v1640_v31 = vpop.f32.mrf.mxu1  ;;  %v1592_v57 = vpop.f32.mrf.mxu0 }
 0x4ca   : > { %v1686_v12 = vmul.f32 %v4917_v7, %v4917_v7  ;;  %v1596_v18 = vadd.f32 %v1587_v53, %v1546_v10 }
 0x4cc   : > { %v4921_v16 = vmin.f32 %v1686_v12, 16.0  ;;  %v1646_v17 = vadd.f32 %v1637_v6, %v1596_v18 }
 0x4ce   : > { %v1699_v20 = vmul.f32 3.8918573e-05, %v4921_v16  ;;  %v4924_v21 = vadd.f32 %v1662_v19, %v1646_v17  ;;  %v1688_v44 = vmul.f32 2.1237322e-06, %v4921_v16 }
 0x4cf   : > { %v1540_v23 = vpop.f32.mrf.mxu3 }
 0x4d0   : > { %v1700_v25 = vadd.f32 0.001143296, %v1699_v20  ;;  %v1547_v27 = vadd.f32 %v1540_v23, %v1497_v51  ;;  %v4927_v30 = vmul.f32 0.70710677, %v4924_v21  ;;  %v1689_v42 = vadd.f32 0.00028619796, %v1688_v44 }
 0x4d1   : > { %v1642_v4 = vpop.f32.mrf.mxu1 }
 0x4d2   : > { %v1701_v9 = vmul.f32 %v1700_v25, %v4921_v16  ;;  %v1597_v32 = vadd.f32 %v1590_v22, %v1547_v27  ;;  %v1726_v34 = vmul.f32 %v4927_v30, %v4927_v30  ;;  %v1690_v61 = vmul.f32 %v1689_v42, %v4921_v16 }
 0x4d4   : > { %v1702_v35 = vadd.f32 0.014752088, %v1701_v9  ;;  %v1647_v37 = vadd.f32 %v1640_v31, %v1597_v32  ;;  %v4933_v39 = vmin.f32 %v1726_v34, 16.0  ;;  %v1691_v12 = vadd.f32 0.0036580483, %v1690_v61 }
 0x4d6   : > { %v1703_v40 = vmul.f32 %v1702_v35, %v4921_v16  ;;  %v4936_v41 = vadd.f32 %v1667_v38, %v1647_v37  ;;  %v1728_v45 = vmul.f32 2.1237322e-06, %v4933_v39  ;;  %v1739_v47 = vmul.f32 3.8918573e-05, %v4933_v39 }
 0x4d7   : > { %v1542_v48 = vpop.f32.mrf.mxu3  ;;  %v1692_v24 = vmul.f32 %v1691_v12, %v4921_v16 }
 0x4d8   : > { %v1704_v50 = vadd.f32 0.112945676, %v1703_v40  ;;  %v1548_v52 = vadd.f32 %v1542_v48, %v1498_v2  ;;  %v1729_v55 = vadd.f32 0.00028619796, %v1728_v45  ;;  %v1740_v56 = vadd.f32 0.001143296, %v1739_v47 }
 0x4d9   : > { %v4941_v46 = vmul.f32 0.70710677, %v4936_v41  ;;  %v1693_v35 = vadd.f32 0.05243302, %v1692_v24 }
 0x4da   : > { %v1705_v59 = vmul.f32 %v1704_v50, %v4921_v16  ;;  %v1598_v54 = vadd.f32 %v1592_v57, %v1548_v52  ;;  %v1741_v63 = vmul.f32 %v1740_v56, %v4933_v39  ;;  %v1730_v6 = vmul.f32 %v1729_v55, %v4933_v39 }
 0x4db   : > { %v1766_v0 = vmul.f32 %v4941_v46, %v4941_v46  ;;  %v1694_v56 = vmul.f32 %v1693_v35, %v4921_v16 }
 0x4dc   : > { %v1706_v29 = vadd.f32 0.4994258, %v1705_v59  ;;  %v1648_v53 = vadd.f32 %v1642_v4, %v1598_v54  ;;  %v1742_v58 = vadd.f32 0.014752088, %v1741_v63  ;;  %v1731_v20 = vadd.f32 0.0036580483, %v1730_v6 }
 0x4dd   : > { %v4949_v15 = vmin.f32 %v1766_v0, 16.0 }
 0x4de   : > { %v1707_v10 = vmul.f32 %v1706_v29, %v4921_v16  ;;  %v4952_v11 = vadd.f32 %v1672_v1, %v1648_v53  ;;  %v1743_v18 = vmul.f32 %v1742_v58, %v4933_v39  ;;  %v1732_v9 = vmul.f32 %v1731_v20, %v4933_v39 }
 0x4df   : > { %v1768_v13 = vmul.f32 2.1237322e-06, %v4949_v15  ;;  %v1779_v19 = vmul.f32 3.8918573e-05, %v4949_v15  ;;  %v1695_v53 = vadd.f32 0.18741608, %v1694_v56 }
 0x4e0   : > { %v4956_v17 = vadd.f32 1.0, %v1707_v10  ;;  %v4960_v51 = vmul.f32 0.70710677, %v4952_v11  ;;  %v1744_v22 = vadd.f32 0.112945676, %v1743_v18 }
 0x4e1   : > { %v1769_v23 = vadd.f32 0.00028619796, %v1768_v13  ;;  %v1780_v27 = vadd.f32 0.001143296, %v1779_v19  ;;  %v1733_v42 = vadd.f32 0.05243302, %v1732_v9 }
 0x4e2   : > { %4267 = vrcp.f32 %v4956_v17  ;;  %v1745_v25 = vmul.f32 %v1744_v22, %v4933_v39  ;;  %v1806_v31 = vmul.f32 %v4960_v51, %v4960_v51  ;;  %vm1714_vm3 = vweird.f32 %v4956_v17 }
 0x4e3   : > { %v1770_v44 = vmul.f32 %v1769_v23, %v4949_v15  ;;  %v1781_v33 = vmul.f32 %v1780_v27, %v4949_v15  ;;  %v1734_v61 = vmul.f32 %v1733_v42, %v4933_v39  ;;  %v1696_v23 = vmul.f32 %v1695_v53, %v4921_v16 }
 0x4e4   : > { %v1746_v32 = vadd.f32 0.4994258, %v1745_v25  ;;  %v4970_v34 = vmin.f32 %v1806_v31, 16.0  ;;  %v1720_v25 = vand.u32 2147483648, %v4956_v17 }
 0x4e5   : > { %v1782_v38 = vadd.f32 0.014752088, %v1781_v33  ;;  %v1771_v47 = vadd.f32 0.0036580483, %v1770_v44  ;;  %v1735_v12 = vadd.f32 0.18741608, %v1734_v61 }
 0x4e6   : > { %v1747_v36 = vmul.f32 %v1746_v32, %v4933_v39  ;;  %v1808_v40 = vmul.f32 2.1237322e-06, %v4970_v34  ;;  %v1819_v2 = vmul.f32 3.8918573e-05, %v4970_v34 }
 0x4e7   : > { %v1783_v48 = vmul.f32 %v1782_v38, %v4949_v15  ;;  %v1772_v63 = vmul.f32 %v1771_v47, %v4949_v15  ;;  %v1736_v32 = vmul.f32 %v1735_v12, %v4933_v39 }
 0x4e8   : > { %v4973_v37 = vpop.eup %4267  ;;  %v1748_v45 = vadd.f32 1.0, %v1747_v36  ;;  %v1809_v50 = vadd.f32 0.00028619796, %v1808_v40  ;;  %v1820_v52 = vadd.f32 0.001143296, %v1819_v2 }
 0x4e9   : > { %v1710_v55 = vmul.f32 %v4973_v37, %v4956_v17  ;;  %v1784_v57 = vadd.f32 0.112945676, %v1783_v48  ;;  %v1773_v13 = vadd.f32 0.05243302, %v1772_v63  ;;  %vm1715_vm1 = vweird.f32 %v4973_v37 }
 0x4ea   : > { %4269 = vrcp.f32 %v1748_v45  ;;  %v1810_v59 = vmul.f32 %v1809_v50, %v4970_v34  ;;  %v1821_v54 = vmul.f32 %v1820_v52, %v4970_v34  ;;  %v1760_v36 = vand.u32 2147483648, %v1748_v45  ;;  %vm5003_vm12 = vmor %vm1714_vm3, %vm1715_vm1 }
 0x4eb   : > { %v1785_v0 = vmul.f32 %v1784_v57, %v4949_v15  ;;  %v1711_v4 = vsub.f32 1.0, %v1710_v55  ;;  %v1774_v33 = vmul.f32 %v1773_v13, %v4949_v15  ;;  %vm1754_vm2 = vweird.f32 %v1748_v45 }
 0x4ec   : > { %v1822_v29 = vadd.f32 0.014752088, %v1821_v54  ;;  %v1811_v58 = vadd.f32 0.0036580483, %v1810_v59  ;;  %v1758_v38 = vand.u32 2147483647, %v1748_v45 }
 0x4ed   : > { %v1786_v1 = vadd.f32 0.4994258, %v1785_v0  ;;  %v1712_v19 = vmul.f32 %v4973_v37, %v1711_v4  ;;  %v1718_v2 = vand.u32 2147483647, %v4956_v17  ;;  %v1737_v48 = vadd.f32 1.1283791, %v1736_v32 }
 0x4ee   : > { %v1823_v10 = vmul.f32 %v1822_v29, %v4970_v34  ;;  %v1812_v31 = vmul.f32 %v1811_v58, %v4970_v34  ;;  %v1775_v52 = vadd.f32 0.18741608, %v1774_v33  ;;  %v1697_v55 = vadd.f32 1.1283791, %v1696_v23 }
 0x4ef   : > { %v1787_v20 = vmul.f32 %v1786_v1, %v4949_v15  ;;  %v1713_v35 = vadd.f32 %v4973_v37, %v1712_v19  ;;  %v1761_v56 = vor.u32 1.1754944e-38, %v1760_v36  ;;  %v1721_v57 = vor.u32 1.1754944e-38, %v1720_v25 }
 0x4f0   : > { %v4270_v6 = vpop.eup %4269  ;;  %v1824_v22 = vadd.f32 0.112945676, %v1823_v10  ;;  %v1813_v42 = vadd.f32 0.05243302, %v1812_v31  ;;  %vm1759_vm13 = vcmp.eq.f32.partialorder %v1758_v38, 8.507059e+37  ;;  %vm1719_vm14 = vcmp.eq.f32.partialorder %v1718_v2, 8.507059e+37 }
 0x4f1   : > { %v1750_v18 = vmul.f32 %v4270_v6, %v1748_v45  ;;  %v1788_v27 = vadd.f32 1.0, %v1787_v20  ;;  %vm1755_vm15 = vweird.f32 %v4270_v6  ;;  %v1717_v17 = vsel %vm5003_vm12, %v4973_v37, %v1713_v35 }
 0x4f2   : > { %v1825_v9 = vmul.f32 %v1824_v22, %v4970_v34  ;;  %vm4999_vm4 = vmor %vm1754_vm2, %vm1755_vm15  ;;  %v1814_v63 = vmul.f32 %v1813_v42, %v4970_v34  ;;  %v1722_v0 = vsel %vm1719_vm14, %v1721_v57, %v1717_v17  ;;  %v1738_v4 = vmul.f32 %v1737_v48, %v4927_v30 }
 0x4f3   : > { %v1751_v24 = vsub.f32 1.0, %v1750_v18  ;;  %4271 = vrcp.f32 %v1788_v27  ;;  %v1776_v29 = vmul.f32 %v1775_v52, %v4949_v15  ;;  %v1698_v1 = vmul.f32 %v1697_v55, %v4917_v7 }
 0x4f4   : > { %v1826_v40 = vadd.f32 0.4994258, %v1825_v9  ;;  %v1800_v10 = vand.u32 2147483648, %v1788_v27  ;;  %v1815_v12 = vadd.f32 0.18741608, %v1814_v63  ;;  %vm1794_vm1 = vweird.f32 %v1788_v27 }
 0x4f5   : > { %v1752_v44 = vmul.f32 %v4270_v6, %v1751_v24  ;;  %v1723_v58 = vmul.f32 %v1722_v0, %v1698_v1  ;;  %v1777_v18 = vadd.f32 1.1283791, %v1776_v29  ;;  %v1798_v19 = vand.u32 2147483647, %v1788_v27 }
 0x4f6   : > { %v1827_v45 = vmul.f32 %v1826_v40, %v4970_v34  ;;  %v1801_v15 = vor.u32 1.1754944e-38, %v1800_v10  ;;  %v1816_v24 = vmul.f32 %v1815_v12, %v4970_v34  ;;  %v1679_v36 = vmul.f32 0.5, %v4924_v21 }
 0x4f7   : > { %v1753_v16 = vadd.f32 %v4270_v6, %v1752_v44  ;;  %v3648_v30 = vclamps-f32 %v1723_v58, 1.0  ;;  %v1778_v7 = vmul.f32 %v1777_v18, %v4941_v46  ;;  %vm1799_vm3 = vcmp.eq.f32.partialorder %v1798_v19, 8.507059e+37 }
 0x4f8   : > { %v1828_v59 = vadd.f32 1.0, %v1827_v45  ;;  %v1678_v34 = vmul.f32 0.5, %v4914_v3  ;;  %v1680_v46 = vmul.f32 0.5, %v4936_v41 }
 0x4f9   : > { %v1757_v50 = vsel %vm4999_vm4, %v4270_v6, %v1753_v16  ;;  %v4272_v54 = vpop.eup %4271  ;;  %v1846_v35 = vadd.f32 1.0, %v3648_v30  ;;  %v1817_v16 = vadd.f32 1.1283791, %v1816_v24 }
 0x4fa   : > { %v1762_v61 = vsel %vm1759_vm13, %v1761_v56, %v1757_v50  ;;  %v1790_v53 = vmul.f32 %v4272_v54, %v1788_v27  ;;  %4273 = vrcp.f32 %v1828_v59  ;;  %vm1795_vm15 = vweird.f32 %v4272_v54 }
 0x4fb   : > { %v1763_v6 = vmul.f32 %v1762_v61, %v1738_v4  ;;  %vm1796_vm2 = vmor %vm1794_vm1, %vm1795_vm15  ;;  %v1840_v27 = vand.u32 2147483648, %v1828_v59  ;;  %v1838_v2 = vand.u32 2147483647, %v1828_v59  ;;  %vm1834_vm12 = vweird.f32 %v1828_v59 }
 0x4fc   : > { %v1791_v37 = vsub.f32 1.0, %v1790_v53  ;;  %v1850_v48 = vmul.f32 %v1846_v35, %v1678_v34  ;;  %v1818_v21 = vmul.f32 %v1817_v16, %v4960_v51 }
 0x4fd   : > { %v3649_v20 = vclamps-f32 %v1763_v6, 1.0  ;;  %v1841_v50 = vor.u32 1.1754944e-38, %v1840_v27  ;;  %vm1839_vm14 = vcmp.eq.f32.partialorder %v1838_v2, 8.507059e+37 }
 0x4fe   : > { %v1792_v13 = vmul.f32 %v4272_v54, %v1791_v37  ;;  %v5027_v3 = vadd.f32 %v1850_v48, %v4800_v14 }
 0x4ff   : > { %v1847_v32 = vadd.f32 1.0, %v3649_v20 }
 0x500   : > { %v1793_v22 = vadd.f32 %v4272_v54, %v1792_v13  ;;  %v4274_v23 = vpop.eup %4273  ;;  %v1858_v61 = vsel %vm336_vm0, %v5027_v3, 0.0 }
 0x501   : > { %v1830_v31 = vmul.f32 %v4274_v23, %v1828_v59  ;;  %vm1835_vm4 = vweird.f32 %v4274_v23  ;;  %v1851_v39 = vmul.f32 %v1847_v32, %v1679_v36 }
 0x502   : > { %v1797_v25 = vsel %vm1796_vm2, %v4272_v54, %v1793_v22  ;;  %vm1836_vm13 = vmor %vm1834_vm12, %vm1835_vm4  ;;  %v1681_v54 = vmul.f32 0.5, %v4952_v11 }
 0x503   : > { %v1802_v9 = vsel %vm1799_vm3, %v1801_v15, %v1797_v25  ;;  %v1831_v33 = vsub.f32 1.0, %v1830_v31  ;;  %v5024_v17 = vadd.f32 %v1851_v39, %v4797_v43 }
 0x504   : > { %v1803_v44 = vmul.f32 %v1802_v9, %v1778_v7 }
 0x505   : > { %v1832_v40 = vmul.f32 %v4274_v23, %v1831_v33  ;;  %v1859_v59 = vsel %vm336_vm0, %v5024_v17, 0.0 }
 0x506   : > { %v3650_v38 = vclamps-f32 %v1803_v44, 1.0  ;;  %v1860_v0 = vadd.f32 %v1859_v59, %v1858_v61 }
 0x507   : > { %v1833_v47 = vadd.f32 %v4274_v23, %v1832_v40 }
 0x508   : > { %v1848_v42 = vadd.f32 1.0, %v3650_v38 }
 0x509   : > { %v1837_v45 = vsel %vm1836_vm13, %v4274_v23, %v1833_v47 }
 0x50a   : > { %v1852_v52 = vmul.f32 %v1848_v42, %v1680_v46  ;;  %v1842_v55 = vsel %vm1839_vm14, %v1841_v50, %v1837_v45  ;;  %v3655_v45 = vld [vmem:[%s4556_s14 + $0x98] sm:$0xff] }
 0x50b   : > { %v1843_v56 = vmul.f32 %v1842_v55, %v1818_v21  ;;  %v3654_v55 = vld [vmem:[%s4556_s14 + $0x90] sm:$0xff] }
 0x50c   : > { %v5030_v41 = vadd.f32 %v1852_v52, %v4803_v49 }
 0x50d   : > { %v3651_v57 = vclamps-f32 %v1843_v56, 1.0 }
 0x50e   : > { %v1861_v43 = vsel %vm336_vm0, %v5030_v41, 0.0 }
 0x50f   : > { %v1849_v51 = vadd.f32 1.0, %v3651_v57  ;;  %v1862_v49 = vadd.f32 %v1861_v43, %v1860_v0  ;;  %v3652_v0 = vld [vmem:[%s4556_s14 + $0x80] sm:$0xff] }
 0x511   : > { %v1853_v63 = vmul.f32 %v1849_v51, %v1681_v54  ;;  %v3659_v54 = vld [vmem:[%s4556_s14 + $0xb8] sm:$0xff]  ;;  %v3658_v51 = vld [vmem:[%s4556_s14 + $0xb0] sm:$0xff] }
 0x513   : > { %v5040_v14 = vadd.f32 %v1853_v63, %v4813_v26 }
 0x515   : > { %v1863_v4 = vsel %vm336_vm0, %v5040_v14, 0.0 }
 0x516   : > { %v1864_v29 = vadd.f32 %v1863_v4, %v1862_v49  ;;  %v3653_v49 = vld [vmem:[%s4556_s14 + $0x88] sm:$0xff] }
 0x518   : > { %v1865_v53 = vrot.slane %v1864_v29, 4 }
 0x51a   : > { %v1866_v1 = vadd.f32 %v1865_v53, %v1864_v29 }
 0x51c   : > { %v1867_v11 = vrot.slane %v1866_v1, 2 }
 0x51e   : > { %v1868_v6 = vadd.f32 %v1867_v11, %v1866_v1 }
 0x520   : > { %v1869_v37 = vrot.slane %v1868_v6, 1 }
 0x522   : > { %v1870_v58 = vadd.f32 %v1869_v37, %v1868_v6  ;;  %v3656_v6 = vld [vmem:[%s4556_s14 + $0xa0] sm:$0xff]  ;;  %v3657_v37 = vld [vmem:[%s4556_s14 + $0xa8] sm:$0xff] }
 0x524   : > { %v1871_v10 = vmul.f32 %v1870_v58, %v4584_v28 }
 0x526   : > { %v1872_v12 = vsub.f32 %v5027_v3, %v1871_v10  ;;  %v1873_v18 = vsub.f32 %v5024_v17, %v1871_v10  ;;  %v1874_v26 = vsub.f32 %v5030_v41, %v1871_v10  ;;  %v1875_v13 = vsub.f32 %v5040_v14, %v1871_v10 }
 0x528   : > { %v1876_v19 = vmul.f32 %v1872_v12, %v1872_v12  ;;  %v1877_v20 = vmul.f32 %v1873_v18, %v1873_v18  ;;  %v1878_v22 = vmul.f32 %v1874_v26, %v1874_v26  ;;  %v1879_v23 = vmul.f32 %v1875_v13, %v1875_v13 }
 0x52a   : > { %v1880_v30 = vsel %vm336_vm0, %v1876_v19, 0.0  ;;  %v1881_v15 = vsel %vm336_vm0, %v1877_v20, 0.0  ;;  %v1883_v7 = vsel %vm336_vm0, %v1878_v22, 0.0  ;;  %v1885_v31 = vsel %vm336_vm0, %v1879_v23, 0.0 }
 0x52b   : > { %v1882_v24 = vadd.f32 %v1881_v15, %v1880_v30 }
 0x52d   : > { %v1884_v25 = vadd.f32 %v1883_v7, %v1882_v24 }
 0x52f   : > { %v1886_v9 = vadd.f32 %v1885_v31, %v1884_v25 }
 0x531   : > { %v1887_v32 = vrot.slane %v1886_v9, 4 }
 0x533   : > { %v1888_v44 = vadd.f32 %v1887_v32, %v1886_v9 }
 0x535   : > { %v1889_v33 = vrot.slane %v1888_v44, 2 }
 0x537   : > { %v1890_v35 = vadd.f32 %v1889_v33, %v1888_v44 }
 0x539   : > { %v1891_v36 = vrot.slane %v1890_v35, 1 }
 0x53b   : > { %v1892_v16 = vadd.f32 %v1891_v36, %v1890_v35 }
 0x53d   : > { %v1893_v27 = vmul.f32 0.032258064, %v1892_v16 }
 0x53f   : > { %v1894_v38 = vadd.f32 0.0001, %v1893_v27 }
 0x541   : > { %4275 = vrsqrt.f32 %v1894_v38  ;;  %vm1901_vm1 = vweird.f32 %v1894_v38 }
 0x547   : > { %v4276_v40 = vpop.eup %4275 }
 0x548   : > { %v1896_v2 = vmul.f32 %v4276_v40, %v1894_v38  ;;  %vm1902_vm15 = vweird.f32 %v4276_v40 }
 0x549   : > { %vm1903_vm2 = vmor %vm1901_vm1, %vm1902_vm15 }
 0x54a   : > { %v1897_v34 = vmul.f32 %v4276_v40, %v1896_v2 }
 0x54c   : > { %v1898_v46 = vmul.f32 0.5, %v1897_v34 }
 0x54e   : > { %v1899_v39 = vsub.f32 1.5, %v1898_v46 }
 0x550   : > { %v1900_v42 = vmul.f32 %v4276_v40, %v1899_v39 }
 0x552   : > { %v1904_v47 = vsel %vm1903_vm2, %v4276_v40, %v1900_v42 }
 0x553   : > { %v1905_v48 = vmul.f32 %v1904_v47, %v1872_v12  ;;  %v1906_v50 = vmul.f32 %v1904_v47, %v1873_v18  ;;  %v1907_v52 = vmul.f32 %v1904_v47, %v1874_v26  ;;  %v1908_v21 = vmul.f32 %v1904_v47, %v1875_v13 }
 0x555   : > { %v1911_v56 = vadd.f32 %v1907_v52, %v4591_v60  ;;  %v1912_v57 = vadd.f32 %v1908_v21, %v4598_v5  ;;  %v1909_v59 = vadd.f32 %v1905_v48, %v4593_v62  ;;  %v1910_v61 = vadd.f32 %v1906_v50, %v4601_v8 }
 0x557   : > { %v1925_v43 = vmul.f32 %v3655_v45, %v1912_v57  ;;  %v1924_v63 = vmul.f32 %v3654_v55, %v1911_v56  ;;  %v1922_v53 = vmul.f32 %v3652_v0, %v1909_v59  ;;  %v1923_v11 = vmul.f32 %v3653_v49, %v1910_v61 }
 0x559   : > { %v1929_v4 = vadd.f32 %v3659_v54, %v1925_v43  ;;  %v1928_v29 = vadd.f32 %v3658_v51, %v1924_v63  ;;  %v1926_v58 = vadd.f32 %v3656_v6, %v1922_v53  ;;  %v1927_v10 = vadd.f32 %v3657_v37, %v1923_v11 }
 0x55b   : > { %v4123_v1 = vpack.i.bf16 %v1929_v4, %v1928_v29  ;;  %v4138_v12 = vpack.i.bf16 %v1927_v10, %v1926_v58 }
 0x55d   : > { %4124 = vrot.lane.b32.xlu0 %v4123_v1, %s5559_s17  ;;  %4119 = vrot.lane.b32.xlu2 %v4123_v1, %s5560_s26 }
 0x55e   : > { %4114 = vrot.lane.b32.xlu1 %v4123_v1, %s5561_s8 }
 0x565   : > { %4134 = vrot.lane.b32.xlu2 %v4123_v1, %s5562_s13  ;;  %4139 = vrot.lane.b32.xlu0 %v4138_v12, %s5561_s8 }
 0x566   : > { %4129 = vrot.lane.b32.xlu1 %v4123_v1, %s5551_s29 }
 0x56d   : > { %4149 = vrot.lane.b32.xlu2 %v4123_v1, %s5552_s28  ;;  %4154 = vrot.lane.b32.xlu0 %v4138_v12, %s5559_s17 }
 0x56e   : > { %4144 = vrot.lane.b32.xlu1 %v4138_v12, %s5560_s26 }
 0x575   : > { %4164 = vrot.lane.b32.xlu2 %v4138_v12, %s5551_s29  ;;  %4169 = vrot.lane.b32.xlu0 %v4138_v12, %s5562_s13 }
 0x576   : > { %4159 = vrot.lane.b32.xlu1 %v4123_v1, %s5553_s7 }
 0x57d   : > { %4179 = vrot.lane.b32.xlu2 %v4138_v12, %s5553_s7 }
 0x57e   : > { %4174 = vrot.lane.b32.xlu1 %v4138_v12, %s5552_s28 }
 0x5b7   : > { %v4120_v18 = vpop.permute.xlu2 %4119 }
 0x5b8   : > { %v4122_v24 = vunpack.i.h.bf16 %v4120_v18  ;;  %v4121_v7 = vunpack.i.l.bf16 %v4120_v18 }
 0x5bf   : > { %v4135_v19 = vpop.permute.xlu2 %4134 }
 0x5c0   : > { %v4137_v2 = vunpack.i.h.bf16 %v4135_v19  ;;  %v4136_v34 = vunpack.i.l.bf16 %v4135_v19 }
 0x5c7   : > { %v4150_v23 = vpop.permute.xlu2 %4149 }
 0x5c8   : > { %v4152_v50 = vunpack.i.h.bf16 %v4150_v23  ;;  %v4151_v52 = vunpack.i.l.bf16 %v4150_v23 }
 0x5cf   : > { %v4125_v26 = vpop.permute.xlu0 %4124  ;;  %v4165_v46 = vpop.permute.xlu2 %4164 }
 0x5d0   : > { %v4115_v13 = vpop.permute.xlu1 %4114  ;;  %v4127_v25 = vunpack.i.h.bf16 %v4125_v26  ;;  %v4126_v31 = vunpack.i.l.bf16 %v4125_v26  ;;  %v4167_v12 = vunpack.i.h.bf16 %v4165_v46  ;;  %v4166_v18 = vunpack.i.l.bf16 %v4165_v46  ;;  %v3860_v46 = vld [vmem:[#allocation5 + $0xe0] sm:$0xff] }
 0x5d1   : > { %v4117_v30 = vunpack.i.h.bf16 %v4115_v13  ;;  %v4116_v15 = vunpack.i.l.bf16 %v4115_v13 }
 0x5d3   : > { %v2021_v9 = vsel %vm523_vm5, %v4117_v30, %v4122_v24  ;;  %v2020_v32 = vsel %vm523_vm5, %v4116_v15, %v4121_v7 }
 0x5d4   : > { %v2024_v16 = vsel %vm528_vm6, %v2020_v32, %v4126_v31  ;;  %v2025_v27 = vsel %vm528_vm6, %v2021_v9, %v4127_v25 }
 0x5d7   : > { %v4140_v20 = vpop.permute.xlu0 %4139  ;;  %v4180_v26 = vpop.permute.xlu2 %4179 }
 0x5d8   : > { %v4130_v22 = vpop.permute.xlu1 %4129  ;;  %v4142_v21 = vunpack.i.h.bf16 %v4140_v20  ;;  %v4141_v45 = vunpack.i.l.bf16 %v4140_v20  ;;  %v4182_v15 = vunpack.i.h.bf16 %v4180_v26  ;;  %v4181_v24 = vunpack.i.l.bf16 %v4180_v26 }
 0x5d9   : > { %v4132_v44 = vunpack.i.h.bf16 %v4130_v22  ;;  %v4131_v33 = vunpack.i.l.bf16 %v4130_v22 }
 0x5db   : > { %v2028_v38 = vsel %vm533_vm7, %v2024_v16, %v4131_v33  ;;  %v2029_v40 = vsel %vm533_vm7, %v2025_v27, %v4132_v44 }
 0x5dc   : > { %v2032_v47 = vsel %vm538_vm8, %v2028_v38, %v4136_v34  ;;  %v2033_v48 = vsel %vm538_vm8, %v2029_v40, %v4137_v2  ;;  %v3732_v38 = vld [vmem:[%s5512_s4 + $0x50] sm:$0xff]  ;;  %v3730_v40 = vld [vmem:[%s5512_s4 + $0x40] sm:$0xff]  ;;  %v3733_v2 = vld [vmem:[%s5512_s4 + $0x58] sm:$0xff] }
 0x5dd   : > { %v2036_v43 = vsel %vm543_vm9, %v2032_v47, %v4151_v52  ;;  %v2037_v63 = vsel %vm543_vm9, %v2033_v48, %v4152_v50  ;;  %v3731_v34 = vld [vmem:[%s5512_s4 + $0x48] sm:$0xff]  ;;  %v3870_v52 = vld [vmem:[#allocation5 + $0x130] sm:$0xff] }
 0x5de   : > { %v3861_v47 = vld [vmem:[#allocation5 + $0xe8] sm:$0xff] }
 0x5df   : > { %v4155_v36 = vpop.permute.xlu0 %4154 }
 0x5e0   : > { %v4145_v35 = vpop.permute.xlu1 %4144  ;;  %v4157_v56 = vunpack.i.h.bf16 %v4155_v36  ;;  %v4156_v57 = vunpack.i.l.bf16 %v4155_v36 }
 0x5e1   : > { %v4147_v39 = vunpack.i.h.bf16 %v4145_v35  ;;  %v4146_v42 = vunpack.i.l.bf16 %v4145_v35 }
 0x5e3   : > { %v2018_v51 = vsel %vm523_vm5, %v4141_v45, %v4146_v42  ;;  %v2019_v61 = vsel %vm523_vm5, %v4142_v21, %v4147_v39 }
 0x5e4   : > { %v2022_v1 = vsel %vm528_vm6, %v2018_v51, %v4156_v57  ;;  %v2023_v11 = vsel %vm528_vm6, %v2019_v61, %v4157_v56  ;;  %v3864_v56 = vld [vmem:[#allocation5 + $0x100] sm:$0xff] }
 0x5e5   : > { %v2026_v20 = vsel %vm533_vm7, %v2022_v1, %v4166_v18  ;;  %v2027_v22 = vsel %vm533_vm7, %v2023_v11, %v4167_v12  ;;  %v3872_v1 = vld [vmem:[#allocation5 + $0x140] sm:$0xff]  ;;  %v3869_v11 = vld [vmem:[#allocation5 + $0x128] sm:$0xff] }
 0x5e7   : > { %v4170_v4 = vpop.permute.xlu0 %4169 }
 0x5e8   : > { %v4160_v55 = vpop.permute.xlu1 %4159  ;;  %v4172_v58 = vunpack.i.h.bf16 %v4170_v4  ;;  %v4171_v10 = vunpack.i.l.bf16 %v4170_v4 }
 0x5e9   : > { %v4162_v59 = vunpack.i.h.bf16 %v4160_v55  ;;  %v4161_v54 = vunpack.i.l.bf16 %v4160_v55  ;;  %v3862_v55 = vld [vmem:[#allocation5 + $0xf0] sm:$0xff] }
 0x5ea   : > { %v2030_v7 = vsel %vm538_vm8, %v2026_v20, %v4171_v10  ;;  %v2031_v25 = vsel %vm538_vm8, %v2027_v22, %v4172_v58 }
 0x5eb   : > { %v2041_v0 = vsel %vm548_vm10, %v2037_v63, %v4162_v59  ;;  %v2040_v49 = vsel %vm548_vm10, %v2036_v43, %v4161_v54  ;;  %v3871_v54 = vld [vmem:[#allocation5 + $0x138] sm:$0xff]  ;;  %v3866_v63 = vld [vmem:[#allocation5 + $0x110] sm:$0xff] }
 0x5ec   : > { %v2045_v29 = vpack.c.bf16 %v2041_v0, %v2041_v0  ;;  %v2044_v53 = vpack.c.bf16 %v2040_v49, %v2040_v49  ;;  %v3863_v43 = vld [vmem:[#allocation5 + $0xf8] sm:$0xff]  ;;  %v3865_v0 = vld [vmem:[#allocation5 + $0x108] sm:$0xff] }
 0x5ee   : > { %v2073_v6 = vunpack.c.l.b16 %v2045_v29  ;;  %v2072_v37 = vunpack.c.l.b16 %v2044_v53  ;;  %v3867_v29 = vld [vmem:[#allocation5 + $0x118] sm:$0xff]  ;;  %v3868_v53 = vld [vmem:[#allocation5 + $0x120] sm:$0xff] }
 0x5f0   : > { %v2075_v13 = vpack.c.b16 %v2073_v6, %v2072_v37  ;;  %v4175_v19 = vpop.permute.xlu1 %4174  ;;  %v3873_v6 = vld [vmem:[#allocation5 + $0x148] sm:$0xff] }
 0x5f1   : > { %v4177_v23 = vunpack.i.h.bf16 %v4175_v19  ;;  %v4176_v30 = vunpack.i.l.bf16 %v4175_v19 }
 0x5f2   : > { %2161 = vrot.lane.b32.xlu2 %v2075_v13, %s5554_s23  ;;  %2131 = vmatpush.bf16.msrb.mxu3 %v2075_v13 }
 0x5f3   : > { %v2034_v31 = vsel %vm543_vm9, %v2030_v7, %v4176_v30  ;;  %v2035_v9 = vsel %vm543_vm9, %v2031_v25, %v4177_v23  ;;  %2078 = vrot.lane.b32.xlu0 %v2075_v13, %s5560_s26 }
 0x5f4   : > { %v2038_v32 = vsel %vm548_vm10, %v2034_v31, %v4181_v24  ;;  %v2039_v44 = vsel %vm548_vm10, %v2035_v9, %v4182_v15 }
 0x5f5   : > { %v2042_v33 = vpack.c.bf16 %v2038_v32, %v2038_v32  ;;  %v2043_v35 = vpack.c.bf16 %v2039_v44, %v2039_v44 }
 0x5f7   : > { %v2070_v36 = vunpack.c.l.b16 %v2042_v33  ;;  %v2071_v16 = vunpack.c.l.b16 %v2043_v35 }
 0x5f9   : > { %v2074_v27 = vpack.c.b16 %v2071_v16, %v2070_v36 }
 0x5fa   : > { %2311 = vrot.lane.b32.xlu2 %v2075_v13, %s5532_s11 }
 0x5fb   : > { %2159 = vrot.lane.b32.xlu0 %v2074_v27, %s5554_s23  ;;  %2076 = vrot.lane.b32.xlu1 %v2074_v27, %s5560_s26 }
 0x5fc   : > { %2132 = vmatpush.bf16.msrb.mxu3 %v2074_v27 }
 0x5ff   : > { %3678 = vmatmul.msk.bf16.vlgmr.msrb.gmra.mxu3 %vm592_vm11, %v3860_v46 }
 0x602   : > { %2309 = vrot.lane.b32.xlu2 %v2074_v27, %s5532_s11 }
 0x603   : > { %2211 = vrot.lane.b32.xlu0 %v2075_v13, %s5561_s8  ;;  %2261 = vrot.lane.b32.xlu1 %v2075_v13, %s4419_s15 }
 0x60a   : > { %2359 = vrot.lane.b32.xlu2 %v2074_v27, %s5563_s9 }
 0x60b   : > { %2209 = vrot.lane.b32.xlu0 %v2074_v27, %s5561_s8  ;;  %2259 = vrot.lane.b32.xlu1 %v2074_v27, %s4419_s15 }
 0x60f   : > { %3679 = vmatmul.msk.bf16.gmra.mxu3 %vm592_vm11, %v3861_v47 }
 0x612   : > { %2411 = vperm.xlu2 %4042, %v3732_v38  }
 0x613   : > { %2401 = vperm.xlu0 %3970, %v3730_v40   ;;  %2361 = vrot.lane.b32.xlu1 %v2075_v13, %s5563_s9 }
 0x61b   : > { %2416 = vperm.xlu0 %3970, %v3733_v2   ;;  %2406 = vperm.xlu1 %3971, %v3731_v34  }
 0x64c   : > { %v2162_v39 = vpop.permute.xlu2 %2161 }
 0x64d   : > { %2177 = vmatpush.bf16.msra.mxu0 %v2162_v39 }
 0x654   : > { %v2312_v42 = vpop.permute.xlu2 %2311 }
 0x655   : > { %2327 = vmatpush.bf16.msra.mxu3 %v2312_v42 }
 0x65c   : > { %v2310_v48 = vpop.permute.xlu2 %2309 }
 0x65d   : > { %2328 = vmatpush.bf16.msra.mxu3 %v2310_v48 }
 0x660   : > { %3718 = vmatmul.msk.bf16.vlgmr.msra.gmra.mxu3 %vm592_vm11, %v3870_v52 }
 0x664   : > { %v2360_v4 = vpop.permute.xlu2 %2359 }
 0x665   : > { %v2079_v50 = vpop.permute.xlu0 %2078 }
 0x666   : > { %2094 = vmatpush.bf16.msrb.mxu2 %v2079_v50 }
 0x66d   : > { %v2160_v21 = vpop.permute.xlu0 %2159  ;;  %v2077_v45 = vpop.permute.xlu1 %2076 }
 0x66e   : > { %2095 = vmatpush.bf16.msrb.mxu2 %v2077_v45  ;;  %2178 = vmatpush.bf16.msra.mxu0 %v2160_v21 }
 0x670   : > { %3719 = vmatmul.msk.bf16.gmra.mxu3 %vm592_vm11, %v3871_v54 }
 0x671   : > { %3668 = vmatmul.msk.bf16.vlgmr.msrb.gmra.mxu2 %vm592_vm11, %v3862_v55  ;;  %3688 = vmatmul.msk.bf16.vlgmr.msra.gmra.mxu0 %vm592_vm11, %v3864_v56 }
 0x675   : > { %v2212_v57 = vpop.permute.xlu0 %2211  ;;  %v2262_v59 = vpop.permute.xlu1 %2261 }
 0x676   : > { %2227 = vmatpush.bf16.msra.mxu1 %v2212_v57  ;;  %2277 = vmatpush.bf16.msra.mxu2 %v2262_v59 }
 0x67d   : > { %v2210_v51 = vpop.permute.xlu0 %2209  ;;  %v2260_v61 = vpop.permute.xlu1 %2259 }
 0x67e   : > { %2228 = vmatpush.bf16.msra.mxu1 %v2210_v51  ;;  %2278 = vmatpush.bf16.msra.mxu2 %v2260_v61 }
 0x681   : > { %3669 = vmatmul.msk.bf16.gmra.mxu2 %vm592_vm11, %v3863_v43  ;;  %3698 = vmatmul.msk.bf16.vlgmr.msra.gmra.mxu1 %vm592_vm11, %v3866_v63 }
 0x682   : > { %3689 = vmatmul.msk.bf16.gmra.mxu0 %vm592_vm11, %v3865_v0  ;;  %v2134_v37 = vpop.f32.mrf.mxu3 }
 0x685   : > { %v2362_v49 = vpop.permute.xlu1 %2361  ;;  %v2402_v38 = vpop.permute.xlu0 %2401 }
 0x686   : > { %2377 = vmatpush.bf16.msrb.mxu0 %v2362_v49 }
 0x68a   : > { %2378 = vmatpush.bf16.msrb.mxu0 %v2360_v4  ;;  %v2136_v10 = vpop.f32.mrf.mxu3 }
 0x68d   : > { %v2407_v57 = vpop.permute.xlu1 %2406 }
 0x691   : > { %3699 = vmatmul.msk.bf16.gmra.mxu1 %vm592_vm11, %v3867_v29  ;;  %3708 = vmatmul.msk.bf16.vlgmr.msra.gmra.mxu2 %vm592_vm11, %v3868_v53 }
 0x692   : > { %3728 = vmatmul.msk.bf16.vlgmr.msrb.gmra.mxu0 %vm592_vm11, %v3872_v1  ;;  %v2139_v13 = vpop.f32.mrf.mxu3 }
 0x69a   : > { %v2141_v22 = vpop.f32.mrf.mxu3 }
 0x6a1   : > { %3709 = vmatmul.msk.bf16.gmra.mxu2 %vm592_vm11, %v3869_v11 }
 0x6a2   : > { %3729 = vmatmul.msk.bf16.gmra.mxu0 %vm592_vm11, %v3873_v6 }
 0x6e3   : > { %v2330_v7 = vpop.f32.mrf.mxu3 }
 0x6eb   : > { %v2332_v40 = vpop.f32.mrf.mxu3 }
 0x6ee   : > { %v2180_v58 = vpop.f32.mrf.mxu0 }
 0x6f3   : > { %v2335_v61 = vpop.f32.mrf.mxu3 }
 0x6f4   : > { %v2097_v12 = vpop.f32.mrf.mxu2 }
 0x6f5   : > { %v2135_v24 = vadd.f32 %v2134_v37, %v2097_v12 }
 0x6f6   : > { %v2182_v18 = vpop.f32.mrf.mxu0 }
 0x6f7   : > { %v2190_v25 = vadd.f32 %v2180_v58, %v2135_v24 }
 0x6fc   : > { %v2099_v26 = vpop.f32.mrf.mxu2 }
 0x6fd   : > { %v2137_v33 = vadd.f32 %v2136_v10, %v2099_v26 }
 0x6fe   : > { %v2230_v30 = vpop.f32.mrf.mxu1 }
 0x6ff   : > { %v2185_v19 = vpop.f32.mrf.mxu0  ;;  %v2240_v9 = vadd.f32 %v2230_v30, %v2190_v25  ;;  %v2191_v16 = vadd.f32 %v2182_v18, %v2137_v33  ;;  %v2412_v18 = vpop.permute.xlu2 %2411 }
 0x704   : > { %v2102_v20 = vpop.f32.mrf.mxu2 }
 0x705   : > { %v2140_v42 = vadd.f32 %v2139_v13, %v2102_v20 }
 0x706   : > { %v2232_v32 = vpop.f32.mrf.mxu1 }
 0x707   : > { %v2187_v23 = vpop.f32.mrf.mxu0  ;;  %v2241_v2 = vadd.f32 %v2232_v32, %v2191_v16  ;;  %v2192_v45 = vadd.f32 %v2185_v19, %v2140_v42  ;;  %v2337_v32 = vpop.f32.mrf.mxu3 }
 0x70c   : > { %v2104_v15 = vpop.f32.mrf.mxu2 }
 0x70d   : > { %v2142_v63 = vadd.f32 %v2141_v22, %v2104_v15 }
 0x70e   : > { %v2235_v50 = vpop.f32.mrf.mxu1 }
 0x70f   : > { %v2380_v31 = vpop.f32.mrf.mxu0  ;;  %v2242_v59 = vadd.f32 %v2235_v50, %v2192_v45  ;;  %v2193_v10 = vadd.f32 %v2187_v23, %v2142_v63 }
 0x714   : > { %v2280_v44 = vpop.f32.mrf.mxu2 }
 0x715   : > { %v2290_v35 = vadd.f32 %v2280_v44, %v2240_v9 }
 0x716   : > { %v2237_v6 = vpop.f32.mrf.mxu1 }
 0x717   : > { %v2340_v36 = vadd.f32 %v2330_v7, %v2290_v35  ;;  %v2382_v46 = vpop.f32.mrf.mxu0  ;;  %v2243_v19 = vadd.f32 %v2237_v6, %v2193_v10 }
 0x719   : > { %v2390_v27 = vadd.f32 %v2380_v31, %v2340_v36 }
 0x71b   : > { %v5141_v34 = vadd.f32 %v2402_v38, %v2390_v27 }
 0x71c   : > { %v2282_v39 = vpop.f32.mrf.mxu2 }
 0x71d   : > { %v5144_v47 = vmul.f32 0.70710677, %v5141_v34  ;;  %v2291_v48 = vadd.f32 %v2282_v39, %v2241_v2  ;;  %v2417_v2 = vpop.permute.xlu0 %2416 }
 0x71f   : > { %v2431_v52 = vmul.f32 %v5144_v47, %v5144_v47  ;;  %v2341_v21 = vadd.f32 %v2332_v40, %v2291_v48  ;;  %v2385_v29 = vpop.f32.mrf.mxu0 }
 0x721   : > { %v5148_v55 = vmin.f32 %v2431_v52, 16.0  ;;  %v2391_v56 = vadd.f32 %v2382_v46, %v2341_v21 }
 0x723   : > { %v2444_v54 = vmul.f32 3.8918573e-05, %v5148_v55  ;;  %v5151_v51 = vadd.f32 %v2407_v57, %v2391_v56  ;;  %v2433_v11 = vmul.f32 2.1237322e-06, %v5148_v55 }
 0x724   : > { %v2285_v43 = vpop.f32.mrf.mxu2 }
 0x725   : > { %v2445_v0 = vadd.f32 0.001143296, %v2444_v54  ;;  %v2292_v49 = vadd.f32 %v2285_v43, %v2242_v59  ;;  %v5154_v4 = vmul.f32 0.70710677, %v5151_v51  ;;  %v2434_v22 = vadd.f32 0.00028619796, %v2433_v11 }
 0x727   : > { %v2446_v53 = vmul.f32 %v2445_v0, %v5148_v55  ;;  %v2342_v1 = vadd.f32 %v2335_v61, %v2292_v49  ;;  %v2471_v37 = vmul.f32 %v5154_v4, %v5154_v4  ;;  %v2435_v35 = vmul.f32 %v2434_v22, %v5148_v55  ;;  %v2387_v27 = vpop.f32.mrf.mxu0 }
 0x729   : > { %v2447_v58 = vadd.f32 0.014752088, %v2446_v53  ;;  %v2392_v12 = vadd.f32 %v2385_v29, %v2342_v1  ;;  %v5160_v26 = vmin.f32 %v2471_v37, 16.0  ;;  %v2436_v52 = vadd.f32 0.0036580483, %v2435_v35 }
 0x72b   : > { %v2448_v13 = vmul.f32 %v2447_v58, %v5148_v55  ;;  %v5163_v20 = vadd.f32 %v2412_v18, %v2392_v12  ;;  %v2473_v30 = vmul.f32 2.1237322e-06, %v5160_v26  ;;  %v2484_v15 = vmul.f32 3.8918573e-05, %v5160_v26 }
 0x72c   : > { %v2287_v24 = vpop.f32.mrf.mxu2  ;;  %v2437_v63 = vmul.f32 %v2436_v52, %v5148_v55 }
 0x72d   : > { %v2449_v7 = vadd.f32 0.112945676, %v2448_v13  ;;  %v2293_v25 = vadd.f32 %v2287_v24, %v2243_v19  ;;  %v2474_v31 = vadd.f32 0.00028619796, %v2473_v30  ;;  %v2485_v9 = vadd.f32 0.001143296, %v2484_v15 }
 0x72e   : > { %v5168_v23 = vmul.f32 0.70710677, %v5163_v20  ;;  %v2438_v58 = vadd.f32 0.05243302, %v2437_v63 }
 0x72f   : > { %v2450_v44 = vmul.f32 %v2449_v7, %v5148_v55  ;;  %v2343_v33 = vadd.f32 %v2337_v32, %v2293_v25  ;;  %v2486_v36 = vmul.f32 %v2485_v9, %v5160_v26  ;;  %v2475_v46 = vmul.f32 %v2474_v31, %v5160_v26 }
 0x730   : > { %v2511_v16 = vmul.f32 %v5168_v23, %v5168_v23  ;;  %v2439_v9 = vmul.f32 %v2438_v58, %v5148_v55 }
 0x731   : > { %v2451_v38 = vadd.f32 0.4994258, %v2450_v44  ;;  %v2393_v40 = vadd.f32 %v2387_v27, %v2343_v33  ;;  %v2487_v39 = vadd.f32 0.014752088, %v2486_v36  ;;  %v2476_v54 = vadd.f32 0.0036580483, %v2475_v46 }
 0x732   : > { %v5176_v42 = vmin.f32 %v2511_v16, 16.0 }
 0x733   : > { %v2452_v48 = vmul.f32 %v2451_v38, %v5148_v55  ;;  %v5179_v50 = vadd.f32 %v2417_v2, %v2393_v40  ;;  %v2488_v21 = vmul.f32 %v2487_v39, %v5160_v26  ;;  %v2477_v53 = vmul.f32 %v2476_v54, %v5160_v26 }
 0x734   : > { %v2513_v45 = vmul.f32 2.1237322e-06, %v5176_v42  ;;  %v2524_v57 = vmul.f32 3.8918573e-05, %v5176_v42  ;;  %v2440_v40 = vadd.f32 0.18741608, %v2439_v9 }
 0x735   : > { %v5183_v56 = vadd.f32 1.0, %v2452_v48  ;;  %v5187_v59 = vmul.f32 0.70710677, %v5179_v50  ;;  %v2489_v61 = vadd.f32 0.112945676, %v2488_v21 }
 0x736   : > { %v2514_v43 = vadd.f32 0.00028619796, %v2513_v45  ;;  %v2525_v49 = vadd.f32 0.001143296, %v2524_v57  ;;  %v2478_v22 = vadd.f32 0.05243302, %v2477_v53 }
 0x737   : > { %4277 = vrcp.f32 %v5183_v56  ;;  %v2490_v0 = vmul.f32 %v2489_v61, %v5160_v26  ;;  %v2551_v29 = vmul.f32 %v5187_v59, %v5187_v59  ;;  %vm2459_vm13 = vweird.f32 %v5183_v56 }
 0x738   : > { %v2515_v11 = vmul.f32 %v2514_v43, %v5176_v42  ;;  %v2526_v6 = vmul.f32 %v2525_v49, %v5176_v42  ;;  %v2479_v35 = vmul.f32 %v2478_v22, %v5160_v26  ;;  %v2441_v43 = vmul.f32 %v2440_v40, %v5148_v55 }
 0x739   : > { %v2491_v1 = vadd.f32 0.4994258, %v2490_v0  ;;  %v5197_v37 = vmin.f32 %v2551_v29, 16.0  ;;  %v2465_v0 = vand.u32 2147483648, %v5183_v56 }
 0x73a   : > { %v2527_v18 = vadd.f32 0.014752088, %v2526_v6  ;;  %v2516_v15 = vadd.f32 0.0036580483, %v2515_v11  ;;  %v2480_v52 = vadd.f32 0.18741608, %v2479_v35 }
 0x73b   : > { %v2492_v10 = vmul.f32 %v2491_v1, %v5160_v26  ;;  %v2553_v13 = vmul.f32 2.1237322e-06, %v5197_v37  ;;  %v2564_v19 = vmul.f32 3.8918573e-05, %v5197_v37 }
 0x73c   : > { %v2528_v24 = vmul.f32 %v2527_v18, %v5176_v42  ;;  %v2517_v36 = vmul.f32 %v2516_v15, %v5176_v42  ;;  %v2481_v1 = vmul.f32 %v2480_v52, %v5160_v26 }
 0x73d   : > { %v5200_v12 = vpop.eup %4277  ;;  %v2493_v30 = vadd.f32 1.0, %v2492_v10  ;;  %v2554_v7 = vadd.f32 0.00028619796, %v2553_v13  ;;  %v2565_v25 = vadd.f32 0.001143296, %v2564_v19 }
 0x73e   : > { %v2455_v31 = vmul.f32 %v5200_v12, %v5183_v56  ;;  %v2529_v32 = vadd.f32 0.112945676, %v2528_v24  ;;  %v2518_v45 = vadd.f32 0.05243302, %v2517_v36  ;;  %vm2460_vm4 = vweird.f32 %v5200_v12 }
 0x73f   : > { %4279 = vrcp.f32 %v2493_v30  ;;  %v2555_v44 = vmul.f32 %v2554_v7, %v5197_v37  ;;  %v2566_v33 = vmul.f32 %v2565_v25, %v5197_v37  ;;  %v2505_v10 = vand.u32 2147483648, %v2493_v30  ;;  %vm5230_vm15 = vmor %vm2459_vm13, %vm2460_vm4 }
 0x740   : > { %v2530_v16 = vmul.f32 %v2529_v32, %v5176_v42  ;;  %v2456_v27 = vsub.f32 1.0, %v2455_v31  ;;  %v2519_v6 = vmul.f32 %v2518_v45, %v5176_v42  ;;  %vm2499_vm12 = vweird.f32 %v2493_v30 }
 0x741   : > { %v2567_v38 = vadd.f32 0.014752088, %v2566_v33  ;;  %v2556_v39 = vadd.f32 0.0036580483, %v2555_v44  ;;  %v2503_v18 = vand.u32 2147483647, %v2493_v30 }
 0x742   : > { %v2531_v2 = vadd.f32 0.4994258, %v2530_v16  ;;  %v2457_v57 = vmul.f32 %v5200_v12, %v2456_v27  ;;  %v2463_v19 = vand.u32 2147483647, %v5183_v56  ;;  %v2482_v24 = vadd.f32 1.1283791, %v2481_v1 }
 0x743   : > { %v2568_v48 = vmul.f32 %v2567_v38, %v5197_v37  ;;  %v2557_v29 = vmul.f32 %v2556_v39, %v5197_v37  ;;  %v2520_v25 = vadd.f32 0.18741608, %v2519_v6  ;;  %v2442_v31 = vadd.f32 1.1283791, %v2441_v43 }
 0x744   : > { %v2532_v54 = vmul.f32 %v2531_v2, %v5176_v42  ;;  %v2458_v58 = vadd.f32 %v5200_v12, %v2457_v57  ;;  %v2506_v9 = vor.u32 1.1754944e-38, %v2505_v10  ;;  %v2466_v32 = vor.u32 1.1754944e-38, %v2465_v0 }
 0x745   : > { %v4280_v46 = vpop.eup %4279  ;;  %v2569_v61 = vadd.f32 0.112945676, %v2568_v48  ;;  %v2558_v22 = vadd.f32 0.05243302, %v2557_v29  ;;  %vm2504_vm1 = vcmp.eq.f32.partialorder %v2503_v18, 8.507059e+37  ;;  %vm2464_vm2 = vcmp.eq.f32.partialorder %v2463_v19, 8.507059e+37 }
 0x746   : > { %v2495_v21 = vmul.f32 %v4280_v46, %v2493_v30  ;;  %v2533_v49 = vadd.f32 1.0, %v2532_v54  ;;  %vm2500_vm3 = vweird.f32 %v4280_v46  ;;  %v2462_v56 = vsel %vm5230_vm15, %v5200_v12, %v2458_v58 }
 0x747   : > { %v2570_v53 = vmul.f32 %v2569_v61, %v5197_v37  ;;  %vm5226_vm14 = vmor %vm2499_vm12, %vm2500_vm3  ;;  %v2559_v36 = vmul.f32 %v2558_v22, %v5197_v37  ;;  %v2467_v16 = vsel %vm2464_vm2, %v2466_v32, %v2462_v56  ;;  %v2483_v27 = vmul.f32 %v2482_v24, %v5154_v4 }
 0x748   : > { %v2496_v63 = vsub.f32 1.0, %v2495_v21  ;;  %4281 = vrcp.f32 %v2533_v49  ;;  %v2521_v38 = vmul.f32 %v2520_v25, %v5176_v42  ;;  %v2443_v2 = vmul.f32 %v2442_v31, %v5144_v47 }
 0x749   : > { %v2571_v13 = vadd.f32 0.4994258, %v2570_v53  ;;  %v2545_v48 = vand.u32 2147483648, %v2533_v49  ;;  %v2560_v52 = vadd.f32 0.18741608, %v2559_v36  ;;  %vm2539_vm4 = vweird.f32 %v2533_v49 }
 0x74a   : > { %v2497_v11 = vmul.f32 %v4280_v46, %v2496_v63  ;;  %v2468_v39 = vmul.f32 %v2467_v16, %v2443_v2  ;;  %v2522_v21 = vadd.f32 1.1283791, %v2521_v38  ;;  %v2543_v57 = vand.u32 2147483647, %v2533_v49 }
 0x74b   : > { %v2572_v30 = vmul.f32 %v2571_v13, %v5197_v37  ;;  %v2546_v42 = vor.u32 1.1754944e-38, %v2545_v48  ;;  %v2561_v63 = vmul.f32 %v2560_v52, %v5197_v37  ;;  %v2424_v10 = vmul.f32 0.5, %v5151_v51 }
 0x74c   : > { %v2498_v55 = vadd.f32 %v4280_v46, %v2497_v11  ;;  %v3734_v4 = vclamps-f32 %v2468_v39, 1.0  ;;  %v2523_v47 = vmul.f32 %v2522_v21, %v5168_v23  ;;  %vm2544_vm13 = vcmp.eq.f32.partialorder %v2543_v57, 8.507059e+37 }
 0x74d   : > { %v2573_v44 = vadd.f32 1.0, %v2572_v30  ;;  %v2423_v37 = vmul.f32 0.5, %v5141_v34  ;;  %v2425_v23 = vmul.f32 0.5, %v5163_v20 }
 0x74e   : > { %v2502_v7 = vsel %vm5226_vm14, %v4280_v46, %v2498_v55  ;;  %v4282_v33 = vpop.eup %4281  ;;  %v2591_v58 = vadd.f32 1.0, %v3734_v4  ;;  %v2562_v55 = vadd.f32 1.1283791, %v2561_v63 }
 0x74f   : > { %v2507_v35 = vsel %vm2504_vm1, %v2506_v9, %v2502_v7  ;;  %v2535_v40 = vmul.f32 %v4282_v33, %v2533_v49  ;;  %4283 = vrcp.f32 %v2573_v44  ;;  %vm2540_vm3 = vweird.f32 %v4282_v33 }
 0x750   : > { %v2508_v46 = vmul.f32 %v2507_v35, %v2483_v27  ;;  %vm2541_vm12 = vmor %vm2539_vm4, %vm2540_vm3  ;;  %v2585_v49 = vand.u32 2147483648, %v2573_v44  ;;  %v2583_v19 = vand.u32 2147483647, %v2573_v44  ;;  %vm2579_vm15 = vweird.f32 %v2573_v44 }
 0x751   : > { %v2536_v12 = vsub.f32 1.0, %v2535_v40  ;;  %v2595_v24 = vmul.f32 %v2591_v58, %v2423_v37  ;;  %v2563_v51 = vmul.f32 %v2562_v55, %v5187_v59 }
 0x752   : > { %v3735_v54 = vclamps-f32 %v2508_v46, 1.0  ;;  %v2586_v7 = vor.u32 1.1754944e-38, %v2585_v49  ;;  %vm2584_vm2 = vcmp.eq.f32.partialorder %v2583_v19, 8.507059e+37 }
 0x753   : > { %v2537_v45 = vmul.f32 %v4282_v33, %v2536_v12  ;;  %v5254_v34 = vadd.f32 %v2595_v24, %v5027_v3 }
 0x754   : > { %v2592_v1 = vadd.f32 1.0, %v3735_v54 }
 0x755   : > { %v2538_v61 = vadd.f32 %v4282_v33, %v2537_v45  ;;  %v4284_v43 = vpop.eup %4283  ;;  %v2603_v35 = vsel %vm336_vm0, %v5254_v34, 0.0 }
 0x756   : > { %v2575_v29 = vmul.f32 %v4284_v43, %v2573_v44  ;;  %vm2580_vm14 = vweird.f32 %v4284_v43  ;;  %v2596_v26 = vmul.f32 %v2592_v1, %v2424_v10 }
 0x757   : > { %v2542_v0 = vsel %vm2541_vm12, %v4282_v33, %v2538_v61  ;;  %vm2581_vm1 = vmor %vm2579_vm15, %vm2580_vm14  ;;  %v2426_v33 = vmul.f32 0.5, %v5179_v50 }
 0x758   : > { %v2547_v53 = vsel %vm2544_vm13, %v2546_v42, %v2542_v0  ;;  %v2576_v6 = vsub.f32 1.0, %v2575_v29  ;;  %v5251_v56 = vadd.f32 %v2596_v26, %v5024_v17 }
 0x759   : > { %v2548_v11 = vmul.f32 %v2547_v53, %v2523_v47 }
 0x75a   : > { %v2577_v13 = vmul.f32 %v4284_v43, %v2576_v6  ;;  %v2604_v44 = vsel %vm336_vm0, %v5251_v56, 0.0 }
 0x75b   : > { %v3736_v18 = vclamps-f32 %v2548_v11, 1.0  ;;  %v2605_v16 = vadd.f32 %v2604_v44, %v2603_v35  ;;  %v3745_v44 = vld [vmem:[%s4556_s14 + $0xf8] sm:$0xff] }
 0x75c   : > { %v2578_v15 = vadd.f32 %v4284_v43, %v2577_v13 }
 0x75d   : > { %v2593_v22 = vadd.f32 1.0, %v3736_v18 }
 0x75e   : > { %v2582_v30 = vsel %vm2581_vm1, %v4284_v43, %v2578_v15 }
 0x75f   : > { %v2597_v25 = vmul.f32 %v2593_v22, %v2425_v23  ;;  %v2587_v31 = vsel %vm2584_vm2, %v2586_v7, %v2582_v30  ;;  %v3740_v30 = vld [vmem:[%s4556_s14 + $0xd0] sm:$0xff] }
 0x760   : > { %v2588_v9 = vmul.f32 %v2587_v31, %v2563_v51  ;;  %v3741_v51 = vld [vmem:[%s4556_s14 + $0xd8] sm:$0xff] }
 0x761   : > { %v5257_v20 = vadd.f32 %v2597_v25, %v5030_v41 }
 0x762   : > { %v3737_v32 = vclamps-f32 %v2588_v9, 1.0 }
 0x763   : > { %v2606_v17 = vsel %vm336_vm0, %v5257_v20, 0.0 }
 0x764   : > { %v2594_v59 = vadd.f32 1.0, %v3737_v32  ;;  %v2607_v41 = vadd.f32 %v2606_v17, %v2605_v16  ;;  %v3739_v16 = vld [vmem:[%s4556_s14 + $0xc8] sm:$0xff] }
 0x766   : > { %v2598_v36 = vmul.f32 %v2594_v59, %v2426_v33  ;;  %v3744_v33 = vld [vmem:[%s4556_s14 + $0xf0] sm:$0xff] }
 0x768   : > { %v5267_v3 = vadd.f32 %v2598_v36, %v5040_v14  ;;  %v3738_v36 = vld [vmem:[%s4556_s14 + $0xc0] sm:$0xff] }
 0x76a   : > { %v2608_v27 = vsel %vm336_vm0, %v5267_v3, 0.0 }
 0x76b   : > { %v2609_v38 = vadd.f32 %v2608_v27, %v2607_v41 }
 0x76d   : > { %v2610_v40 = vrot.slane %v2609_v38, 4 }
 0x76f   : > { %v2611_v2 = vadd.f32 %v2610_v40, %v2609_v38 }
 0x771   : > { %v2612_v50 = vrot.slane %v2611_v2, 2 }
 0x773   : > { %v2613_v46 = vadd.f32 %v2612_v50, %v2611_v2  ;;  %v3742_v50 = vld [vmem:[%s4556_s14 + $0xe0] sm:$0xff] }
 0x775   : > { %v2614_v12 = vrot.slane %v2613_v46, 1 }
 0x777   : > { %v2615_v39 = vadd.f32 %v2614_v12, %v2613_v46 }
 0x779   : > { %v2616_v48 = vmul.f32 %v2615_v39, %v4584_v28 }
 0x77b   : > { %v2617_v52 = vsub.f32 %v5254_v34, %v2616_v48  ;;  %v2618_v21 = vsub.f32 %v5251_v56, %v2616_v48  ;;  %v2619_v14 = vsub.f32 %v5257_v20, %v2616_v48  ;;  %v2620_v45 = vsub.f32 %v5267_v3, %v2616_v48 }
 0x77d   : > { %v2621_v57 = vmul.f32 %v2617_v52, %v2617_v52  ;;  %v2622_v54 = vmul.f32 %v2618_v21, %v2618_v21  ;;  %v2623_v61 = vmul.f32 %v2619_v14, %v2619_v14  ;;  %v2624_v43 = vmul.f32 %v2620_v45, %v2620_v45 }
 0x77f   : > { %v2625_v4 = vsel %vm336_vm0, %v2621_v57, 0.0  ;;  %v2626_v42 = vsel %vm336_vm0, %v2622_v54, 0.0  ;;  %v2628_v47 = vsel %vm336_vm0, %v2623_v61, 0.0  ;;  %v2630_v0 = vsel %vm336_vm0, %v2624_v43, 0.0 }
 0x780   : > { %v2627_v63 = vadd.f32 %v2626_v42, %v2625_v4 }
 0x782   : > { %v2629_v28 = vadd.f32 %v2628_v47, %v2627_v63 }
 0x784   : > { %v2631_v29 = vadd.f32 %v2630_v0, %v2629_v28 }
 0x786   : > { %v2632_v53 = vrot.slane %v2631_v29, 4 }
 0x788   : > { %v2633_v1 = vadd.f32 %v2632_v53, %v2631_v29 }
 0x78a   : > { %v2634_v11 = vrot.slane %v2633_v1, 2 }
 0x78c   : > { %v2635_v6 = vadd.f32 %v2634_v11, %v2633_v1 }
 0x78e   : > { %v2636_v58 = vrot.slane %v2635_v6, 1 }
 0x790   : > { %v2637_v10 = vadd.f32 %v2636_v58, %v2635_v6 }
 0x792   : > { %v2638_v55 = vmul.f32 0.032258064, %v2637_v10 }
 0x794   : > { %v2639_v49 = vadd.f32 0.0001, %v2638_v55 }
 0x796   : > { %4285 = vrsqrt.f32 %v2639_v49  ;;  %vm2646_vm4 = vweird.f32 %v2639_v49 }
 0x79c   : > { %v4286_v18 = vpop.eup %4285 }
 0x79d   : > { %v2641_v13 = vmul.f32 %v4286_v18, %v2639_v49  ;;  %vm2647_vm3 = vweird.f32 %v4286_v18 }
 0x79e   : > { %vm2648_vm12 = vmor %vm2646_vm4, %vm2647_vm3 }
 0x79f   : > { %v2642_v19 = vmul.f32 %v4286_v18, %v2641_v13 }
 0x7a1   : > { %v2643_v37 = vmul.f32 0.5, %v2642_v19 }
 0x7a3   : > { %v2644_v23 = vsub.f32 1.5, %v2643_v37 }
 0x7a5   : > { %v2645_v26 = vmul.f32 %v4286_v18, %v2644_v23 }
 0x7a7   : > { %v2649_v22 = vsel %vm2648_vm12, %v4286_v18, %v2645_v26 }
 0x7a8   : > { %v2650_v15 = vmul.f32 %v2649_v22, %v2617_v52  ;;  %v2651_v24 = vmul.f32 %v2649_v22, %v2618_v21  ;;  %v2652_v7 = vmul.f32 %v2649_v22, %v2619_v14  ;;  %v2653_v25 = vmul.f32 %v2649_v22, %v2620_v45 }
 0x7aa   : > { %v2656_v31 = vadd.f32 %v2652_v7, %v4591_v60  ;;  %v2657_v9 = vadd.f32 %v2653_v25, %v4598_v5  ;;  %v2654_v32 = vadd.f32 %v2650_v15, %v4593_v62  ;;  %v2655_v59 = vadd.f32 %v2651_v24, %v4601_v8  ;;  %v3743_v60 = vld [vmem:[%s4556_s14 + $0xe8] sm:$0xff] }
 0x7ac   : > { %v2670_v35 = vmul.f32 %v3741_v51, %v2657_v9  ;;  %v2669_v17 = vmul.f32 %v3740_v30, %v2656_v31  ;;  %v2667_v38 = vmul.f32 %v3738_v36, %v2654_v32  ;;  %v2668_v2 = vmul.f32 %v3739_v16, %v2655_v59 }
 0x7ae   : > { %v2674_v41 = vadd.f32 %v3745_v44, %v2670_v35  ;;  %v2673_v27 = vadd.f32 %v3744_v33, %v2669_v17  ;;  %v2671_v62 = vadd.f32 %v3742_v50, %v2667_v38  ;;  %v2672_v5 = vadd.f32 %v3743_v60, %v2668_v2 }
 0x7b0   : > { %v4193_v40 = vpack.i.bf16 %v2674_v41, %v2673_v27  ;;  %v4208_v8 = vpack.i.bf16 %v2672_v5, %v2671_v62 }
 0x7b2   : > { %4194 = vrot.lane.b32.xlu0 %v4193_v40, %s5559_s17  ;;  %4189 = vrot.lane.b32.xlu2 %v4193_v40, %s5560_s26 }
 0x7b3   : > { %4184 = vrot.lane.b32.xlu1 %v4193_v40, %s5561_s8 }
 0x7ba   : > { %4204 = vrot.lane.b32.xlu2 %v4193_v40, %s5562_s13  ;;  %4209 = vrot.lane.b32.xlu0 %v4208_v8, %s5561_s8 }
 0x7bb   : > { %4199 = vrot.lane.b32.xlu1 %v4193_v40, %s5551_s29 }
 0x7c2   : > { %4219 = vrot.lane.b32.xlu2 %v4193_v40, %s5552_s28  ;;  %4224 = vrot.lane.b32.xlu0 %v4208_v8, %s5559_s17  ;;  %s3888_s17 = sshll.u32 %s4475_s22, 5  ;;  %s3353_s22 = scalar_lea.sflag [#allocation4], %s4552_s10 }
 0x7c3   : > { %4214 = vrot.lane.b32.xlu1 %v4208_v8, %s5560_s26 }
 0x7ca   : > { %4234 = vrot.lane.b32.xlu2 %v4208_v8, %s5551_s29  ;;  %4239 = vrot.lane.b32.xlu0 %v4208_v8, %s5562_s13  ;;  %s3364_s13 = scalar_lea.hbm %s5513_s5, %s3888_s17 }
 0x7cb   : > { %4229 = vrot.lane.b32.xlu1 %v4193_v40, %s5553_s7  ;;  %s3367_s16 = sshll.u32 %s3364_s13, 4  ;;  %s3368_s16 = int_to_ptr.hbm [resolvable:$true] %s3367_s16 }
 0x7cc   : > { %s4343_s25 = sshra.s32 %s3368_s16, 4  ;;  %s4344_s25 = int_to_ptr.hbm [resolvable:$true] %s4343_s25 }
 0x7cd   : > { %s4345_s12 = scalar_lea.hbm %s4344_s25, 32  ;;  %p4350_p7 = scmp.lt.s32.totalorder %s4344_s25, %s5513_s5 }
 0x7ce   : > { %p4346_p4 = scmp.ne.s32.totalorder %s4344_s25, %s4345_s12  ;;  %p4351_p8 = scmp.lt.s32.totalorder %s4349_s2, %s4345_s12 }
 0x7d0   : > { %p4347_p5 = pnand %p4346_p4, %p4506_p11  ;;  %p4352_p9 = por %p4351_p8, %p4350_p7 }
 0x7d2   : > { %4249 = vrot.lane.b32.xlu2 %v4208_v8, %s5553_s7  ;;  %p4348_p6 = pneg %p4347_p5 }
 0x7d3   : > { %4244 = vrot.lane.b32.xlu1 %v4208_v8, %s5552_s28 }
 0x7d4   : > { %p4353_p10 = pnand %p4352_p9, %p4348_p6 }
 0x80c   : > { %v4190_v46 = vpop.permute.xlu2 %4189 }
 0x80d   : > { %v4192_v54 = vunpack.i.h.bf16 %v4190_v46  ;;  %v4191_v61 = vunpack.i.l.bf16 %v4190_v46 }
 0x814   : > { %v4205_v48 = vpop.permute.xlu2 %4204 }
 0x815   : > { %v4207_v58 = vunpack.i.h.bf16 %v4205_v48  ;;  %v4206_v10 = vunpack.i.l.bf16 %v4205_v48 }
 0x81c   : > { %v4220_v14 = vpop.permute.xlu2 %4219 }
 0x81d   : > { %v4222_v37 = vunpack.i.h.bf16 %v4220_v14  ;;  %v4221_v23 = vunpack.i.l.bf16 %v4220_v14 }
 0x824   : > { %v4195_v12 = vpop.permute.xlu0 %4194  ;;  %v4235_v55 = vpop.permute.xlu2 %4234 }
 0x825   : > { %v4185_v39 = vpop.permute.xlu1 %4184  ;;  %v4197_v43 = vunpack.i.h.bf16 %v4195_v12  ;;  %v4196_v4 = vunpack.i.l.bf16 %v4195_v12  ;;  %v4237_v2 = vunpack.i.h.bf16 %v4235_v55  ;;  %v4236_v50 = vunpack.i.l.bf16 %v4235_v55 }
 0x826   : > { %v4187_v45 = vunpack.i.h.bf16 %v4185_v39  ;;  %v4186_v57 = vunpack.i.l.bf16 %v4185_v39 }
 0x828   : > { %v2766_v42 = vsel %vm523_vm5, %v4187_v45, %v4192_v54  ;;  %v2765_v63 = vsel %vm523_vm5, %v4186_v57, %v4191_v61 }
 0x829   : > { %v2769_v53 = vsel %vm528_vm6, %v2765_v63, %v4196_v4  ;;  %v2770_v1 = vsel %vm528_vm6, %v2766_v42, %v4197_v43 }
 0x82c   : > { %v4210_v52 = vpop.permute.xlu0 %4209  ;;  %v4250_v60 = vpop.permute.xlu2 %4249 }
 0x82d   : > { %v4200_v21 = vpop.permute.xlu1 %4199  ;;  %v4212_v26 = vunpack.i.h.bf16 %v4210_v52  ;;  %v4211_v22 = vunpack.i.l.bf16 %v4210_v52  ;;  %v4252_v48 = vunpack.i.h.bf16 %v4250_v60  ;;  %v4251_v52 = vunpack.i.l.bf16 %v4250_v60 }
 0x82e   : > { %v4202_v47 = vunpack.i.h.bf16 %v4200_v21  ;;  %v4201_v28 = vunpack.i.l.bf16 %v4200_v21 }
 0x830   : > { %v2773_v11 = vsel %vm533_vm7, %v2769_v53, %v4201_v28  ;;  %v2774_v6 = vsel %vm533_vm7, %v2770_v1, %v4202_v47  ;;  %v3817_v28 = vld [vmem:[%s5512_s4 + $0x68] sm:$0xff]  ;;  %v3818_v53 = vld [vmem:[%s5512_s4 + $0x70] sm:$0xff] }
 0x831   : > { %v2777_v13 = vsel %vm538_vm8, %v2773_v11, %v4206_v10  ;;  %v2778_v19 = vsel %vm538_vm8, %v2774_v6, %v4207_v58  ;;  %v3874_v1 = vld [vmem:[#allocation5 + $0x150] sm:$0xff]  ;;  %v3875_v6 = vld [vmem:[#allocation5 + $0x158] sm:$0xff] }
 0x832   : > { %v2781_v9 = vsel %vm543_vm9, %v2777_v13, %v4221_v23  ;;  %v2782_v32 = vsel %vm543_vm9, %v2778_v19, %v4222_v37  ;;  %v3876_v19 = vld [vmem:[#allocation5 + $0x160] sm:$0xff] }
 0x833   : > { %v3884_v23 = vld [vmem:[#allocation5 + $0x1a0] sm:$0xff] }
 0x834   : > { %v4225_v29 = vpop.permute.xlu0 %4224 }
 0x835   : > { %v4215_v0 = vpop.permute.xlu1 %4214  ;;  %v4227_v24 = vunpack.i.h.bf16 %v4225_v29  ;;  %v4226_v7 = vunpack.i.l.bf16 %v4225_v29  ;;  %v3819_v29 = vld [vmem:[%s5512_s4 + $0x78] sm:$0xff] }
 0x836   : > { %v4217_v49 = vunpack.i.h.bf16 %v4215_v0  ;;  %v4216_v18 = vunpack.i.l.bf16 %v4215_v0  ;;  %v3816_v0 = vld [vmem:[%s5512_s4 + $0x60] sm:$0xff] }
 0x838   : > { %v2763_v30 = vsel %vm523_vm5, %v4211_v22, %v4216_v18  ;;  %v2764_v31 = vsel %vm523_vm5, %v4212_v26, %v4217_v49  ;;  %v3878_v49 = vld [vmem:[#allocation5 + $0x170] sm:$0xff] }
 0x839   : > { %v2767_v36 = vsel %vm528_vm6, %v2763_v30, %v4226_v7  ;;  %v2768_v16 = vsel %vm528_vm6, %v2764_v31, %v4227_v24  ;;  %v3879_v24 = vld [vmem:[#allocation5 + $0x178] sm:$0xff]  ;;  %v3880_v30 = vld [vmem:[#allocation5 + $0x180] sm:$0xff]  ;;  %v3885_v31 = vld [vmem:[#allocation5 + $0x1a8] sm:$0xff] }
 0x83a   : > { %v2771_v8 = vsel %vm533_vm7, %v2767_v36, %v4236_v50  ;;  %v2772_v46 = vsel %vm533_vm7, %v2768_v16, %v4237_v2 }
 0x83c   : > { %v4240_v59 = vpop.permute.xlu0 %4239 }
 0x83d   : > { %v4230_v15 = vpop.permute.xlu1 %4229  ;;  %v4242_v38 = vunpack.i.h.bf16 %v4240_v59  ;;  %v4241_v40 = vunpack.i.l.bf16 %v4240_v59  ;;  %v3883_v59 = vld [vmem:[#allocation5 + $0x198] sm:$0xff] }
 0x83e   : > { %v4232_v25 = vunpack.i.h.bf16 %v4230_v15  ;;  %v4231_v51 = vunpack.i.l.bf16 %v4230_v15 }
 0x83f   : > { %v2775_v21 = vsel %vm538_vm8, %v2771_v8, %v4241_v40  ;;  %v2776_v14 = vsel %vm538_vm8, %v2772_v46, %v4242_v38 }
 0x840   : > { %v2786_v44 = vsel %vm548_vm10, %v2782_v32, %v4232_v25  ;;  %v2785_v33 = vsel %vm548_vm10, %v2781_v9, %v4231_v51  ;;  %v3877_v51 = vld [vmem:[#allocation5 + $0x168] sm:$0xff]  ;;  %v3886_v9 = vld [vmem:[#allocation5 + $0x1b0] sm:$0xff] }
 0x841   : > { %v2790_v35 = vpack.c.bf16 %v2786_v44, %v2786_v44  ;;  %v2789_v17 = vpack.c.bf16 %v2785_v33, %v2785_v33  ;;  %v3882_v32 = vld [vmem:[#allocation5 + $0x190] sm:$0xff]  ;;  %v3881_v44 = vld [vmem:[#allocation5 + $0x188] sm:$0xff]  ;;  %v3887_v33 = vld [vmem:[#allocation5 + $0x1b8] sm:$0xff] }
 0x843   : > { %v2818_v41 = vunpack.c.l.b16 %v2790_v35  ;;  %v2817_v27 = vunpack.c.l.b16 %v2789_v17 }
 0x845   : > { %v2820_v62 = vpack.c.b16 %v2818_v41, %v2817_v27  ;;  %v4245_v5 = vpop.permute.xlu1 %4244 }
 0x846   : > { %v4247_v12 = vunpack.i.h.bf16 %v4245_v5  ;;  %v4246_v39 = vunpack.i.l.bf16 %v4245_v5 }
 0x847   : > { %2823 = vrot.lane.b32.xlu1 %v2820_v62, %s5560_s26  ;;  %2876 = vmatpush.bf16.msrb.mxu2 %v2820_v62 }
 0x848   : > { %v2779_v45 = vsel %vm543_vm9, %v2775_v21, %v4246_v39  ;;  %v2780_v57 = vsel %vm543_vm9, %v2776_v14, %v4247_v12  ;;  %2906 = vrot.lane.b32.xlu0 %v2820_v62, %s5554_s23 }
 0x849   : > { %v2783_v54 = vsel %vm548_vm10, %v2779_v45, %v4251_v52  ;;  %v2784_v61 = vsel %vm548_vm10, %v2780_v57, %v4252_v48 }
 0x84a   : > { %v2787_v43 = vpack.c.bf16 %v2783_v54, %v2783_v54  ;;  %v2788_v4 = vpack.c.bf16 %v2784_v61, %v2784_v61 }
 0x84c   : > { %v2815_v42 = vunpack.c.l.b16 %v2787_v43  ;;  %v2816_v63 = vunpack.c.l.b16 %v2788_v4 }
 0x84e   : > { %v2819_v47 = vpack.c.b16 %v2816_v63, %v2815_v42 }
 0x84f   : > { %3056 = vrot.lane.b32.xlu1 %v2820_v62, %s5568_s0 }
 0x850   : > { %2821 = vrot.lane.b32.xlu0 %v2819_v47, %s5560_s26  ;;  %2904 = vrot.lane.b32.xlu2 %v2819_v47, %s5554_s23 }
 0x851   : > { %2877 = vmatpush.bf16.msrb.mxu2 %v2819_v47 }
 0x854   : > { %3764 = vmatmul.msk.bf16.vlgmr.msrb.gmra.mxu2 %vm592_vm11, %v3874_v1 }
 0x857   : > { %3006 = vrot.lane.b32.xlu1 %v2820_v62, %s4419_s15 }
 0x858   : > { %3106 = vrot.lane.b32.xlu0 %v2820_v62, %s5563_s9  ;;  %2956 = vrot.lane.b32.xlu2 %v2820_v62, %s5561_s8 }
 0x85f   : > { %3104 = vrot.lane.b32.xlu1 %v2819_v47, %s5563_s9 }
 0x860   : > { %2954 = vrot.lane.b32.xlu0 %v2819_v47, %s5561_s8  ;;  %3054 = vrot.lane.b32.xlu2 %v2819_v47, %s5568_s0 }
 0x864   : > { %3765 = vmatmul.msk.bf16.gmra.mxu2 %vm592_vm11, %v3875_v6 }
 0x867   : > { %3151 = vperm.xlu1 %3971, %v3817_v28  }
 0x868   : > { %3146 = vperm.xlu0 %3970, %v3816_v0   ;;  %3004 = vrot.lane.b32.xlu2 %v2819_v47, %s4419_s15  ;;  %s3487_s15 = sshll.u32 %s4552_s10, 5 }
 0x869   : > { %s5453_s23 = scalar_lea.vmem [#allocation7], %s3487_s15 }
 0x86a   : > { %s3365_s9 = sshll.u32 %s5453_s23, 4  ;;  %s3366_s9 = int_to_ptr.vmem [resolvable:$true] %s3365_s9 }
 0x870   : > { %3161 = vperm.xlu0 %3970, %v3819_v29   ;;  %3156 = vperm.xlu2 %4042, %v3818_v53  }
 0x8aa   : > { %v2905_v11 = vpop.permute.xlu2 %2904 }
 0x8b2   : > { %v2957_v58 = vpop.permute.xlu2 %2956 }
 0x8b3   : > { %2972 = vmatpush.bf16.msra.mxu0 %v2957_v58 }
 0x8b9   : > { %v2824_v10 = vpop.permute.xlu1 %2823 }
 0x8ba   : > { %v2907_v55 = vpop.permute.xlu0 %2906  ;;  %2839 = vmatpush.bf16.msrb.mxu1 %v2824_v10  ;;  %v3055_v37 = vpop.permute.xlu2 %3054 }
 0x8bb   : > { %2922 = vmatpush.bf16.msrb.mxu3 %v2907_v55 }
 0x8bf   : > { %2923 = vmatpush.bf16.msrb.mxu3 %v2905_v11 }
 0x8c1   : > { %v3057_v18 = vpop.permute.xlu1 %3056 }
 0x8c2   : > { %v2822_v13 = vpop.permute.xlu0 %2821  ;;  %3072 = vmatpush.bf16.msra.mxu2 %v3057_v18  ;;  %3774 = vmatmul.msk.bf16.vlgmr.msrb.gmra.mxu3 %vm592_vm11, %v3878_v49  ;;  %v3005_v15 = vpop.permute.xlu2 %3004 }
 0x8c3   : > { %2840 = vmatpush.bf16.msrb.mxu1 %v2822_v13 }
 0x8c6   : > { %3754 = vmatmul.msk.bf16.vlgmr.msrb.gmra.mxu1 %vm592_vm11, %v3876_v19  ;;  %3073 = vmatpush.bf16.msra.mxu2 %v3055_v37 }
 0x8c9   : > { %v3007_v26 = vpop.permute.xlu1 %3006  ;;  %3804 = vmatmul.msk.bf16.vlgmr.msra.gmra.mxu2 %vm592_vm11, %v3884_v23 }
 0x8ca   : > { %3022 = vmatpush.bf16.msra.mxu1 %v3007_v26  ;;  %v3107_v22 = vpop.permute.xlu0 %3106 }
 0x8cb   : > { %3122 = vmatpush.bf16.msra.mxu3 %v3107_v22 }
 0x8ce   : > { %3023 = vmatpush.bf16.msra.mxu1 %v3005_v15 }
 0x8d1   : > { %v3105_v7 = vpop.permute.xlu1 %3104 }
 0x8d2   : > { %v2955_v25 = vpop.permute.xlu0 %2954  ;;  %3123 = vmatpush.bf16.msra.mxu3 %v3105_v7 }
 0x8d3   : > { %2973 = vmatpush.bf16.msra.mxu0 %v2955_v25  ;;  %3775 = vmatmul.msk.bf16.gmra.mxu3 %vm592_vm11, %v3879_v24 }
 0x8d6   : > { %3755 = vmatmul.msk.bf16.gmra.mxu1 %vm592_vm11, %v3877_v51  ;;  %3784 = vmatmul.msk.bf16.vlgmr.msra.gmra.mxu0 %vm592_vm11, %v3880_v30 }
 0x8d7   : > { %v2879_v35 = vpop.f32.mrf.mxu2 }
 0x8d9   : > { %3805 = vmatmul.msk.bf16.gmra.mxu2 %vm592_vm11, %v3885_v31  ;;  %v3152_v49 = vpop.permute.xlu1 %3151 }
 0x8da   : > { %v3147_v43 = vpop.permute.xlu0 %3146 }
 0x8df   : > { %v2881_v17 = vpop.f32.mrf.mxu2 }
 0x8e3   : > { %3814 = vmatmul.msk.bf16.vlgmr.msra.gmra.mxu3 %vm592_vm11, %v3886_v9 }
 0x8e6   : > { %3794 = vmatmul.msk.bf16.vlgmr.msra.gmra.mxu1 %vm592_vm11, %v3882_v32  ;;  %3785 = vmatmul.msk.bf16.gmra.mxu0 %vm592_vm11, %v3881_v44 }
 0x8e7   : > { %v2884_v27 = vpop.f32.mrf.mxu2 }
 0x8ef   : > { %v2886_v2 = vpop.f32.mrf.mxu2 }
 0x8f3   : > { %3815 = vmatmul.msk.bf16.gmra.mxu3 %vm592_vm11, %v3887_v33 }
 0x8f6   : > { %3795 = vmatmul.msk.bf16.gmra.mxu1 %vm592_vm11, %v3883_v59 }
 0x943   : > { %v2842_v36 = vpop.f32.mrf.mxu1 }
 0x944   : > { %v2880_v5 = vadd.f32 %v2879_v35, %v2842_v36  ;;  %v3157_v36 = vpop.permute.xlu2 %3156 }
 0x945   : > { %v2925_v16 = vpop.f32.mrf.mxu3 }
 0x946   : > { %v2935_v12 = vadd.f32 %v2925_v16, %v2880_v5 }
 0x94b   : > { %v2844_v41 = vpop.f32.mrf.mxu1 }
 0x94c   : > { %v3075_v46 = vpop.f32.mrf.mxu2  ;;  %v2882_v21 = vadd.f32 %v2881_v17, %v2844_v41 }
 0x94d   : > { %v2927_v38 = vpop.f32.mrf.mxu3 }
 0x94e   : > { %v2936_v54 = vadd.f32 %v2927_v38, %v2882_v21 }
 0x953   : > { %v2847_v40 = vpop.f32.mrf.mxu1  ;;  %v2975_v60 = vpop.f32.mrf.mxu0 }
 0x954   : > { %v2985_v39 = vadd.f32 %v2975_v60, %v2935_v12  ;;  %v3077_v4 = vpop.f32.mrf.mxu2  ;;  %v2885_v28 = vadd.f32 %v2884_v27, %v2847_v40 }
 0x956   : > { %v2930_v50 = vpop.f32.mrf.mxu3 }
 0x957   : > { %v2937_v58 = vadd.f32 %v2930_v50, %v2885_v28 }
 0x95b   : > { %v2849_v62 = vpop.f32.mrf.mxu1  ;;  %v2977_v48 = vpop.f32.mrf.mxu0 }
 0x95c   : > { %v2986_v42 = vadd.f32 %v2977_v48, %v2936_v54  ;;  %v3080_v26 = vpop.f32.mrf.mxu2  ;;  %v2887_v22 = vadd.f32 %v2886_v2, %v2849_v62 }
 0x95e   : > { %v2932_v8 = vpop.f32.mrf.mxu3 }
 0x95f   : > { %v2938_v33 = vadd.f32 %v2932_v8, %v2887_v22 }
 0x963   : > { %v3025_v52 = vpop.f32.mrf.mxu1  ;;  %v2980_v53 = vpop.f32.mrf.mxu0 }
 0x964   : > { %v3035_v14 = vadd.f32 %v3025_v52, %v2985_v39  ;;  %v2987_v18 = vadd.f32 %v2980_v53, %v2937_v58  ;;  %v3082_v39 = vpop.f32.mrf.mxu2 }
 0x966   : > { %v3085_v45 = vadd.f32 %v3075_v46, %v3035_v14  ;;  %v3125_v57 = vpop.f32.mrf.mxu3 }
 0x968   : > { %v3135_v61 = vadd.f32 %v3125_v57, %v3085_v45 }
 0x96a   : > { %v5368_v63 = vadd.f32 %v3147_v43, %v3135_v61 }
 0x96b   : > { %v3027_v47 = vpop.f32.mrf.mxu1  ;;  %v2982_v32 = vpop.f32.mrf.mxu0 }
 0x96c   : > { %v5371_v0 = vmul.f32 0.70710677, %v5368_v63  ;;  %v3036_v29 = vadd.f32 %v3027_v47, %v2986_v42  ;;  %v2988_v27 = vadd.f32 %v2982_v32, %v2938_v33 }
 0x96e   : > { %v3176_v1 = vmul.f32 %v5371_v0, %v5371_v0  ;;  %v3086_v11 = vadd.f32 %v3077_v4, %v3036_v29  ;;  %v3127_v6 = vpop.f32.mrf.mxu3  ;;  %v3162_v4 = vpop.permute.xlu0 %3161 }
 0x970   : > { %v5375_v10 = vmin.f32 %v3176_v1, 16.0  ;;  %v3136_v55 = vadd.f32 %v3127_v6, %v3086_v11 }
 0x972   : > { %v3178_v13 = vmul.f32 2.1237322e-06, %v5375_v10  ;;  %v3189_v19 = vmul.f32 3.8918573e-05, %v5375_v10  ;;  %v5379_v37 = vadd.f32 %v3152_v49, %v3136_v55 }
 0x973   : > { %v3030_v23 = vpop.f32.mrf.mxu1 }
 0x974   : > { %v3179_v15 = vadd.f32 0.00028619796, %v3178_v13  ;;  %v3190_v24 = vadd.f32 0.001143296, %v3189_v19  ;;  %v3037_v7 = vadd.f32 %v3030_v23, %v2987_v18  ;;  %v5382_v25 = vmul.f32 0.70710677, %v5379_v37 }
 0x976   : > { %v3180_v51 = vmul.f32 %v3179_v15, %v5375_v10  ;;  %v3191_v30 = vmul.f32 %v3190_v24, %v5375_v10  ;;  %v3087_v31 = vadd.f32 %v3080_v26, %v3037_v7  ;;  %v3130_v9 = vpop.f32.mrf.mxu3  ;;  %v3216_v44 = vmul.f32 %v5382_v25, %v5382_v25 }
 0x978   : > { %v3181_v59 = vadd.f32 0.0036580483, %v3180_v51  ;;  %v3192_v35 = vadd.f32 0.014752088, %v3191_v30  ;;  %v3137_v17 = vadd.f32 %v3130_v9, %v3087_v31  ;;  %v5388_v16 = vmin.f32 %v3216_v44, 16.0 }
 0x97a   : > { %v3193_v41 = vmul.f32 %v3192_v35, %v5375_v10  ;;  %v5391_v38 = vadd.f32 %v3157_v36, %v3137_v17  ;;  %v3182_v40 = vmul.f32 %v3181_v59, %v5375_v10  ;;  %v3218_v2 = vmul.f32 2.1237322e-06, %v5388_v16 }
 0x97b   : > { %v3229_v50 = vmul.f32 3.8918573e-05, %v5388_v16  ;;  %v3032_v60 = vpop.f32.mrf.mxu1 }
 0x97c   : > { %v3194_v62 = vadd.f32 0.112945676, %v3193_v41  ;;  %v3038_v5 = vadd.f32 %v3032_v60, %v2988_v27  ;;  %v3219_v8 = vadd.f32 0.00028619796, %v3218_v2  ;;  %v5397_v12 = vmul.f32 0.70710677, %v5391_v38 }
 0x97d   : > { %v3230_v46 = vadd.f32 0.001143296, %v3229_v50  ;;  %v3183_v21 = vadd.f32 0.05243302, %v3182_v40 }
 0x97e   : > { %v3195_v48 = vmul.f32 %v3194_v62, %v5375_v10  ;;  %v3088_v52 = vadd.f32 %v3082_v39, %v3038_v5  ;;  %v3220_v14 = vmul.f32 %v3219_v8, %v5388_v16  ;;  %v3256_v57 = vmul.f32 %v5397_v12, %v5397_v12  ;;  %v3132_v54 = vpop.f32.mrf.mxu3 }
 0x97f   : > { %v3231_v45 = vmul.f32 %v3230_v46, %v5388_v16  ;;  %v3184_v1 = vmul.f32 %v3183_v21, %v5375_v10 }
 0x980   : > { %v3196_v61 = vadd.f32 0.4994258, %v3195_v48  ;;  %v3138_v43 = vadd.f32 %v3132_v54, %v3088_v52  ;;  %v5404_v47 = vmin.f32 %v3256_v57, 16.0  ;;  %v3221_v29 = vadd.f32 0.0036580483, %v3220_v14 }
 0x981   : > { %v3232_v42 = vadd.f32 0.014752088, %v3231_v45  ;;  %v3185_v23 = vadd.f32 0.18741608, %v3184_v1 }
 0x982   : > { %v3197_v28 = vmul.f32 %v3196_v61, %v5375_v10  ;;  %v5407_v53 = vadd.f32 %v3162_v4, %v3138_v43  ;;  %v3258_v6 = vmul.f32 2.1237322e-06, %v5404_v47  ;;  %v3269_v55 = vmul.f32 3.8918573e-05, %v5404_v47 }
 0x983   : > { %v3233_v11 = vmul.f32 %v3232_v42, %v5388_v16  ;;  %v3222_v19 = vmul.f32 %v3221_v29, %v5388_v16  ;;  %v3186_v9 = vmul.f32 %v3185_v23, %v5375_v10 }
 0x984   : > { %v3198_v58 = vadd.f32 1.0, %v3197_v28  ;;  %v5414_v49 = vmul.f32 0.70710677, %v5407_v53  ;;  %v3259_v13 = vadd.f32 0.00028619796, %v3258_v6 }
 0x985   : > { %v3234_v18 = vadd.f32 0.112945676, %v3233_v11  ;;  %v3270_v15 = vadd.f32 0.001143296, %v3269_v55  ;;  %v3223_v51 = vadd.f32 0.05243302, %v3222_v19 }
 0x986   : > { %4287 = vrcp.f32 %v3198_v58  ;;  %v3260_v22 = vmul.f32 %v3259_v13, %v5404_v47  ;;  %v3296_v24 = vmul.f32 %v5414_v49, %v5414_v49  ;;  %v3187_v60 = vadd.f32 1.1283791, %v3186_v9 }
 0x987   : > { %v3235_v26 = vmul.f32 %v3234_v18, %v5388_v16  ;;  %v3271_v30 = vmul.f32 %v3270_v15, %v5404_v47  ;;  %v3224_v27 = vmul.f32 %v3223_v51, %v5388_v16  ;;  %v3208_v62 = vand.u32 2147483647, %v3198_v58 }
 0x988   : > { %v5422_v31 = vmin.f32 %v3296_v24, 16.0  ;;  %v3261_v44 = vadd.f32 0.0036580483, %v3260_v22  ;;  %v3210_v5 = vand.u32 2147483648, %v3198_v58  ;;  %vm3204_vm6 = vweird.f32 %v3198_v58 }
 0x989   : > { %v3236_v7 = vadd.f32 0.4994258, %v3235_v26  ;;  %v3272_v59 = vadd.f32 0.014752088, %v3271_v30  ;;  %v3225_v21 = vadd.f32 0.18741608, %v3224_v27  ;;  %v3188_v54 = vmul.f32 %v3187_v60, %v5371_v0 }
 0x98a   : > { %v3298_v35 = vmul.f32 2.1237322e-06, %v5422_v31  ;;  %v3309_v17 = vmul.f32 3.8918573e-05, %v5422_v31  ;;  %v3262_v8 = vmul.f32 %v3261_v44, %v5404_v47  ;;  %v3211_v61 = vor.u32 1.1754944e-38, %v3210_v5 }
 0x98b   : > { %v3237_v32 = vmul.f32 %v3236_v7, %v5388_v16  ;;  %v3273_v40 = vmul.f32 %v3272_v59, %v5404_v47  ;;  %vm3209_vm8 = vcmp.eq.f32.partialorder %v3208_v62, 8.507059e+37  ;;  %v3226_v6 = vmul.f32 %v3225_v21, %v5388_v16 }
 0x98c   : > { %v4288_v33 = vpop.eup %4287  ;;  %v3299_v2 = vadd.f32 0.00028619796, %v3298_v35  ;;  %v3310_v50 = vadd.f32 0.001143296, %v3309_v17  ;;  %v3263_v43 = vadd.f32 0.05243302, %v3262_v8 }
 0x98d   : > { %v3200_v36 = vmul.f32 %v4288_v33, %v3198_v58  ;;  %v5428_v41 = vadd.f32 1.0, %v3237_v32  ;;  %v3274_v46 = vadd.f32 0.112945676, %v3273_v40  ;;  %vm3205_vm5 = vweird.f32 %v4288_v33 }
 0x98e   : > { %v3300_v48 = vmul.f32 %v3299_v2, %v5422_v31  ;;  %v3311_v52 = vmul.f32 %v3310_v50, %v5422_v31  ;;  %vm3206_vm7 = vmor %vm3204_vm6, %vm3205_vm5  ;;  %v3264_v23 = vmul.f32 %v3263_v43, %v5404_v47  ;;  %v3227_v7 = vadd.f32 1.1283791, %v3226_v6 }
 0x98f   : > { %v3201_v10 = vsub.f32 1.0, %v3200_v36  ;;  %4289 = vrcp.f32 %v5428_v41  ;;  %v3275_v14 = vmul.f32 %v3274_v46, %v5404_v47  ;;  %v3250_v19 = vand.u32 2147483648, %v5428_v41 }
 0x990   : > { %v3312_v57 = vadd.f32 0.014752088, %v3311_v52  ;;  %v3301_v29 = vadd.f32 0.0036580483, %v3300_v48  ;;  %v3248_v51 = vand.u32 2147483647, %v5428_v41  ;;  %vm3244_vm10 = vweird.f32 %v5428_v41 }
 0x991   : > { %v3202_v39 = vmul.f32 %v4288_v33, %v3201_v10  ;;  %v3276_v4 = vadd.f32 0.4994258, %v3275_v14  ;;  %v3168_v30 = vmul.f32 0.5, %v5368_v63  ;;  %v3251_v59 = vor.u32 1.1754944e-38, %v3250_v19 }
 0x992   : > { %v3313_v1 = vmul.f32 %v3312_v57, %v5422_v31  ;;  %v3302_v15 = vmul.f32 %v3301_v29, %v5422_v31  ;;  %v3265_v35 = vadd.f32 0.18741608, %v3264_v23  ;;  %v3228_v36 = vmul.f32 %v3227_v7, %v5382_v25 }
 0x993   : > { %v3203_v45 = vadd.f32 %v4288_v33, %v3202_v39  ;;  %v3277_v18 = vmul.f32 %v3276_v4, %v5404_v47  ;;  %vm3249_vm13 = vcmp.eq.f32.partialorder %v3248_v51, 8.507059e+37  ;;  %v3169_v8 = vmul.f32 0.5, %v5379_v37 }
 0x994   : > { %v3314_v0 = vadd.f32 0.112945676, %v3313_v1  ;;  %v3303_v17 = vadd.f32 0.05243302, %v3302_v15 }
 0x995   : > { %v4290_v42 = vpop.eup %4289  ;;  %v3207_v28 = vsel %vm3206_vm7, %v4288_v33, %v3203_v45  ;;  %v3278_v22 = vadd.f32 1.0, %v3277_v18 }
 0x996   : > { %v3212_v11 = vsel %vm3209_vm8, %v3211_v61, %v3207_v28  ;;  %v3240_v55 = vmul.f32 %v4290_v42, %v5428_v41  ;;  %v3315_v24 = vmul.f32 %v3314_v0, %v5422_v31  ;;  %vm3245_vm9 = vweird.f32 %v4290_v42 }
 0x997   : > { %v3213_v58 = vmul.f32 %v3212_v11, %v3188_v54  ;;  %4291 = vrcp.f32 %v3278_v22  ;;  %vm3246_vm11 = vmor %vm3244_vm10, %vm3245_vm9  ;;  %v3266_v41 = vmul.f32 %v3265_v35, %v5404_v47  ;;  %v3304_v62 = vmul.f32 %v3303_v17, %v5422_v31 }
 0x998   : > { %v3241_v13 = vsub.f32 1.0, %v3240_v55  ;;  %v3316_v44 = vadd.f32 0.4994258, %v3315_v24  ;;  %v3290_v48 = vand.u32 2147483648, %v3278_v22  ;;  %v3288_v45 = vand.u32 2147483647, %v3278_v22 }
 0x999   : > { %v3820_v26 = vclamps-f32 %v3213_v58, 1.0  ;;  %v3267_v39 = vadd.f32 1.1283791, %v3266_v41  ;;  %v3305_v52 = vadd.f32 0.18741608, %v3304_v62  ;;  %vm3284_vm15 = vweird.f32 %v3278_v22 }
 0x99a   : > { %v3242_v16 = vmul.f32 %v4290_v42, %v3241_v13  ;;  %v3317_v40 = vmul.f32 %v3316_v44, %v5422_v31  ;;  %v3291_v61 = vor.u32 1.1754944e-38, %v3290_v48  ;;  %vm3289_vm2 = vcmp.eq.f32.partialorder %v3288_v45, 8.507059e+37 }
 0x99b   : > { %v3336_v9 = vadd.f32 1.0, %v3820_v26  ;;  %v3306_v43 = vmul.f32 %v3305_v52, %v5422_v31  ;;  %v3268_v37 = vmul.f32 %v3267_v39, %v5397_v12  ;;  %v3170_v31 = vmul.f32 0.5, %v5391_v38 }
 0x99c   : > { %v3243_v32 = vadd.f32 %v4290_v42, %v3242_v16  ;;  %v3318_v60 = vadd.f32 1.0, %v3317_v40  ;;  %v3171_v24 = vmul.f32 0.5, %v5407_v53 }
 0x99d   : > { %v3340_v33 = vmul.f32 %v3336_v9, %v3168_v30  ;;  %v4292_v10 = vpop.eup %4291  ;;  %v3307_v11 = vadd.f32 1.1283791, %v3306_v43 }
 0x99e   : > { %v3247_v27 = vsel %vm3246_vm11, %v4290_v42, %v3243_v32  ;;  %v3280_v5 = vmul.f32 %v4292_v10, %v3278_v22  ;;  %4293 = vrcp.f32 %v3318_v60  ;;  %vm3285_vm14 = vweird.f32 %v4292_v10 }
 0x99f   : > { %v3344_v2 = vadd.f32 %v3340_v33, %v5254_v34  ;;  %v3252_v63 = vsel %vm3249_vm13, %v3251_v59, %v3247_v27  ;;  %vm3286_vm1 = vmor %vm3284_vm15, %vm3285_vm14  ;;  %v3328_v58 = vand.u32 2147483647, %v3318_v60  ;;  %vm3324_vm4 = vweird.f32 %v3318_v60 }
 0x9a0   : > { %v3253_v50 = vmul.f32 %v3252_v63, %v3228_v36  ;;  %v3281_v34 = vsub.f32 1.0, %v3280_v5  ;;  %v3308_v19 = vmul.f32 %v3307_v11, %v5414_v49 }
 0x9a1   : > { %3348 = vst.msk [vmem:[%s5453_s23] sm:$0xff] %vm336_vm0, %v3344_v2  ;;  %vm3329_vm5 = vcmp.eq.f32.partialorder %v3328_v58, 8.507059e+37 }
 0x9a2   : > { %v3821_v25 = vclamps-f32 %v3253_v50, 1.0  ;;  %v3282_v14 = vmul.f32 %v4292_v10, %v3281_v34 }
 0x9a4   : > { %v3337_v46 = vadd.f32 1.0, %v3821_v25  ;;  %v3283_v47 = vadd.f32 %v4292_v10, %v3282_v14  ;;  %v4294_v54 = vpop.eup %4293 }
 0x9a5   : > { %v3320_v42 = vmul.f32 %v4294_v54, %v3318_v60  ;;  %vm3325_vm3 = vweird.f32 %v4294_v54 }
 0x9a6   : > { %v3341_v21 = vmul.f32 %v3337_v46, %v3169_v8  ;;  %v3287_v4 = vsel %vm3286_vm1, %v4292_v10, %v3283_v47  ;;  %vm3326_vm12 = vmor %vm3324_vm4, %vm3325_vm3 }
 0x9a7   : > { %v3292_v28 = vsel %vm3289_vm2, %v3291_v61, %v3287_v4  ;;  %v3321_v1 = vsub.f32 1.0, %v3320_v42 }
 0x9a8   : > { %v3345_v57 = vadd.f32 %v3341_v21, %v5251_v56  ;;  %v3293_v29 = vmul.f32 %v3292_v28, %v3268_v37  ;;  %v3330_v56 = vand.u32 2147483648, %v3318_v60 }
 0x9a9   : > { %v3322_v55 = vmul.f32 %v4294_v54, %v3321_v1 }
 0x9aa   : > { %3349 = vst.msk [vmem:[%s5453_s23 + $0x8] sm:$0xff] %vm336_vm0, %v3345_v57  ;;  %v3822_v6 = vclamps-f32 %v3293_v29, 1.0  ;;  %v3331_v12 = vor.u32 1.1754944e-38, %v3330_v56 }
 0x9ab   : > { %v3323_v0 = vadd.f32 %v4294_v54, %v3322_v55 }
 0x9ac   : > { %v3338_v18 = vadd.f32 1.0, %v3822_v6 }
 0x9ad   : > { %v3327_v23 = vsel %vm3326_vm12, %v4294_v54, %v3323_v0 }
 0x9ae   : > { %v3342_v13 = vmul.f32 %v3338_v18, %v3170_v31  ;;  %v3332_v26 = vsel %vm3329_vm5, %v3331_v12, %v3327_v23 }
 0x9af   : > { %v3333_v15 = vmul.f32 %v3332_v26, %v3308_v19 }
 0x9b0   : > { %v3346_v22 = vadd.f32 %v3342_v13, %v5257_v20 }
 0x9b1   : > { %v3823_v38 = vclamps-f32 %v3333_v15, 1.0 }
 0x9b2   : > { %3350 = vst.msk [vmem:[%s5453_s23 + $0x10] sm:$0xff] %vm336_vm0, %v3346_v22 }
 0x9b3   : > { %v3339_v49 = vadd.f32 1.0, %v3823_v38 }
 0x9b5   : > { %v3343_v7 = vmul.f32 %v3339_v49, %v3171_v24 }
 0x9b7   : > { %v3347_v16 = vadd.f32 %v3343_v7, %v5267_v3 }
 0x9b9   : > { %3351 = vst.msk [vmem:[%s5453_s23 + $0x18] sm:$0xff] %vm336_vm0, %v3347_v16 }
 0x9ba   : > { %4356 = shalt.err (!%p4353_p10)
}
 0x9bb   : > { %s4422_s10 = smov 128   ;;  %s4423_s11 = smov 8  }
 0x9bc   : > { %3902 = dma.vmem_to_hbm [thread:$0]  (%p4506_p11), %s3366_s9, 512, %s3368_s16, %s3353_s22, %s4422_s10, %s4422_s10, %s4423_s11  }
 0x9bd PF: > { %s3382_s29 = sand.u32 1, %s4387_s18   ;;  %p3909_p13 = pnand %p3478_p2, %p4510_p12 }
 0x9be   : > { %s3383_s28 = scalar_lea.sflag [#allocation4], %s3382_s29 }
 0x9bf   : > { %p3910_p1 = pneg %p3909_p13 }
 0x9c1   : > { %4382 = dma.done.wait (%p3910_p1), %s3383_s28, 512  }
 0x9c2   : > { %4384 = vsyncadd (%p3910_p1), %s3383_s28, 4294966784  ;;  %p19_p0 = scmp.ge.s32.totalorder %s4479_s24, 4   ;;  %s5569_s18 = smov %s4391_s19 }
 0x9c3   : > { %s5570_s19 = smov %s4395_s20  ;;  %s5571_s20 = smov %s4491_s27 }
 0x9c4   : > { %s5572_s21 = smov %s4479_s24  ;;  %21 = sbr.rel (!%p19_p0) target bundleno = 11 (0xb), region = 133 }
 0x9c9   :  { %3389 = vsyncpa [#allocation3], 1 }
 0x9ca   :  { %3391 = vsyncpa [#allocation3 + $0x1], 1 }
 0x9cb   :  { %3392 = vsyncpa [#allocation6], 1 }
 0x9cc   :  { %3393 = vsyncpa [#allocation4], 1 }
 0x9cd   :  { %3395 = vsyncpa [#allocation4 + $0x1], 1 }

</bundles_post_ra>
